<compile_context>
chip_gen: v5e
topology: v5e:2x2
jax: 0.10.0
libtpu: 0.0.40
codegen_flags: <defaults>
</compile_context>

<pallas_src>
import numpy as np
import jax
import jax.numpy as jnp
from jax.experimental import pallas as pl
from jax.experimental.pallas import tpu as pltpu


# ----------------------------------------------------------------------------
# Pallas kernel: cosine similarity along the last (W) axis of NCHW blocks
# ----------------------------------------------------------------------------
def _cos_w_kernel(idx_r_ref, idx_l_ref, r_ref, l_ref, o_ref):
    # r_ref / l_ref: (1, c_tile, H, W); o_ref: (1, c_tile, H)
    del idx_r_ref, idx_l_ref  # only consumed by the index_maps
    r = r_ref[...].astype(jnp.float32)
    l = l_ref[...].astype(jnp.float32)
    dot = jnp.sum(r * l, axis=-1)
    nr = jnp.sqrt(jnp.sum(r * r, axis=-1))
    nl = jnp.sqrt(jnp.sum(l * l, axis=-1))
    denom = jnp.maximum(nr * nl, jnp.float32(1e-8))  # torch.cosine_similarity eps
    o_ref[...] = (dot / denom).astype(o_ref.dtype)


def _pick_c_tile(C, H, W, target_bytes=2 << 20):
    """Largest channel tile (divisor of C, multiple of 8) with ~target_bytes
    of input per grid step (both streams, f32)."""
    per_c = 2 * H * W * 4
    ct = C
    while ct > 8 and ct % 16 == 0 and ct * per_c > target_bytes:
        ct //= 2
    return ct


def cosine_similarity_w(fea, idx_r, idx_l):
    """fea: (N, C, H, W).  idx_r, idx_l: (P,) int32 batch indices.
    Returns (P, C, H) == torch.cosine_similarity(fea[idx_r], fea[idx_l], dim=3)."""
    N, C, H, W = fea.shape
    P = int(idx_r.shape[0])
    if P == 0:
        return jnp.zeros((0, C, H), dtype=fea.dtype)

    c_tile = _pick_c_tile(C, H, W)
    n_ct = pl.cdiv(C, c_tile)

    # Data-dependent batch gather expressed directly in the index maps
    # (scalar-prefetch refs arrive as trailing positional args).
    in_spec_r = pl.BlockSpec((1, c_tile, H, W), lambda p, c, ir, il: (ir[p], c, 0, 0))
    in_spec_l = pl.BlockSpec((1, c_tile, H, W), lambda p, c, ir, il: (il[p], c, 0, 0))
    out_spec = pl.BlockSpec((1, c_tile, H), lambda p, c, ir, il: (p, c, 0))

    return pl.pallas_call(
        _cos_w_kernel,
        out_shape=jax.ShapeDtypeStruct((P, C, H), fea.dtype),
        grid_spec=pltpu.PrefetchScalarGridSpec(
            num_scalar_prefetch=2,
            grid=(P, n_ct),
            in_specs=[in_spec_r, in_spec_l],
            out_specs=out_spec,
        ),
        compiler_params=pltpu.CompilerParams(
            dimension_semantics=("parallel", "parallel")),
    )(idx_r, idx_l, fea, fea)


# ----------------------------------------------------------------------------
# forward (== ganInstRtinexLayer.forward)
# ----------------------------------------------------------------------------
def gan_inst_rtinex_forward(features, target, domainlables, anchors=None):
    # anchors is a registered buffer in the module; unused by forward.
    if not isinstance(target, (jax.Array, np.ndarray)):   # torch.is_tensor(target)
        return None
    if not isinstance(domainlables, list):
        return None

    dlb = np.asarray(domainlables)
    idx_r = np.flatnonzero(dlb == 0).astype(np.int32)   # feaR = fea[dlb == 0]
    idx_l = np.flatnonzero(dlb == 3).astype(np.int32)   # feaL = fea[dlb == 3]

    # torch.cosine_similarity broadcasting over the batch dim.
    if idx_r.size != idx_l.size:
        if idx_r.size == 1:
            idx_r = np.repeat(idx_r, idx_l.size)
        elif idx_l.size == 1:
            idx_l = np.repeat(idx_l, idx_r.size)
        else:
            raise ValueError("domain-0 / domain-3 batch counts are not broadcastable")
    idx_r_j = jnp.asarray(idx_r, dtype=jnp.int32)
    idx_l_j = jnp.asarray(idx_l, dtype=jnp.int32)

    cos_list = []
    for fea in features:
        # NOTE: fea.permute(0,2,3,1), tanh(feaL) and fea[dlb==1] are dead code
        # in the reference forward (never used in the returned value) — skipped.
        cos_list.append(cosine_similarity_w(fea, idx_r_j, idx_l_j))
    return cos_list


# ----------------------------------------------------------------------------
# Demo / self-check
# ----------------------------------------------------------------------------
if __name__ == "__main__":
    key = jax.random.PRNGKey(0)

    # Module config (anchors buffer is unused by forward, kept for faithfulness).
    anchors_cfg = ((4, 4, 6, 6, 8, 8), (2, 2, 3, 3, 4, 4))
    anchors = np.array(anchors_cfg, dtype=np.float32).reshape(len(anchors_cfg), -1, 2)

    # Two pyramid levels, NCHW, batch=4, channels=32.
    N, C = 4, 32
    k1, k2, k3, key = jax.random.split(key, 4)
    features = [
        jax.random.normal(k1, (N, C, 16, 16), dtype=jnp.float32),
        jax.random.normal(k2, (N, C, 8, 8), dtype=jnp.float32),
    ]
    target = jax.random.uniform(k3, (6, 6), dtype=jnp.float32)  # only tensor-ness checked
    domainlables = [0, 3, 0, 3]

    cos_list = gan_inst_rtinex_forward(features, target, domainlables, anchors)
    jax.block_until_ready(cos_list)

    # Reference check against plain jnp (same math as torch.cosine_similarity dim=3).
    dlb = np.asarray(domainlables)
    idx_r = np.flatnonzero(dlb == 0)
    idx_l = np.flatnonzero(dlb == 3)
    for fea, got in zip(features, cos_list):
        r = fea[idx_r].astype(jnp.float32)
        l = fea[idx_l].astype(jnp.float32)
        dot = jnp.sum(r * l, axis=3)
        den = jnp.maximum(jnp.sqrt(jnp.sum(r * r, 3)) * jnp.sqrt(jnp.sum(l * l, 3)),
                          jnp.float32(1e-8))
        ref = dot / den
        np.testing.assert_allclose(np.asarray(got), np.asarray(ref),
                                   rtol=1e-5, atol=1e-5)

    # Early-return behavior matches the reference module.
    assert gan_inst_rtinex_forward(features, None, domainlables) is None
    assert gan_inst_rtinex_forward(features, target, "not-a-list") is None

    print("KERNEL_OK")
</pallas_src>

<mosaic_0001>
module attributes {stable_mosaic.version = 11 : i64} {
  func.func @_cos_w_kernel(%arg0: i32, %arg1: i32, %arg2: memref<2xi32, #tpu.memory_space<smem>>, %arg3: memref<2xi32, #tpu.memory_space<smem>>, %arg4: memref<1x32x16x16xf32, #tpu.memory_space<vmem>>, %arg5: memref<1x32x16x16xf32, #tpu.memory_space<vmem>>, %arg6: memref<1x32x16xf32, #tpu.memory_space<vmem>>) attributes {dimension_semantics = [#tpu.dimension_semantics<parallel>, #tpu.dimension_semantics<parallel>], iteration_bounds = array<i64: 2, 1>, scalar_prefetch = 2 : i64, scratch_operands = 0 : i64, tpu.core_type = #tpu.core_type<tc>, window_params = [{transform_indices = @transform_0, window_bounds = array<i64: 1, 32, 16, 16>}, {transform_indices = @transform_1, window_bounds = array<i64: 1, 32, 16, 16>}, {transform_indices = @transform_2, window_bounds = array<i64: 1, 32, 16>}]} {
    %c0 = arith.constant 0 : index
    %c0_0 = arith.constant 0 : index
    %c0_1 = arith.constant 0 : index
    %c0_2 = arith.constant 0 : index
    %0 = vector.load %arg4[%c0, %c0_0, %c0_1, %c0_2] : memref<1x32x16x16xf32, #tpu.memory_space<vmem>>, vector<1x32x16x16xf32>
    %c0_3 = arith.constant 0 : index
    %c0_4 = arith.constant 0 : index
    %c0_5 = arith.constant 0 : index
    %c0_6 = arith.constant 0 : index
    %1 = vector.load %arg5[%c0_3, %c0_4, %c0_5, %c0_6] : memref<1x32x16x16xf32, #tpu.memory_space<vmem>>, vector<1x32x16x16xf32>
    %2 = arith.mulf %0, %1 : vector<1x32x16x16xf32>
    %cst = arith.constant dense<0.000000e+00> : vector<1x32x16xf32>
    %3 = vector.multi_reduction <add>, %2, %cst [3] : vector<1x32x16x16xf32> to vector<1x32x16xf32>
    %4 = arith.mulf %0, %0 : vector<1x32x16x16xf32>
    %cst_7 = arith.constant dense<0.000000e+00> : vector<1x32x16xf32>
    %5 = vector.multi_reduction <add>, %4, %cst_7 [3] : vector<1x32x16x16xf32> to vector<1x32x16xf32>
    %6 = math.sqrt %5 : vector<1x32x16xf32>
    %7 = arith.mulf %1, %1 : vector<1x32x16x16xf32>
    %cst_8 = arith.constant dense<0.000000e+00> : vector<1x32x16xf32>
    %8 = vector.multi_reduction <add>, %7, %cst_8 [3] : vector<1x32x16x16xf32> to vector<1x32x16xf32>
    %9 = math.sqrt %8 : vector<1x32x16xf32>
    %10 = arith.mulf %6, %9 : vector<1x32x16xf32>
    %cst_9 = arith.constant 9.99999993E-9 : f32
    %11 = vector.broadcast %cst_9 : f32 to vector<1x32x16xf32>
    %12 = arith.maximumf %10, %11 : vector<1x32x16xf32>
    %13 = arith.divf %3, %12 : vector<1x32x16xf32>
    %c0_10 = arith.constant 0 : index
    %c0_11 = arith.constant 0 : index
    %c0_12 = arith.constant 0 : index
    %14 = vector.load %arg6[%c0_10, %c0_11, %c0_12] : memref<1x32x16xf32, #tpu.memory_space<vmem>>, vector<1x32x16xf32>
    tpu.vector_store %arg6[%c0_10, %c0_11, %c0_12], %13 {strides = array<i32>} : memref<1x32x16xf32, #tpu.memory_space<vmem>>, vector<1x32x16xf32>,
    return
  }
  func.func @transform_0(%arg0: i32, %arg1: i32, %arg2: memref<2xi32, #tpu.memory_space<smem>>, %arg3: memref<2xi32, #tpu.memory_space<smem>>) -> (i32, i32, i32, i32) {
    %0 = arith.index_cast %arg0 : i32 to index
    %1 = memref.load %arg2[%0] : memref<2xi32, #tpu.memory_space<smem>>
    %c0_i32 = arith.constant 0 : i32
    %c0_i32_0 = arith.constant 0 : i32
    %c0_i32_1 = arith.constant 0 : i32
    return %1, %arg1, %c0_i32, %c0_i32_0 : i32, i32, i32, i32
  }
  func.func @transform_1(%arg0: i32, %arg1: i32, %arg2: memref<2xi32, #tpu.memory_space<smem>>, %arg3: memref<2xi32, #tpu.memory_space<smem>>) -> (i32, i32, i32, i32) {
    %0 = arith.index_cast %arg0 : i32 to index
    %1 = memref.load %arg3[%0] : memref<2xi32, #tpu.memory_space<smem>>
    %c0_i32 = arith.constant 0 : i32
    %c0_i32_0 = arith.constant 0 : i32
    %c0_i32_1 = arith.constant 0 : i32
    return %1, %arg1, %c0_i32, %c0_i32_0 : i32, i32, i32, i32
  }
  func.func @transform_2(%arg0: i32, %arg1: i32, %arg2: memref<2xi32, #tpu.memory_space<smem>>, %arg3: memref<2xi32, #tpu.memory_space<smem>>) -> (i32, i32, i32) {
    %c0_i32 = arith.constant 0 : i32
    %c0_i32_0 = arith.constant 0 : i32
    return %arg0, %arg1, %c0_i32 : i32, i32, i32
  }
}

</mosaic_0001>

<bundles_post_ra>
// kernel: tpu_custom_call.1
= control target key start
LH: loop header
LB: loop body
LE: loop exit
PB: predicated region body
PF: predicated region fallthrough
CT: control target
= control target key end

     0   :  { %s4633_s21 = smov [#allocation3]   ;;  %s4634_s22 = smov [#allocation4]   ;;  %s9084_s0 = inlined_call_operand.vmem [shape: s32[2], index: 0, kind: input, shape index: {}]   ;;  %s9085_s2 = inlined_call_operand.vmem [shape: f32[4,32,16,16], index: 2, kind: input, shape index: {}]   ;;  %s9086_s3 = inlined_call_operand.vmem [shape: f32[4,32,16,16], index: 3, kind: input, shape index: {}]   ;;  %s9087_s4 = inlined_call_operand.vmem [shape: f32[2,32,16], index: 4, kind: output, shape index: {}]   ;;  %s9088_s1 = inlined_call_operand.vmem [shape: s32[2], index: 1, kind: input, shape index: {}]  }
   0x1   :  { %s10_s17 = sshll.u32 %s9084_s0, 4  ;;  %s15_s20 = sshll.u32 %s9088_s1, 4  ;;  %s11_s17 = int_to_ptr.vmem [resolvable:$true] %s10_s17  ;;  %s16_s20 = int_to_ptr.vmem [resolvable:$true] %s15_s20 }
   0x2   :  { %13 = dma.vmem_to_smem %s11_s17, 16, %s4633_s21, [#allocation2] }
   0x3   :  { %18 = dma.vmem_to_smem %s16_s20, 16, %s4634_s22, [#allocation2] }
   0x4   :  { %4619 = dma.done.wait [#allocation2], 32 }
   0x5   :  { %4620 = vsyncadd [#allocation2], 4294967264 }
   0x6   :  { %21 = sfence }
   0x7   :  { %s4666_s23 = smov 0   ;;  %s4668_s24 = smov 0  }
   0x8   :  { %s4670_s25 = smov 0  }
   0x9 LB: > { %s39_s0 = sadd.s32 1, %s4627_s24  ;;  %p4097_p0 = scmp.ge.s32.totalorder %s4631_s25, 1  ;;  %s4631_s25 = sphi %s4670_s25, %s27_s25   ;;  %s4627_s24 = sphi %s4668_s24, %s9492_s24   ;;  %s4623_s23 = sphi %s4666_s23, %s9491_s23  }
   0xa   : > { %p41_p1 = scmp.ge.s32.totalorder %s39_s0, 2  ;;  %p175_p2 = scmp.lt.s32.totalorder %s4631_s25, 3 }
   0xc   : > { %s9494_s0 = smov (%p41_p1, %s39_s0), 0  ;;  %p176_p3 = pnand %p4097_p0, %p175_p2 }
   0xe   : > { %179 = sbr.rel (%p176_p3) target bundleno = 1088 (0x440), region = 28 }
  0x13   : > { %s218_s1 = sld [smem:[#allocation3 + %s4623_s23]]  ;;  %vm9108_vm0 = vcmask 130048   ;;  %p245_p6 = scmp.lt.s32.totalorder %s4623_s23, 1 }
  0x14   : > { %s231_s26 = sld [smem:[#allocation4 + %s4623_s23]] }
  0x15   : > { %s9500_s23 = smov (!%p245_p6, %s4623_s23), 1 }
  0x16   : > { %s4108_s9 = sshll.u32 %s9500_s23, 5 }
  0x17   : > { %s7856_s12 = scalar_lea.vmem %s9087_s4, %s4108_s9 }
  0x19   : > { %p220_p4 = scmp.lt.s32.totalorder %s218_s1, 3 }
  0x1a   : > { %p233_p5 = scmp.lt.s32.totalorder %s231_s26, 3 }
  0x1b   : > { %s9496_s1 = smov (!%p220_p4, %s218_s1), 3 }
  0x1c   : > { %s9498_s26 = smov (!%p233_p5, %s231_s26), 3  ;;  %s4106_s27 = sshll.u32 %s9496_s1, 9 }
  0x1d   : > { %s4691_s30 = scalar_lea.vmem %s9085_s2, %s4106_s27  ;;  %s4107_s5 = sshll.u32 %s9498_s26, 9 }
  0x1e   : > { %s4696_s8 = scalar_lea.vmem %s9086_s3, %s4107_s5  ;;  %v4699_v0 = vld [vmem:[%s4691_s30 + $0x20] sm:$0xff]  ;;  %v4702_v1 = vld [vmem:[%s4691_s30 + $0x10] sm:$0xff]  ;;  %v4714_v9 = vld [vmem:[%s4691_s30 + $0x28] sm:$0xff] }
  0x1f   : > { %v4705_v2 = vld [vmem:[%s4691_s30] sm:$0xff]  ;;  %v320_v4 = vld [vmem:[%s4696_s8 + $0x10] sm:$0xff]  ;;  %v323_v10 = vld [vmem:[%s4696_s8 + $0x28] sm:$0xff] }
  0x20   : > { %v322_v3 = vld [vmem:[%s4696_s8 + $0x20] sm:$0xff]  ;;  %v384_v7 = vmul.f32 %v320_v4, %v4702_v1  ;;  %v4718_v11 = vld [vmem:[%s4691_s30 + $0x18] sm:$0xff]  ;;  %v4725_v16 = vld [vmem:[%s4691_s30 + $0x8] sm:$0xff]  ;;  %v387_v18 = vmul.f32 %v323_v10, %v4714_v9 }
  0x21   : > { %v318_v5 = vld [vmem:[%s4696_s8] sm:$0xff]  ;;  %v386_v6 = vmul.f32 %v322_v3, %v4699_v0  ;;  %v321_v12 = vld [vmem:[%s4696_s8 + $0x18] sm:$0xff]  ;;  %v319_v17 = vld [vmem:[%s4696_s8 + $0x8] sm:$0xff] }
  0x22   : > { %v382_v8 = vmul.f32 %v318_v5, %v4705_v2  ;;  %v453_v14 = vsel %vm9108_vm0, %v384_v7, 0.0  ;;  %v385_v19 = vmul.f32 %v321_v12, %v4718_v11  ;;  %v383_v20 = vmul.f32 %v319_v17, %v4725_v16  ;;  %v4734_v23 = vld [vmem:[%s4691_s30 + $0x40] sm:$0xff]  ;;  %v4739_v26 = vld [vmem:[%s4691_s30 + $0x38] sm:$0xff]  ;;  %v4743_v28 = vld [vmem:[%s4691_s30 + $0x30] sm:$0xff] }
  0x23   : > { %v459_v13 = vsel %vm9108_vm0, %v386_v6, 0.0  ;;  %454 = vadd.xlane.f32.xlu1 %v453_v14  ;;  %v462_v21 = vsel %vm9108_vm0, %v387_v18, 0.0  ;;  %v326_v25 = vld [vmem:[%s4696_s8 + $0x40] sm:$0xff]  ;;  %v325_v27 = vld [vmem:[%s4696_s8 + $0x38] sm:$0xff]  ;;  %v324_v29 = vld [vmem:[%s4696_s8 + $0x30] sm:$0xff] }
  0x24   : > { %v447_v15 = vsel %vm9108_vm0, %v382_v8, 0.0  ;;  %460 = vadd.xlane.f32.xlu2 %v459_v13  ;;  %v456_v22 = vsel %vm9108_vm0, %v385_v19, 0.0  ;;  %v450_v24 = vsel %vm9108_vm0, %v383_v20, 0.0  ;;  %v390_v30 = vmul.f32 %v326_v25, %v4734_v23  ;;  %v4752_v35 = vld [vmem:[%s4691_s30 + $0x58] sm:$0xff]  ;;  %v4757_v38 = vld [vmem:[%s4691_s30 + $0x50] sm:$0xff]  ;;  %v4761_v40 = vld [vmem:[%s4691_s30 + $0x48] sm:$0xff] }
  0x25   : > { %448 = vadd.xlane.f32.xlu0 %v447_v15  ;;  %v389_v31 = vmul.f32 %v325_v27, %v4739_v26  ;;  %v388_v32 = vmul.f32 %v324_v29, %v4743_v28  ;;  %v329_v37 = vld [vmem:[%s4696_s8 + $0x58] sm:$0xff]  ;;  %v328_v39 = vld [vmem:[%s4696_s8 + $0x50] sm:$0xff]  ;;  %v327_v41 = vld [vmem:[%s4696_s8 + $0x48] sm:$0xff] }
  0x26   : > { %v471_v33 = vsel %vm9108_vm0, %v390_v30, 0.0  ;;  %v393_v42 = vmul.f32 %v329_v37, %v4752_v35  ;;  %v392_v43 = vmul.f32 %v328_v39, %v4757_v38  ;;  %v391_v44 = vmul.f32 %v327_v41, %v4761_v40  ;;  %v4770_v47 = vld [vmem:[%s4691_s30 + $0x70] sm:$0xff]  ;;  %v4775_v50 = vld [vmem:[%s4691_s30 + $0x68] sm:$0xff]  ;;  %v4779_v52 = vld [vmem:[%s4691_s30 + $0x60] sm:$0xff] }
  0x27   : > { %v468_v34 = vsel %vm9108_vm0, %v389_v31, 0.0  ;;  %v465_v36 = vsel %vm9108_vm0, %v388_v32, 0.0  ;;  %v332_v49 = vld [vmem:[%s4696_s8 + $0x70] sm:$0xff]  ;;  %v331_v51 = vld [vmem:[%s4696_s8 + $0x68] sm:$0xff]  ;;  %v330_v53 = vld [vmem:[%s4696_s8 + $0x60] sm:$0xff] }
  0x28   : > { %v480_v45 = vsel %vm9108_vm0, %v393_v42, 0.0  ;;  %v477_v46 = vsel %vm9108_vm0, %v392_v43, 0.0  ;;  %v474_v48 = vsel %vm9108_vm0, %v391_v44, 0.0  ;;  %v396_v54 = vmul.f32 %v332_v49, %v4770_v47  ;;  %v4788_v59 = vld [vmem:[%s4691_s30 + $0x88] sm:$0xff]  ;;  %v4793_v62 = vld [vmem:[%s4691_s30 + $0x80] sm:$0xff]  ;;  %v4797_v3 = vld [vmem:[%s4691_s30 + $0x78] sm:$0xff] }
  0x29   : > { %v395_v55 = vmul.f32 %v331_v51, %v4775_v50  ;;  %v394_v56 = vmul.f32 %v330_v53, %v4779_v52  ;;  %v335_v61 = vld [vmem:[%s4696_s8 + $0x88] sm:$0xff]  ;;  %v334_v63 = vld [vmem:[%s4696_s8 + $0x80] sm:$0xff]  ;;  %v333_v4 = vld [vmem:[%s4696_s8 + $0x78] sm:$0xff] }
  0x2a   : > { %v489_v57 = vsel %vm9108_vm0, %v396_v54, 0.0  ;;  %v399_v5 = vmul.f32 %v335_v61, %v4788_v59  ;;  %v398_v6 = vmul.f32 %v334_v63, %v4793_v62  ;;  %v397_v7 = vmul.f32 %v333_v4, %v4797_v3  ;;  %v4806_v12 = vld [vmem:[%s4691_s30 + $0xa0] sm:$0xff]  ;;  %v4811_v15 = vld [vmem:[%s4691_s30 + $0x98] sm:$0xff]  ;;  %v4815_v18 = vld [vmem:[%s4691_s30 + $0x90] sm:$0xff] }
  0x2b   : > { %457 = vadd.xlane.f32.xlu1 %v456_v22  ;;  %v486_v58 = vsel %vm9108_vm0, %v395_v55, 0.0  ;;  %v483_v60 = vsel %vm9108_vm0, %v394_v56, 0.0  ;;  %v338_v14 = vld [vmem:[%s4696_s8 + $0xa0] sm:$0xff]  ;;  %v337_v17 = vld [vmem:[%s4696_s8 + $0x98] sm:$0xff]  ;;  %v336_v19 = vld [vmem:[%s4696_s8 + $0x90] sm:$0xff] }
  0x2c   : > { %463 = vadd.xlane.f32.xlu2 %v462_v21  ;;  %v498_v8 = vsel %vm9108_vm0, %v399_v5, 0.0  ;;  %v495_v10 = vsel %vm9108_vm0, %v398_v6, 0.0  ;;  %v492_v13 = vsel %vm9108_vm0, %v397_v7, 0.0  ;;  %v402_v20 = vmul.f32 %v338_v14, %v4806_v12  ;;  %v4824_v27 = vld [vmem:[%s4691_s30 + $0xb8] sm:$0xff]  ;;  %v4829_v31 = vld [vmem:[%s4691_s30 + $0xb0] sm:$0xff]  ;;  %v4851_v49 = vld [vmem:[%s4691_s30 + $0xc0] sm:$0xff] }
  0x2d   : > { %451 = vadd.xlane.f32.xlu0 %v450_v24  ;;  %v401_v21 = vmul.f32 %v337_v17, %v4811_v15  ;;  %v400_v22 = vmul.f32 %v336_v19, %v4815_v18  ;;  %v341_v30 = vld [vmem:[%s4696_s8 + $0xb8] sm:$0xff]  ;;  %v340_v32 = vld [vmem:[%s4696_s8 + $0xb0] sm:$0xff]  ;;  %v342_v51 = vld [vmem:[%s4696_s8 + $0xc0] sm:$0xff] }
  0x2e   : > { %v507_v24 = vsel %vm9108_vm0, %v402_v20, 0.0  ;;  %v404_v37 = vmul.f32 %v340_v32, %v4829_v31  ;;  %v4842_v43 = vld [vmem:[%s4691_s30 + $0xd0] sm:$0xff]  ;;  %v406_v55 = vmul.f32 %v342_v51, %v4851_v49  ;;  %v347_v61 = vld [vmem:[%s4696_s8 + $0xe8] sm:$0xff]  ;;  %v4865_v63 = vld [vmem:[%s4691_s30 + $0xe0] sm:$0xff] }
  0x2f   : > { %v504_v25 = vsel %vm9108_vm0, %v401_v21, 0.0  ;;  %v501_v29 = vsel %vm9108_vm0, %v400_v22, 0.0  ;;  %v346_v4 = vld [vmem:[%s4696_s8 + $0xe0] sm:$0xff]  ;;  %v4869_v5 = vld [vmem:[%s4691_s30 + $0xd8] sm:$0xff] }
  0x30   : > { %v513_v42 = vsel %vm9108_vm0, %v404_v37, 0.0  ;;  %v345_v6 = vld [vmem:[%s4696_s8 + $0xd8] sm:$0xff]  ;;  %v4878_v17 = vld [vmem:[%s4691_s30 + $0x100] sm:$0xff] }
  0x31   : > { %v350_v20 = vld [vmem:[%s4696_s8 + $0x100] sm:$0xff]  ;;  %v4883_v21 = vld [vmem:[%s4691_s30 + $0xf8] sm:$0xff] }
  0x32   : > { %v349_v22 = vld [vmem:[%s4696_s8 + $0xf8] sm:$0xff] }
  0x33   : > { %469 = vadd.xlane.f32.xlu1 %v468_v34  ;;  %v339_v34 = vld [vmem:[%s4696_s8 + $0xa8] sm:$0xff]  ;;  %v4896_v37 = vld [vmem:[%s4691_s30 + $0x118] sm:$0xff] }
  0x34   : > { %472 = vadd.xlane.f32.xlu2 %v471_v33  ;;  %v4833_v33 = vld [vmem:[%s4691_s30 + $0xa8] sm:$0xff] }
  0x35   : > { %466 = vadd.xlane.f32.xlu0 %v465_v36  ;;  %v405_v36 = vmul.f32 %v341_v30, %v4824_v27  ;;  %v403_v39 = vmul.f32 %v339_v34, %v4833_v33  ;;  %v413_v30 = vmul.f32 %v349_v22, %v4883_v21  ;;  %v4932_v22 = vld [vmem:[%s4691_s30 + $0x148] sm:$0xff] }
  0x37   : > { %v516_v41 = vsel %vm9108_vm0, %v405_v36, 0.0  ;;  %v510_v44 = vsel %vm9108_vm0, %v403_v39, 0.0  ;;  %v540_v36 = vsel %vm9108_vm0, %v413_v30, 0.0  ;;  %v4937_v30 = vld [vmem:[%s4691_s30 + $0x140] sm:$0xff] }
  0x3b   : > { %478 = vadd.xlane.f32.xlu1 %v477_v46  ;;  %v4847_v46 = vld [vmem:[%s4691_s30 + $0xc8] sm:$0xff] }
  0x3c   : > { %481 = vadd.xlane.f32.xlu2 %v480_v45  ;;  %v344_v45 = vld [vmem:[%s4696_s8 + $0xd0] sm:$0xff] }
  0x3d   : > { %475 = vadd.xlane.f32.xlu0 %v474_v48  ;;  %v343_v48 = vld [vmem:[%s4696_s8 + $0xc8] sm:$0xff]  ;;  %v408_v53 = vmul.f32 %v344_v45, %v4842_v43 }
  0x3e   : > { %v407_v54 = vmul.f32 %v343_v48, %v4847_v46  ;;  %v4905_v45 = vld [vmem:[%s4691_s30 + $0x108] sm:$0xff] }
  0x3f   : > { %v525_v56 = vsel %vm9108_vm0, %v408_v53, 0.0  ;;  %v351_v48 = vld [vmem:[%s4696_s8 + $0x108] sm:$0xff] }
  0x43   : > { %487 = vadd.xlane.f32.xlu1 %v486_v58  ;;  %v4860_v58 = vld [vmem:[%s4691_s30 + $0xe8] sm:$0xff] }
  0x44   : > { %490 = vadd.xlane.f32.xlu2 %v489_v57  ;;  %v522_v57 = vsel %vm9108_vm0, %v407_v54, 0.0  ;;  %v411_v7 = vmul.f32 %v347_v61, %v4860_v58  ;;  %v415_v54 = vmul.f32 %v351_v48, %v4905_v45  ;;  %v356_v61 = vld [vmem:[%s4696_s8 + $0x130] sm:$0xff] }
  0x45   : > { %484 = vadd.xlane.f32.xlu0 %v483_v60  ;;  %v519_v60 = vsel %vm9108_vm0, %v406_v55, 0.0 }
  0x4b   : > { %496 = vadd.xlane.f32.xlu1 %v495_v10  ;;  %v409_v10 = vmul.f32 %v345_v6, %v4869_v5  ;;  %v355_v6 = vld [vmem:[%s4696_s8 + $0x128] sm:$0xff] }
  0x4c   : > { %499 = vadd.xlane.f32.xlu2 %v498_v8  ;;  %v410_v8 = vmul.f32 %v346_v4, %v4865_v63  ;;  %v4919_v4 = vld [vmem:[%s4691_s30 + $0x128] sm:$0xff] }
  0x4d   : > { %493 = vadd.xlane.f32.xlu0 %v492_v13  ;;  %v534_v13 = vsel %vm9108_vm0, %v411_v7, 0.0  ;;  %v528_v19 = vsel %vm9108_vm0, %v409_v10, 0.0  ;;  %v4923_v7 = vld [vmem:[%s4691_s30 + $0x120] sm:$0xff] }
  0x4e   : > { %v531_v14 = vsel %vm9108_vm0, %v410_v8, 0.0  ;;  %v354_v8 = vld [vmem:[%s4696_s8 + $0x120] sm:$0xff] }
  0x53   : > { %505 = vadd.xlane.f32.xlu1 %v504_v25  ;;  %v348_v25 = vld [vmem:[%s4696_s8 + $0xf0] sm:$0xff] }
  0x54   : > { %508 = vadd.xlane.f32.xlu2 %v507_v24  ;;  %v4887_v24 = vld [vmem:[%s4691_s30 + $0xf0] sm:$0xff] }
  0x55   : > { %502 = vadd.xlane.f32.xlu0 %v501_v29  ;;  %v414_v29 = vmul.f32 %v350_v20, %v4878_v17  ;;  %v412_v32 = vmul.f32 %v348_v25, %v4887_v24 }
  0x57   : > { %v543_v34 = vsel %vm9108_vm0, %v414_v29, 0.0  ;;  %v537_v39 = vsel %vm9108_vm0, %v412_v32, 0.0  ;;  %v359_v29 = vld [vmem:[%s4696_s8 + $0x148] sm:$0xff]  ;;  %v358_v32 = vld [vmem:[%s4696_s8 + $0x140] sm:$0xff] }
  0x5b   : > { %514 = vadd.xlane.f32.xlu1 %v513_v42  ;;  %v4901_v42 = vld [vmem:[%s4691_s30 + $0x110] sm:$0xff] }
  0x5c   : > { %517 = vadd.xlane.f32.xlu2 %v516_v41  ;;  %v353_v41 = vld [vmem:[%s4696_s8 + $0x118] sm:$0xff] }
  0x5d   : > { %511 = vadd.xlane.f32.xlu0 %v510_v44  ;;  %v352_v44 = vld [vmem:[%s4696_s8 + $0x110] sm:$0xff]  ;;  %v417_v51 = vmul.f32 %v353_v41, %v4896_v37  ;;  %v422_v41 = vmul.f32 %v358_v32, %v4937_v30 }
  0x5e   : > { %v416_v53 = vmul.f32 %v352_v44, %v4901_v42  ;;  %v4973_v32 = vld [vmem:[%s4691_s30 + $0x170] sm:$0xff] }
  0x5f   : > { %v552_v55 = vsel %vm9108_vm0, %v417_v51, 0.0  ;;  %v567_v51 = vsel %vm9108_vm0, %v422_v41, 0.0  ;;  %v363_v41 = vld [vmem:[%s4696_s8 + $0x168] sm:$0xff] }
  0x63   : > { %523 = vadd.xlane.f32.xlu1 %v522_v57  ;;  %v4914_v57 = vld [vmem:[%s4691_s30 + $0x130] sm:$0xff] }
  0x64   : > { %526 = vadd.xlane.f32.xlu2 %v525_v56  ;;  %v549_v56 = vsel %vm9108_vm0, %v416_v53, 0.0  ;;  %v420_v10 = vmul.f32 %v356_v61, %v4914_v57  ;;  %v4950_v53 = vld [vmem:[%s4691_s30 + $0x160] sm:$0xff]  ;;  %v4959_v61 = vld [vmem:[%s4691_s30 + $0x150] sm:$0xff] }
  0x65   : > { %520 = vadd.xlane.f32.xlu0 %v519_v60  ;;  %v546_v60 = vsel %vm9108_vm0, %v415_v54, 0.0 }
  0x6b   : > { %532 = vadd.xlane.f32.xlu1 %v531_v14  ;;  %v418_v14 = vmul.f32 %v354_v8, %v4923_v7 }
  0x6c   : > { %535 = vadd.xlane.f32.xlu2 %v534_v13  ;;  %v419_v13 = vmul.f32 %v355_v6, %v4919_v4  ;;  %v360_v6 = vld [vmem:[%s4696_s8 + $0x150] sm:$0xff] }
  0x6d   : > { %529 = vadd.xlane.f32.xlu0 %v528_v19  ;;  %v561_v19 = vsel %vm9108_vm0, %v420_v10, 0.0  ;;  %v555_v25 = vsel %vm9108_vm0, %v418_v14, 0.0 }
  0x6e   : > { %v558_v20 = vsel %vm9108_vm0, %v419_v13, 0.0  ;;  %v424_v13 = vmul.f32 %v360_v6, %v4959_v61 }
  0x73   : > { %541 = vadd.xlane.f32.xlu1 %v540_v36  ;;  %v357_v36 = vld [vmem:[%s4696_s8 + $0x138] sm:$0xff] }
  0x74   : > { %544 = vadd.xlane.f32.xlu2 %v543_v34  ;;  %v4941_v34 = vld [vmem:[%s4691_s30 + $0x138] sm:$0xff] }
  0x75   : > { %538 = vadd.xlane.f32.xlu0 %v537_v39  ;;  %v423_v39 = vmul.f32 %v359_v29, %v4932_v22  ;;  %v421_v44 = vmul.f32 %v357_v36, %v4941_v34  ;;  %v365_v29 = vld [vmem:[%s4696_s8 + $0x178] sm:$0xff]  ;;  %v364_v36 = vld [vmem:[%s4696_s8 + $0x170] sm:$0xff] }
  0x77   : > { %v570_v48 = vsel %vm9108_vm0, %v423_v39, 0.0  ;;  %v564_v54 = vsel %vm9108_vm0, %v421_v44, 0.0  ;;  %v4977_v39 = vld [vmem:[%s4691_s30 + $0x168] sm:$0xff] }
  0x7b   : > { %550 = vadd.xlane.f32.xlu1 %v549_v56  ;;  %v4955_v56 = vld [vmem:[%s4691_s30 + $0x158] sm:$0xff] }
  0x7c   : > { %553 = vadd.xlane.f32.xlu2 %v552_v55  ;;  %v362_v55 = vld [vmem:[%s4696_s8 + $0x160] sm:$0xff] }
  0x7d   : > { %547 = vadd.xlane.f32.xlu0 %v546_v60  ;;  %v361_v60 = vld [vmem:[%s4696_s8 + $0x158] sm:$0xff]  ;;  %v426_v8 = vmul.f32 %v362_v55, %v4950_v53 }
  0x7e   : > { %v425_v10 = vmul.f32 %v361_v60, %v4955_v56 }
  0x7f   : > { %v579_v14 = vsel %vm9108_vm0, %v426_v8, 0.0 }
  0x83   : > { %559 = vadd.xlane.f32.xlu1 %v558_v20  ;;  %v4968_v20 = vld [vmem:[%s4691_s30 + $0x178] sm:$0xff] }
  0x84   : > { %562 = vadd.xlane.f32.xlu2 %v561_v19  ;;  %v576_v19 = vsel %vm9108_vm0, %v425_v10, 0.0  ;;  %9110 = vst [vmem:[#allocation6_spill] sm:$0xff] %v4968_v20  ;;  %v429_v44 = vmul.f32 %v365_v29, %v4968_v20  ;;  %v4992_v10 = vld [vmem:[%s4691_s30 + $0x190] sm:$0xff]  ;;  %v5001_v29 = vld [vmem:[%s4691_s30 + $0x180] sm:$0xff]  ;;  %v5016_v20 = vld [vmem:[%s4691_s30 + $0x1a8] sm:$0xff] }
  0x85   : > { %556 = vadd.xlane.f32.xlu0 %v555_v25  ;;  %v573_v25 = vsel %vm9108_vm0, %v424_v13, 0.0  ;;  %9114 = vst [vmem:[#allocation10_spill] sm:$0xff] %v4992_v10 }
  0x86   : > { %v588_v6 = vsel %vm9108_vm0, %v429_v44, 0.0  ;;  %9116 = vst [vmem:[#allocation12_spill] sm:$0xff] %v5001_v29 }
  0x87   : > { %9120 = vst [vmem:[#allocation16_spill] sm:$0xff] %v5016_v20 }
  0x8b   : > { %568 = vadd.xlane.f32.xlu1 %v567_v51  ;;  %v427_v51 = vmul.f32 %v363_v41, %v4977_v39 }
  0x8c   : > { %571 = vadd.xlane.f32.xlu2 %v570_v48  ;;  %v428_v48 = vmul.f32 %v364_v36, %v4973_v32  ;;  %v366_v36 = vld [vmem:[%s4696_s8 + $0x180] sm:$0xff] }
  0x8d   : > { %565 = vadd.xlane.f32.xlu0 %v564_v54  ;;  %v582_v13 = vsel %vm9108_vm0, %v427_v51, 0.0 }
  0x8e   : > { %v585_v8 = vsel %vm9108_vm0, %v428_v48, 0.0  ;;  %v430_v48 = vmul.f32 %v366_v36, %v5001_v29  ;;  %v5025_v36 = vld [vmem:[%s4691_s30 + $0x198] sm:$0xff] }
  0x8f   : > { %9122 = vst [vmem:[#allocation18_spill] sm:$0xff] %v5025_v36 }
  0x93   : > { %577 = vadd.xlane.f32.xlu1 %v576_v19  ;;  %v4997_v19 = vld [vmem:[%s4691_s30 + $0x188] sm:$0xff] }
  0x94   : > { %580 = vadd.xlane.f32.xlu2 %v579_v14  ;;  %v368_v14 = vld [vmem:[%s4696_s8 + $0x190] sm:$0xff]  ;;  %9115 = vst [vmem:[#allocation11_spill] sm:$0xff] %v4997_v19 }
  0x95   : > { %574 = vadd.xlane.f32.xlu0 %v573_v25  ;;  %v367_v25 = vld [vmem:[%s4696_s8 + $0x188] sm:$0xff]  ;;  %v432_v41 = vmul.f32 %v368_v14, %v4992_v10  ;;  %v5021_v14 = vld [vmem:[%s4691_s30 + $0x1a0] sm:$0xff] }
  0x96   : > { %v4985_v55 = vpop.xlane.xlu1 %454  ;;  %v431_v44 = vmul.f32 %v367_v25, %v4997_v19  ;;  %9121 = vst [vmem:[#allocation17_spill] sm:$0xff] %v5021_v14  ;;  %v370_v25 = vld [vmem:[%s4696_s8 + $0x1a0] sm:$0xff] }
  0x97   : > { %v4983_v54 = vpop.xlane.xlu2 %460  ;;  %9112 = vst [vmem:[#allocation8_spill] sm:$0xff] %v4985_v55  ;;  %v5040_v19 = vld [vmem:[%s4691_s30 + $0x1c0] sm:$0xff] }
  0x98   : > { %9111 = vst [vmem:[#allocation7_spill] sm:$0xff] %v4983_v54  ;;  %v4987_v60 = vpop.xlane.xlu0 %448 }
  0x99   : > { %9113 = vst [vmem:[#allocation9_spill] sm:$0xff] %v4987_v60  ;;  %v597_v60 = vsel %vm9108_vm0, %v432_v41, 0.0 }
  0x9a   : > { %9126 = vst [vmem:[#allocation22_spill] sm:$0xff] %v5040_v19 }
  0x9b   : > { %586 = vadd.xlane.f32.xlu1 %v585_v8  ;;  %v591_v8 = vsel %vm9108_vm0, %v430_v48, 0.0 }
  0x9c   : > { %589 = vadd.xlane.f32.xlu2 %v588_v6  ;;  %v594_v6 = vsel %vm9108_vm0, %v431_v44, 0.0  ;;  %v434_v44 = vmul.f32 %v370_v25, %v5021_v14  ;;  %v373_v25 = vld [vmem:[%s4696_s8 + $0x1b8] sm:$0xff] }
  0x9d   : > { %583 = vadd.xlane.f32.xlu0 %v582_v13  ;;  %v371_v13 = vld [vmem:[%s4696_s8 + $0x1a8] sm:$0xff]  ;;  %v5064_v14 = vld [vmem:[%s4691_s30 + $0x1d8] sm:$0xff] }
  0x9e   : > { %v5009_v54 = vpop.xlane.xlu1 %457  ;;  %v435_v41 = vmul.f32 %v371_v13, %v5016_v20  ;;  %v5045_v13 = vld [vmem:[%s4691_s30 + $0x1b8] sm:$0xff]  ;;  %9132 = vst [vmem:[#allocation28_spill] sm:$0xff] %v5064_v14 }
  0x9f   : > { %v5007_v51 = vpop.xlane.xlu2 %463  ;;  %9118 = vst [vmem:[#allocation14_spill] sm:$0xff] %v5009_v54 }
  0xa0   : > { %9117 = vst [vmem:[#allocation13_spill] sm:$0xff] %v5007_v51  ;;  %v5011_v55 = vpop.xlane.xlu0 %451  ;;  %v369_v51 = vld [vmem:[%s4696_s8 + $0x198] sm:$0xff]  ;;  %v606_v29 = vsel %vm9108_vm0, %v435_v41, 0.0 }
  0xa1   : > { %9119 = vst [vmem:[#allocation15_spill] sm:$0xff] %v5011_v55  ;;  %v433_v48 = vmul.f32 %v369_v51, %v5025_v36  ;;  %v5049_v51 = vld [vmem:[%s4691_s30 + $0x1b0] sm:$0xff] }
  0xa2   : > { %9127 = vst [vmem:[#allocation23_spill] sm:$0xff] %v5045_v13 }
  0xa3   : > { %595 = vadd.xlane.f32.xlu1 %v594_v6  ;;  %v600_v6 = vsel %vm9108_vm0, %v433_v48, 0.0  ;;  %9128 = vst [vmem:[#allocation24_spill] sm:$0xff] %v5049_v51 }
  0xa4   : > { %598 = vadd.xlane.f32.xlu2 %v597_v60  ;;  %v603_v60 = vsel %vm9108_vm0, %v434_v44, 0.0  ;;  %v437_v44 = vmul.f32 %v373_v25, %v5045_v13  ;;  %v376_v25 = vld [vmem:[%s4696_s8 + $0x1d0] sm:$0xff] }
  0xa5   : > { %592 = vadd.xlane.f32.xlu0 %v591_v8  ;;  %v374_v8 = vld [vmem:[%s4696_s8 + $0x1c0] sm:$0xff]  ;;  %v5088_v13 = vld [vmem:[%s4691_s30 + $0x1f0] sm:$0xff] }
  0xa6   : > { %v5033_v54 = vpop.xlane.xlu1 %469  ;;  %v438_v41 = vmul.f32 %v374_v8, %v5040_v19  ;;  %v5069_v8 = vld [vmem:[%s4691_s30 + $0x1d0] sm:$0xff] }
  0xa7   : > { %v5031_v55 = vpop.xlane.xlu2 %472  ;;  %9124 = vst [vmem:[#allocation20_spill] sm:$0xff] %v5033_v54  ;;  %v372_v54 = vld [vmem:[%s4696_s8 + $0x1b0] sm:$0xff] }
  0xa8   : > { %9123 = vst [vmem:[#allocation19_spill] sm:$0xff] %v5031_v55  ;;  %v5035_v10 = vpop.xlane.xlu0 %466  ;;  %v436_v48 = vmul.f32 %v372_v54, %v5049_v51  ;;  %v615_v36 = vsel %vm9108_vm0, %v438_v41, 0.0  ;;  %v5073_v54 = vld [vmem:[%s4691_s30 + $0x1c8] sm:$0xff] }
  0xa9   : > { %9125 = vst [vmem:[#allocation21_spill] sm:$0xff] %v5035_v10 }
  0xaa   : > { %9133 = vst [vmem:[#allocation29_spill] sm:$0xff] %v5069_v8 }
  0xab   : > { %604 = vadd.xlane.f32.xlu1 %v603_v60  ;;  %v609_v60 = vsel %vm9108_vm0, %v436_v48, 0.0  ;;  %9134 = vst [vmem:[#allocation30_spill] sm:$0xff] %v5073_v54 }
  0xac   : > { %607 = vadd.xlane.f32.xlu2 %v606_v29  ;;  %v612_v29 = vsel %vm9108_vm0, %v437_v44, 0.0  ;;  %v440_v44 = vmul.f32 %v376_v25, %v5069_v8  ;;  %v379_v25 = vld [vmem:[%s4696_s8 + $0x1e8] sm:$0xff] }
  0xad   : > { %601 = vadd.xlane.f32.xlu0 %v600_v6  ;;  %v377_v6 = vld [vmem:[%s4696_s8 + $0x1d8] sm:$0xff] }
  0xae   : > { %v5057_v55 = vpop.xlane.xlu1 %478  ;;  %v441_v41 = vmul.f32 %v377_v6, %v5064_v14  ;;  %v5093_v6 = vld [vmem:[%s4691_s30 + $0x1e8] sm:$0xff] }
  0xaf   : > { %v5055_v10 = vpop.xlane.xlu2 %481  ;;  %9130 = vst [vmem:[#allocation26_spill] sm:$0xff] %v5057_v55  ;;  %v375_v55 = vld [vmem:[%s4696_s8 + $0x1c8] sm:$0xff] }
  0xb0   : > { %9129 = vst [vmem:[#allocation25_spill] sm:$0xff] %v5055_v10  ;;  %v5059_v20 = vpop.xlane.xlu0 %475  ;;  %v439_v48 = vmul.f32 %v375_v55, %v5073_v54  ;;  %v624_v51 = vsel %vm9108_vm0, %v441_v41, 0.0  ;;  %v5097_v55 = vld [vmem:[%s4691_s30 + $0x1e0] sm:$0xff] }
  0xb1   : > { %9131 = vst [vmem:[#allocation27_spill] sm:$0xff] %v5059_v20 }
  0xb3   : > { %613 = vadd.xlane.f32.xlu1 %v612_v29  ;;  %v618_v29 = vsel %vm9108_vm0, %v439_v48, 0.0 }
  0xb4   : > { %616 = vadd.xlane.f32.xlu2 %v615_v36  ;;  %v621_v36 = vsel %vm9108_vm0, %v440_v44, 0.0  ;;  %v443_v44 = vmul.f32 %v379_v25, %v5093_v6 }
  0xb5   : > { %610 = vadd.xlane.f32.xlu0 %v609_v60  ;;  %v380_v60 = vld [vmem:[%s4696_s8 + $0x1f0] sm:$0xff] }
  0xb6   : > { %v5081_v20 = vpop.xlane.xlu1 %487  ;;  %v444_v41 = vmul.f32 %v380_v60, %v5088_v13  ;;  %v630_v8 = vsel %vm9108_vm0, %v443_v44, 0.0  ;;  %v639_v60 = vmul.f32 %v4705_v2, %v4705_v2  ;;  %v643_v2 = vmul.f32 %v4699_v0, %v4699_v0 }
  0xb7   : > { %v5079_v10 = vpop.xlane.xlu2 %490  ;;  %9136 = vst [vmem:[#allocation32_spill] sm:$0xff] %v5081_v20  ;;  %v646_v0 = vmul.f32 %v4739_v26, %v4739_v26  ;;  %v649_v26 = vmul.f32 %v4757_v38, %v4757_v38  ;;  %v652_v38 = vmul.f32 %v4775_v50, %v4775_v50  ;;  %v655_v50 = vmul.f32 %v4793_v62, %v4793_v62 }
  0xb8   : > { %9135 = vst [vmem:[#allocation31_spill] sm:$0xff] %v5079_v10  ;;  %v5083_v19 = vpop.xlane.xlu0 %484  ;;  %v378_v10 = vld [vmem:[%s4696_s8 + $0x1e0] sm:$0xff]  ;;  %v633_v54 = vsel %vm9108_vm0, %v444_v41, 0.0  ;;  %v658_v62 = vmul.f32 %v4811_v15, %v4811_v15  ;;  %v661_v15 = vmul.f32 %v4829_v31, %v4829_v31  ;;  %v664_v31 = vmul.f32 %v4847_v46, %v4847_v46 }
  0xb9   : > { %9137 = vst [vmem:[#allocation33_spill] sm:$0xff] %v5083_v19  ;;  %v442_v20 = vmul.f32 %v378_v10, %v5097_v55  ;;  %v640_v10 = vmul.f32 %v4725_v16, %v4725_v16  ;;  %v642_v16 = vmul.f32 %v4718_v11, %v4718_v11  ;;  %v644_v11 = vmul.f32 %v4714_v9, %v4714_v9 }
  0xba   : > { %v648_v9 = vmul.f32 %v4761_v40, %v4761_v40  ;;  %v650_v40 = vmul.f32 %v4752_v35, %v4752_v35  ;;  %v654_v35 = vmul.f32 %v4797_v3, %v4797_v3  ;;  %v656_v3 = vmul.f32 %v4788_v59, %v4788_v59 }
  0xbb   : > { %622 = vadd.xlane.f32.xlu1 %v621_v36  ;;  %v5113_v36 = vld [vmem:[%s4691_s30 + $0x1f8] sm:$0xff]  ;;  %v660_v59 = vmul.f32 %v4833_v33, %v4833_v33  ;;  %v662_v33 = vmul.f32 %v4824_v27, %v4824_v27  ;;  %v667_v46 = vmul.f32 %v4865_v63, %v4865_v63  ;;  %v666_v27 = vmul.f32 %v4869_v5, %v4869_v5 }
  0xbc   : > { %625 = vadd.xlane.f32.xlu2 %v624_v51  ;;  %v627_v51 = vsel %vm9108_vm0, %v442_v20, 0.0  ;;  %v706_v20 = vsel %vm9108_vm0, %v640_v10, 0.0  ;;  %v670_v63 = vmul.f32 %v4883_v21, %v4883_v21  ;;  %v668_v5 = vmul.f32 %v4860_v58, %v4860_v58 }
  0xbd   : > { %619 = vadd.xlane.f32.xlu0 %v618_v29  ;;  %v381_v29 = vld [vmem:[%s4696_s8 + $0x1f8] sm:$0xff]  ;;  %v673_v21 = vmul.f32 %v4901_v42, %v4901_v42  ;;  %v672_v58 = vmul.f32 %v4905_v45, %v4905_v45  ;;  %v676_v42 = vmul.f32 %v4919_v4, %v4919_v4  ;;  %v674_v45 = vmul.f32 %v4896_v37, %v4896_v37 }
  0xbe   : > { %v5105_v48 = vpop.xlane.xlu1 %496  ;;  %v445_v25 = vmul.f32 %v381_v29, %v5113_v36  ;;  %v679_v4 = vmul.f32 %v4937_v30, %v4937_v30  ;;  %v678_v37 = vmul.f32 %v4941_v34, %v4941_v34  ;;  %v682_v30 = vmul.f32 %v4955_v56, %v4955_v56 }
  0xbf   : > { %v5103_v19 = vpop.xlane.xlu2 %499  ;;  %9139 = vst [vmem:[#allocation35_spill] sm:$0xff] %v5105_v48  ;;  %v680_v34 = vmul.f32 %v4932_v22, %v4932_v22  ;;  %v685_v56 = vmul.f32 %v4973_v32, %v4973_v32  ;;  %v684_v22 = vmul.f32 %v4977_v39, %v4977_v39  ;;  %v9187_v32 = vld [vmem:[#allocation11_spill] sm:$0xff] }
  0xc0   : > { %9138 = vst [vmem:[#allocation34_spill] sm:$0xff] %v5103_v19  ;;  %v5107_v14 = vpop.xlane.xlu0 %493  ;;  %v688_v39 = vmul.f32 %v9187_v32, %v9187_v32  ;;  %v9191_v32 = vld [vmem:[#allocation18_spill] sm:$0xff] }
  0xc1   : > { %9140 = vst [vmem:[#allocation36_spill] sm:$0xff] %v5107_v14 }
  0xc3   : > { %631 = vadd.xlane.f32.xlu1 %v630_v8  ;;  %v636_v8 = vsel %vm9108_vm0, %v445_v25, 0.0  ;;  %v712_v25 = vsel %vm9108_vm0, %v642_v16, 0.0  ;;  %v724_v16 = vsel %vm9108_vm0, %v646_v0, 0.0 }
  0xc4   : > { %634 = vadd.xlane.f32.xlu2 %v633_v54  ;;  %v703_v54 = vsel %vm9108_vm0, %v639_v60, 0.0  ;;  %v715_v60 = vsel %vm9108_vm0, %v643_v2, 0.0 }
  0xc5   : > { %628 = vadd.xlane.f32.xlu0 %v627_v51  ;;  %v641_v51 = vmul.f32 %v4702_v1, %v4702_v1  ;;  %v645_v1 = vmul.f32 %v4743_v28, %v4743_v28  ;;  %v647_v28 = vmul.f32 %v4734_v23, %v4734_v23  ;;  %v651_v23 = vmul.f32 %v4779_v52, %v4779_v52 }
  0xc6   : > { %v5123_v41 = vpop.xlane.xlu1 %505  ;;  %v653_v52 = vmul.f32 %v4770_v47, %v4770_v47  ;;  %v657_v47 = vmul.f32 %v4815_v18, %v4815_v18  ;;  %v659_v18 = vmul.f32 %v4806_v12, %v4806_v12  ;;  %v663_v12 = vmul.f32 %v4851_v49, %v4851_v49 }
  0xc7   : > { %v5121_v48 = vpop.xlane.xlu2 %508  ;;  %9142 = vst [vmem:[#allocation38_spill] sm:$0xff] %v5123_v41  ;;  %v665_v49 = vmul.f32 %v4842_v43, %v4842_v43  ;;  %v669_v43 = vmul.f32 %v4887_v24, %v4887_v24  ;;  %v671_v24 = vmul.f32 %v4878_v17, %v4878_v17  ;;  %v675_v17 = vmul.f32 %v4923_v7, %v4923_v7 }
  0xc8   : > { %9141 = vst [vmem:[#allocation37_spill] sm:$0xff] %v5121_v48  ;;  %v5125_v44 = vpop.xlane.xlu0 %502  ;;  %v677_v7 = vmul.f32 %v4914_v57, %v4914_v57  ;;  %v681_v57 = vmul.f32 %v4959_v61, %v4959_v61  ;;  %v683_v61 = vmul.f32 %v4950_v53, %v4950_v53 }
  0xc9   : > { %9143 = vst [vmem:[#allocation39_spill] sm:$0xff] %v5125_v44 }
  0xcb   : > { %704 = vadd.xlane.f32.xlu1 %v703_v54 }
  0xcc   : > { %707 = vadd.xlane.f32.xlu2 %v706_v20  ;;  %v709_v20 = vsel %vm9108_vm0, %v641_v51, 0.0  ;;  %v721_v51 = vsel %vm9108_vm0, %v645_v1, 0.0  ;;  %v733_v1 = vsel %vm9108_vm0, %v649_v26, 0.0 }
  0xcd   : > { %637 = vadd.xlane.f32.xlu0 %v636_v8 }
  0xce   : > { %v5138_v41 = vpop.xlane.xlu1 %514 }
  0xcf   : > { %v5136_v29 = vpop.xlane.xlu2 %517  ;;  %9145 = vst [vmem:[#allocation41_spill] sm:$0xff] %v5138_v41 }
  0xd0   : > { %9144 = vst [vmem:[#allocation40_spill] sm:$0xff] %v5136_v29  ;;  %v5140_v10 = vpop.xlane.xlu0 %511 }
  0xd1   : > { %9146 = vst [vmem:[#allocation42_spill] sm:$0xff] %v5140_v10 }
  0xd3   : > { %713 = vadd.xlane.f32.xlu1 %v712_v25 }
  0xd4   : > { %716 = vadd.xlane.f32.xlu2 %v715_v60  ;;  %v718_v60 = vsel %vm9108_vm0, %v644_v11, 0.0  ;;  %v730_v11 = vsel %vm9108_vm0, %v648_v9, 0.0  ;;  %v742_v9 = vsel %vm9108_vm0, %v652_v38, 0.0 }
  0xd5   : > { %710 = vadd.xlane.f32.xlu0 %v709_v20 }
  0xd6   : > { %v5153_v8 = vpop.xlane.xlu1 %523 }
  0xd7   : > { %v5151_v54 = vpop.xlane.xlu2 %526  ;;  %9148 = vst [vmem:[#allocation44_spill] sm:$0xff] %v5153_v8 }
  0xd8   : > { %9147 = vst [vmem:[#allocation43_spill] sm:$0xff] %v5151_v54  ;;  %v5155_v2 = vpop.xlane.xlu0 %520 }
  0xd9   : > { %9149 = vst [vmem:[#allocation45_spill] sm:$0xff] %v5155_v2 }
  0xdb   : > { %722 = vadd.xlane.f32.xlu1 %v721_v51 }
  0xdc   : > { %725 = vadd.xlane.f32.xlu2 %v724_v16  ;;  %v727_v16 = vsel %vm9108_vm0, %v647_v28, 0.0  ;;  %v739_v28 = vsel %vm9108_vm0, %v651_v23, 0.0  ;;  %v751_v23 = vsel %vm9108_vm0, %v655_v50, 0.0 }
  0xdd   : > { %719 = vadd.xlane.f32.xlu0 %v718_v60 }
  0xde   : > { %v5168_v20 = vpop.xlane.xlu1 %532 }
  0xdf   : > { %v5166_v25 = vpop.xlane.xlu2 %535  ;;  %9151 = vst [vmem:[#allocation47_spill] sm:$0xff] %v5168_v20 }
  0xe0   : > { %9150 = vst [vmem:[#allocation46_spill] sm:$0xff] %v5166_v25  ;;  %v5170_v0 = vpop.xlane.xlu0 %529 }
  0xe1   : > { %9152 = vst [vmem:[#allocation48_spill] sm:$0xff] %v5170_v0 }
  0xe3   : > { %731 = vadd.xlane.f32.xlu1 %v730_v11 }
  0xe4   : > { %734 = vadd.xlane.f32.xlu2 %v733_v1  ;;  %v736_v1 = vsel %vm9108_vm0, %v650_v40, 0.0  ;;  %v748_v40 = vsel %vm9108_vm0, %v654_v35, 0.0  ;;  %v760_v35 = vsel %vm9108_vm0, %v658_v62, 0.0 }
  0xe5   : > { %728 = vadd.xlane.f32.xlu0 %v727_v16 }
  0xe6   : > { %v5183_v60 = vpop.xlane.xlu1 %541 }
  0xe7   : > { %v5181_v51 = vpop.xlane.xlu2 %544  ;;  %9154 = vst [vmem:[#allocation50_spill] sm:$0xff] %v5183_v60 }
  0xe8   : > { %9153 = vst [vmem:[#allocation49_spill] sm:$0xff] %v5181_v51  ;;  %v5185_v26 = vpop.xlane.xlu0 %538 }
  0xe9   : > { %9155 = vst [vmem:[#allocation51_spill] sm:$0xff] %v5185_v26 }
  0xeb   : > { %740 = vadd.xlane.f32.xlu1 %v739_v28 }
  0xec   : > { %743 = vadd.xlane.f32.xlu2 %v742_v9  ;;  %v745_v9 = vsel %vm9108_vm0, %v653_v52, 0.0  ;;  %v757_v52 = vsel %vm9108_vm0, %v657_v47, 0.0  ;;  %v769_v47 = vsel %vm9108_vm0, %v661_v15, 0.0 }
  0xed   : > { %737 = vadd.xlane.f32.xlu0 %v736_v1 }
  0xee   : > { %v5198_v16 = vpop.xlane.xlu1 %550 }
  0xef   : > { %v5196_v11 = vpop.xlane.xlu2 %553  ;;  %9157 = vst [vmem:[#allocation53_spill] sm:$0xff] %v5198_v16 }
  0xf0   : > { %9156 = vst [vmem:[#allocation52_spill] sm:$0xff] %v5196_v11  ;;  %v5200_v38 = vpop.xlane.xlu0 %547 }
  0xf1   : > { %9158 = vst [vmem:[#allocation54_spill] sm:$0xff] %v5200_v38 }
  0xf3   : > { %749 = vadd.xlane.f32.xlu1 %v748_v40 }
  0xf4   : > { %752 = vadd.xlane.f32.xlu2 %v751_v23  ;;  %v754_v23 = vsel %vm9108_vm0, %v656_v3, 0.0  ;;  %v766_v3 = vsel %vm9108_vm0, %v660_v59, 0.0  ;;  %v778_v59 = vsel %vm9108_vm0, %v664_v31, 0.0 }
  0xf5   : > { %746 = vadd.xlane.f32.xlu0 %v745_v9 }
  0xf6   : > { %v5213_v1 = vpop.xlane.xlu1 %559 }
  0xf7   : > { %v5211_v28 = vpop.xlane.xlu2 %562  ;;  %9160 = vst [vmem:[#allocation56_spill] sm:$0xff] %v5213_v1 }
  0xf8   : > { %9159 = vst [vmem:[#allocation55_spill] sm:$0xff] %v5211_v28  ;;  %v5215_v50 = vpop.xlane.xlu0 %556 }
  0xf9   : > { %9161 = vst [vmem:[#allocation57_spill] sm:$0xff] %v5215_v50 }
  0xfb   : > { %758 = vadd.xlane.f32.xlu1 %v757_v52 }
  0xfc   : > { %761 = vadd.xlane.f32.xlu2 %v760_v35  ;;  %v763_v35 = vsel %vm9108_vm0, %v659_v18, 0.0  ;;  %v775_v18 = vsel %vm9108_vm0, %v663_v12, 0.0  ;;  %v787_v12 = vsel %vm9108_vm0, %v667_v46, 0.0 }
  0xfd   : > { %755 = vadd.xlane.f32.xlu0 %v754_v23 }
  0xfe   : > { %v5228_v9 = vpop.xlane.xlu1 %568 }
  0xff   : > { %v5226_v40 = vpop.xlane.xlu2 %571  ;;  %9163 = vst [vmem:[#allocation59_spill] sm:$0xff] %v5228_v9 }
 0x100   : > { %9162 = vst [vmem:[#allocation58_spill] sm:$0xff] %v5226_v40  ;;  %v5230_v62 = vpop.xlane.xlu0 %565 }
 0x101   : > { %9164 = vst [vmem:[#allocation60_spill] sm:$0xff] %v5230_v62 }
 0x103   : > { %767 = vadd.xlane.f32.xlu1 %v766_v3 }
 0x104   : > { %770 = vadd.xlane.f32.xlu2 %v769_v47  ;;  %v772_v47 = vsel %vm9108_vm0, %v662_v33, 0.0  ;;  %v784_v33 = vsel %vm9108_vm0, %v666_v27, 0.0  ;;  %v796_v27 = vsel %vm9108_vm0, %v670_v63, 0.0 }
 0x105   : > { %764 = vadd.xlane.f32.xlu0 %v763_v35 }
 0x106   : > { %v5243_v23 = vpop.xlane.xlu1 %577 }
 0x107   : > { %v5241_v52 = vpop.xlane.xlu2 %580  ;;  %9166 = vst [vmem:[#allocation62_spill] sm:$0xff] %v5243_v23 }
 0x108   : > { %9165 = vst [vmem:[#allocation61_spill] sm:$0xff] %v5241_v52  ;;  %v5245_v15 = vpop.xlane.xlu0 %574 }
 0x109   : > { %9167 = vst [vmem:[#allocation63_spill] sm:$0xff] %v5245_v15 }
 0x10b   : > { %776 = vadd.xlane.f32.xlu1 %v775_v18 }
 0x10c   : > { %779 = vadd.xlane.f32.xlu2 %v778_v59  ;;  %v781_v59 = vsel %vm9108_vm0, %v665_v49, 0.0  ;;  %v793_v49 = vsel %vm9108_vm0, %v669_v43, 0.0  ;;  %v805_v43 = vsel %vm9108_vm0, %v673_v21, 0.0 }
 0x10d   : > { %773 = vadd.xlane.f32.xlu0 %v772_v47 }
 0x10e   : > { %v5258_v35 = vpop.xlane.xlu1 %586 }
 0x10f   : > { %v5256_v3 = vpop.xlane.xlu2 %589  ;;  %9169 = vst [vmem:[#allocation65_spill] sm:$0xff] %v5258_v35 }
 0x110   : > { %9168 = vst [vmem:[#allocation64_spill] sm:$0xff] %v5256_v3  ;;  %v5260_v31 = vpop.xlane.xlu0 %583 }
 0x111   : > { %9170 = vst [vmem:[#allocation66_spill] sm:$0xff] %v5260_v31 }
 0x113   : > { %785 = vadd.xlane.f32.xlu1 %v784_v33 }
 0x114   : > { %788 = vadd.xlane.f32.xlu2 %v787_v12  ;;  %v790_v12 = vsel %vm9108_vm0, %v668_v5, 0.0  ;;  %v802_v5 = vsel %vm9108_vm0, %v672_v58, 0.0  ;;  %v814_v58 = vsel %vm9108_vm0, %v676_v42, 0.0 }
 0x115   : > { %782 = vadd.xlane.f32.xlu0 %v781_v59 }
 0x116   : > { %v5273_v47 = vpop.xlane.xlu1 %595 }
 0x117   : > { %v5271_v18 = vpop.xlane.xlu2 %598  ;;  %9172 = vst [vmem:[#allocation68_spill] sm:$0xff] %v5273_v47  ;;  %v4520_v47 = vld [vmem:[%s4696_s8 + $0x18] sm:$0xff] }
 0x118   : > { %9171 = vst [vmem:[#allocation67_spill] sm:$0xff] %v5271_v18  ;;  %v5275_v46 = vpop.xlane.xlu0 %592  ;;  %v1666_v18 = vmul.f32 %v4520_v47, %v4520_v47 }
 0x119   : > { %9173 = vst [vmem:[#allocation69_spill] sm:$0xff] %v5275_v46 }
 0x11a   : > { %v1736_v26 = vsel %vm9108_vm0, %v1666_v18, 0.0 }
 0x11b   : > { %794 = vadd.xlane.f32.xlu1 %v793_v49 }
 0x11c   : > { %797 = vadd.xlane.f32.xlu2 %v796_v27  ;;  %v799_v27 = vsel %vm9108_vm0, %v671_v24, 0.0  ;;  %v811_v24 = vsel %vm9108_vm0, %v675_v17, 0.0  ;;  %v823_v17 = vsel %vm9108_vm0, %v679_v4, 0.0  ;;  %v832_v4 = vsel %vm9108_vm0, %v682_v30, 0.0 }
 0x11d   : > { %791 = vadd.xlane.f32.xlu0 %v790_v12  ;;  %v838_v30 = vsel %vm9108_vm0, %v684_v22, 0.0  ;;  %v850_v22 = vsel %vm9108_vm0, %v688_v39, 0.0 }
 0x11e   : > { %v5288_v59 = vpop.xlane.xlu1 %604 }
 0x11f   : > { %v5286_v33 = vpop.xlane.xlu2 %607  ;;  %9175 = vst [vmem:[#allocation71_spill] sm:$0xff] %v5288_v59 }
 0x120   : > { %9174 = vst [vmem:[#allocation70_spill] sm:$0xff] %v5286_v33  ;;  %v5290_v63 = vpop.xlane.xlu0 %601 }
 0x121   : > { %9176 = vst [vmem:[#allocation72_spill] sm:$0xff] %v5290_v63 }
 0x123   : > { %803 = vadd.xlane.f32.xlu1 %v802_v5 }
 0x124   : > { %806 = vadd.xlane.f32.xlu2 %v805_v43  ;;  %v808_v43 = vsel %vm9108_vm0, %v674_v45, 0.0  ;;  %v820_v45 = vsel %vm9108_vm0, %v678_v37, 0.0  ;;  %v829_v37 = vsel %vm9108_vm0, %v681_v57, 0.0 }
 0x125   : > { %800 = vadd.xlane.f32.xlu0 %v799_v27 }
 0x126   : > { %v5303_v12 = vpop.xlane.xlu1 %613 }
 0x127   : > { %v5301_v49 = vpop.xlane.xlu2 %616  ;;  %9178 = vst [vmem:[#allocation74_spill] sm:$0xff] %v5303_v12 }
 0x128   : > { %9177 = vst [vmem:[#allocation73_spill] sm:$0xff] %v5301_v49  ;;  %v5305_v21 = vpop.xlane.xlu0 %610 }
 0x129   : > { %9179 = vst [vmem:[#allocation75_spill] sm:$0xff] %v5305_v21 }
 0x12b   : > { %812 = vadd.xlane.f32.xlu1 %v811_v24 }
 0x12c   : > { %815 = vadd.xlane.f32.xlu2 %v814_v58  ;;  %v817_v58 = vsel %vm9108_vm0, %v677_v7, 0.0 }
 0x12d   : > { %809 = vadd.xlane.f32.xlu0 %v808_v43 }
 0x12e   : > { %v5318_v27 = vpop.xlane.xlu1 %622 }
 0x12f   : > { %v5316_v5 = vpop.xlane.xlu2 %625  ;;  %9181 = vst [vmem:[#allocation77_spill] sm:$0xff] %v5318_v27 }
 0x130   : > { %9180 = vst [vmem:[#allocation76_spill] sm:$0xff] %v5316_v5  ;;  %v5320_v42 = vpop.xlane.xlu0 %619 }
 0x131   : > { %9182 = vst [vmem:[#allocation78_spill] sm:$0xff] %v5320_v42 }
 0x133   : > { %821 = vadd.xlane.f32.xlu1 %v820_v45 }
 0x134   : > { %824 = vadd.xlane.f32.xlu2 %v823_v17  ;;  %v826_v17 = vsel %vm9108_vm0, %v680_v34, 0.0  ;;  %v835_v34 = vsel %vm9108_vm0, %v683_v61, 0.0 }
 0x135   : > { %818 = vadd.xlane.f32.xlu0 %v817_v58  ;;  %v841_v58 = vsel %vm9108_vm0, %v685_v56, 0.0 }
 0x136   : > { %v5333_v43 = vpop.xlane.xlu1 %631 }
 0x137   : > { %v5331_v24 = vpop.xlane.xlu2 %634  ;;  %9184 = vst [vmem:[#allocation80_spill] sm:$0xff] %v5333_v43 }
 0x138   : > { %9183 = vst [vmem:[#allocation79_spill] sm:$0xff] %v5331_v24  ;;  %v5337_v7 = vpop.xlane.xlu0 %628  ;;  %v9192_v24 = vld [vmem:[#allocation10_spill] sm:$0xff] }
 0x139   : > { %9185 = vst [vmem:[#allocation81_spill] sm:$0xff] %v5337_v7  ;;  %v689_v39 = vmul.f32 %v9192_v24, %v9192_v24  ;;  %v9195_v24 = vld [vmem:[#allocation16_spill] sm:$0xff] }
 0x13b   : > { %830 = vadd.xlane.f32.xlu1 %v829_v37  ;;  %v9188_v37 = vld [vmem:[#allocation12_spill] sm:$0xff] }
 0x13c   : > { %833 = vadd.xlane.f32.xlu2 %v832_v4  ;;  %v687_v53 = vmul.f32 %v9188_v37, %v9188_v37  ;;  %v690_v37 = vmul.f32 %v9191_v32, %v9191_v32 }
 0x13d   : > { %827 = vadd.xlane.f32.xlu0 %v826_v17  ;;  %v9189_v17 = vld [vmem:[#allocation6_spill] sm:$0xff] }
 0x13e   : > { %v5350_v57 = vpop.xlane.xlu1 %704  ;;  %v686_v56 = vmul.f32 %v9189_v17, %v9189_v17  ;;  %v847_v61 = vsel %vm9108_vm0, %v687_v53, 0.0 }
 0x13f   : > { %v5346_v45 = vpop.xlane.xlu2 %707  ;;  %vm902_vm3 = vcmp.eq.f32.partialorder %v5350_v57, inf  ;;  %vm904_vm4 = vcmp.eq.f32.partialorder %v5350_v57, 0.0 }
 0x140   : > { %v5353_v4 = vpop.xlane.xlu0 %637  ;;  %v844_v35 = vsel %vm9108_vm0, %v686_v56, 0.0  ;;  %v856_v56 = vsel %vm9108_vm0, %v690_v37, 0.0  ;;  %4135 = vrsqrt.f32 %v5346_v45  ;;  %vm914_vm1 = vcmp.eq.f32.partialorder %v5346_v45, inf }
 0x141   : > { %9186 = vst [vmem:[#allocation82_spill] sm:$0xff] %v5353_v4  ;;  %4137 = vrsqrt.f32 %v5350_v57  ;;  %vm916_vm2 = vcmp.eq.f32.partialorder %v5346_v45, 0.0 }
 0x143   : > { %839 = vadd.xlane.f32.xlu1 %v838_v30  ;;  %v9190_v30 = vld [vmem:[#allocation17_spill] sm:$0xff] }
 0x144   : > { %842 = vadd.xlane.f32.xlu2 %v841_v58 }
 0x145   : > { %836 = vadd.xlane.f32.xlu0 %v835_v34  ;;  %v691_v34 = vmul.f32 %v9190_v30, %v9190_v30  ;;  %v9194_v30 = vld [vmem:[#allocation24_spill] sm:$0xff] }
 0x146   : > { %v5366_v58 = vpop.xlane.xlu1 %713  ;;  %v693_v32 = vmul.f32 %v9194_v30, %v9194_v30  ;;  %v9197_v30 = vld [vmem:[#allocation30_spill] sm:$0xff] }
 0x147   : > { %v5361_v3 = vpop.xlane.xlu2 %716  ;;  %v859_v53 = vsel %vm9108_vm0, %v691_v34, 0.0  ;;  %v692_v34 = vmul.f32 %v9195_v24, %v9195_v24  ;;  %v696_v5 = vmul.f32 %v9197_v30, %v9197_v30  ;;  %v9198_v24 = vld [vmem:[#allocation22_spill] sm:$0xff]  ;;  %vm938_vm7 = vcmp.eq.f32.partialorder %v5366_v58, inf }
 0x148   : > { %v5372_v17 = vpop.xlane.xlu0 %710  ;;  %v695_v27 = vmul.f32 %v9198_v24, %v9198_v24  ;;  %4139 = vrsqrt.f32 %v5361_v3  ;;  %vm950_vm5 = vcmp.eq.f32.partialorder %v5361_v3, inf  ;;  %vm952_vm6 = vcmp.eq.f32.partialorder %v5361_v3, 0.0 }
 0x149   : > { %4141 = vrsqrt.f32 %v5366_v58  ;;  %vm926_vm8 = vcmp.eq.f32.partialorder %v5372_v17, inf  ;;  %vm940_vm9 = vcmp.eq.f32.partialorder %v5366_v58, 0.0  ;;  %vm928_vm10 = vcmp.eq.f32.partialorder %v5372_v17, 0.0 }
 0x14a   : > { %4143 = vrsqrt.f32 %v5372_v17 }
 0x14b   : > { %848 = vadd.xlane.f32.xlu1 %v847_v61 }
 0x14c   : > { %851 = vadd.xlane.f32.xlu2 %v850_v22  ;;  %v853_v22 = vsel %vm9108_vm0, %v689_v39, 0.0  ;;  %v865_v39 = vsel %vm9108_vm0, %v693_v32, 0.0  ;;  %v874_v32 = vsel %vm9108_vm0, %v696_v5, 0.0  ;;  %v4136_v5 = vpop.eup %4135 }
 0x14d   : > { %845 = vadd.xlane.f32.xlu0 %v844_v35  ;;  %v9193_v35 = vld [vmem:[#allocation23_spill] sm:$0xff]  ;;  %v4138_v30 = vpop.eup %4137  ;;  %v908_v24 = vmul.f32 %v4136_v5, %v5346_v45 }
 0x14e   : > { %v694_v61 = vmul.f32 %v9193_v35, %v9193_v35  ;;  %v5385_v7 = vpop.xlane.xlu1 %722  ;;  %v896_v15 = vmul.f32 %v4138_v30, %v5350_v57 }
 0x14f   : > { %v5378_v4 = vpop.xlane.xlu2 %725  ;;  %v909_v42 = vmul.f32 %v4136_v5, %v908_v24  ;;  %vm974_vm12 = vcmp.eq.f32.partialorder %v5385_v7, inf  ;;  %vm976_vm15 = vcmp.eq.f32.partialorder %v5385_v7, 0.0 }
 0x150   : > { %v5389_v43 = vpop.xlane.xlu0 %719  ;;  %v868_v37 = vsel %vm9108_vm0, %v694_v61, 0.0  ;;  %4145 = vrsqrt.f32 %v5378_v4  ;;  %vm986_vm11 = vcmp.eq.f32.partialorder %v5378_v4, inf  ;;  %vm988_vm14 = vcmp.eq.f32.partialorder %v5378_v4, 0.0 }
 0x151   : > { %v910_v9 = vmul.f32 0.5, %v909_v42  ;;  %4147 = vrsqrt.f32 %v5385_v7  ;;  %v701_v42 = vmul.f32 %v5088_v13, %v5088_v13  ;;  %vm962_vm13 = vcmp.eq.f32.partialorder %v5389_v43, inf }
 0x152   : > { %4149 = vrsqrt.f32 %v5389_v43 }
 0x153   : > { %857 = vadd.xlane.f32.xlu1 %v856_v56  ;;  %v889_v33 = vsel %vm9108_vm0, %v701_v42, 0.0  ;;  %v911_v59 = vsub.f32 1.5, %v910_v9 }
 0x154   : > { %860 = vadd.xlane.f32.xlu2 %v859_v53  ;;  %v862_v53 = vsel %vm9108_vm0, %v692_v34, 0.0 }
 0x155   : > { %854 = vadd.xlane.f32.xlu0 %v853_v22  ;;  %v9196_v22 = vld [vmem:[#allocation29_spill] sm:$0xff] }
 0x156   : > { %v697_v35 = vmul.f32 %v9196_v22, %v9196_v22  ;;  %v5402_v52 = vpop.xlane.xlu1 %731 }
 0x157   : > { %v5394_v56 = vpop.xlane.xlu2 %734 }
 0x158   : > { %v877_v61 = vsel %vm9108_vm0, %v697_v35, 0.0  ;;  %v5406_v34 = vpop.xlane.xlu0 %728  ;;  %4151 = vrsqrt.f32 %v5394_v56 }
 0x159   : > { %4153 = vrsqrt.f32 %v5402_v52 }
 0x15a   : > { %4155 = vrsqrt.f32 %v5406_v34 }
 0x15b   : > { %866 = vadd.xlane.f32.xlu1 %v865_v39 }
 0x15c   : > { %869 = vadd.xlane.f32.xlu2 %v868_v37  ;;  %v871_v37 = vsel %vm9108_vm0, %v695_v27, 0.0  ;;  %v700_v27 = vmul.f32 %v5093_v6, %v5093_v6 }
 0x15d   : > { %863 = vadd.xlane.f32.xlu0 %v862_v53 }
 0x15e   : > { %v5411_v53 = vpop.xlane.xlu1 %740  ;;  %v886_v40 = vsel %vm9108_vm0, %v700_v27, 0.0 }
 0x15f   : > { %v5409_v39 = vpop.xlane.xlu2 %743 }
 0x160   : > { %v5415_v22 = vpop.xlane.xlu0 %737  ;;  %4157 = vrsqrt.f32 %v5409_v39  ;;  %v9212_v44 = vand.u32 2147483648, %v5409_v39 }
 0x161   : > { %4159 = vrsqrt.f32 %v5411_v53 }
 0x162   : > { %4161 = vrsqrt.f32 %v5415_v22 }
 0x163   : > { %875 = vadd.xlane.f32.xlu1 %v874_v32  ;;  %v699_v32 = vmul.f32 %v5097_v55, %v5097_v55  ;;  %v897_v55 = vmul.f32 %v4138_v30, %v896_v15 }
 0x164   : > { %878 = vadd.xlane.f32.xlu2 %v877_v61 }
 0x165   : > { %872 = vadd.xlane.f32.xlu0 %v871_v37  ;;  %v9199_v37 = vld [vmem:[#allocation28_spill] sm:$0xff]  ;;  %v883_v6 = vsel %vm9108_vm0, %v699_v32, 0.0  ;;  %v898_v27 = vmul.f32 0.5, %v897_v55 }
 0x166   : > { %v5423_v61 = vpop.xlane.xlu1 %749  ;;  %v698_v31 = vmul.f32 %v9199_v37, %v9199_v37  ;;  %v5437_v37 = vpop.eup %4139 }
 0x167   : > { %v5417_v35 = vpop.xlane.xlu2 %752  ;;  %v944_v32 = vmul.f32 %v5437_v37, %v5361_v3  ;;  %v5445_v24 = vpop.eup %4141  ;;  %v899_v28 = vsub.f32 1.5, %v898_v27  ;;  %v912_v27 = vmul.f32 %v4136_v5, %v911_v59 }
 0x168   : > { %v5430_v23 = vpop.xlane.xlu0 %746  ;;  %v880_v49 = vsel %vm9108_vm0, %v698_v31, 0.0  ;;  %v932_v13 = vmul.f32 %v5445_v24, %v5366_v58  ;;  %4163 = vrsqrt.f32 %v5417_v35 }
 0x169   : > { %v913_v46 = vmul.f32 %v912_v27, %v5346_v45  ;;  %4165 = vrsqrt.f32 %v5423_v61 }
 0x16a   : > { %4167 = vrsqrt.f32 %v5430_v23 }
 0x16b   : > { %884 = vadd.xlane.f32.xlu1 %v883_v6  ;;  %v5454_v6 = vpop.eup %4143 }
 0x16c   : > { %887 = vadd.xlane.f32.xlu2 %v886_v40  ;;  %v4519_v40 = vld [vmem:[%s4696_s8] sm:$0xff] }
 0x16d   : > { %881 = vadd.xlane.f32.xlu0 %v880_v49  ;;  %v1663_v31 = vmul.f32 %v4519_v40, %v4519_v40  ;;  %v702_v49 = vmul.f32 %v5113_v36, %v5113_v36  ;;  %v945_v36 = vmul.f32 %v5437_v37, %v944_v32  ;;  %v900_v32 = vmul.f32 %v4138_v30, %v899_v28  ;;  %v4521_v30 = vld [vmem:[%s4696_s8 + $0x10] sm:$0xff] }
 0x16e   : > { %v5448_v15 = vpop.xlane.xlu1 %758 }
 0x16f   : > { %v5439_v21 = vpop.xlane.xlu2 %761  ;;  %v1727_v55 = vsel %vm9108_vm0, %v1663_v31, 0.0  ;;  %v892_v40 = vsel %vm9108_vm0, %v702_v49, 0.0  ;;  %v920_v31 = vmul.f32 %v5454_v6, %v5372_v17  ;;  %v901_v63 = vmul.f32 %v900_v32, %v5350_v57 }
 0x170   : > { %v5458_v12 = vpop.xlane.xlu0 %755  ;;  %4169 = vrsqrt.f32 %v5439_v21 }
 0x171   : > { %v921_v62 = vmul.f32 %v5454_v6, %v920_v31  ;;  %4171 = vrsqrt.f32 %v5448_v15 }
 0x172   : > { %4173 = vrsqrt.f32 %v5458_v12 }
 0x173   : > { %893 = vadd.xlane.f32.xlu1 %v892_v40  ;;  %v946_v40 = vmul.f32 0.5, %v945_v36  ;;  %v1665_v36 = vmul.f32 %v4521_v30, %v4521_v30  ;;  %v922_v11 = vmul.f32 0.5, %v921_v62  ;;  %v917_v30 = vand.u32 2147483648, %v5346_v45 }
 0x174   : > { %1728 = vadd.xlane.f32.xlu2 %v1727_v55  ;;  %v5468_v55 = vpop.eup %4145  ;;  %v905_v62 = vand.u32 2147483648, %v5350_v57 }
 0x175   : > { %890 = vadd.xlane.f32.xlu0 %v889_v33  ;;  %v5470_v49 = vpop.eup %4147  ;;  %v933_v33 = vmul.f32 %v5445_v24, %v932_v13  ;;  %v980_v50 = vmul.f32 %v5468_v55, %v5378_v4  ;;  %v4522_v13 = vld [vmem:[%s4696_s8 + $0x8] sm:$0xff]  ;;  %v947_v47 = vsub.f32 1.5, %v946_v40  ;;  %v1733_v51 = vsel %vm9108_vm0, %v1665_v36, 0.0 }
 0x176   : > { %v5474_v9 = vpop.eup %4149  ;;  %v968_v1 = vmul.f32 %v5470_v49, %v5385_v7  ;;  %v5490_v5 = vpop.xlane.xlu1 %767  ;;  %v1664_v31 = vmul.f32 %v4522_v13, %v4522_v13  ;;  %v903_v36 = vsel %vm902_vm3, %v5350_v57, %v901_v63  ;;  %vm1024_vm3 = vcmp.eq.f32.partialorder %v5394_v56, 0.0 }
 0x177   : > { %v5472_v42 = vpop.xlane.xlu2 %770  ;;  %v5485_v59 = vpop.eup %4151  ;;  %v956_v28 = vmul.f32 %v5474_v9, %v5389_v43  ;;  %v934_v16 = vmul.f32 0.5, %v933_v33  ;;  %v981_v13 = vmul.f32 %v5468_v55, %v980_v50 }
 0x178   : > { %v5497_v60 = vpop.xlane.xlu0 %764  ;;  %v1730_v38 = vsel %vm9108_vm0, %v1664_v31, 0.0  ;;  %v969_v27 = vmul.f32 %v5470_v49, %v968_v1  ;;  %v1016_v32 = vmul.f32 %v5485_v59, %v5394_v56  ;;  %v5507_v40 = vpop.eup %4153  ;;  %v948_v1 = vmul.f32 %v5437_v37, %v947_v47  ;;  %v4524_v47 = vld [vmem:[%s4696_s8 + $0x28] sm:$0xff] }
 0x179   : > { %v957_v18 = vmul.f32 %v5474_v9, %v956_v28  ;;  %v5513_v33 = vpop.eup %4155  ;;  %v935_v50 = vsub.f32 1.5, %v934_v16  ;;  %v923_v28 = vsub.f32 1.5, %v922_v11  ;;  %v1004_v16 = vmul.f32 %v5507_v40, %v5402_v52 }
 0x17a   : > { %v970_v20 = vmul.f32 0.5, %v969_v27  ;;  %v1017_v37 = vmul.f32 %v5485_v59, %v1016_v32  ;;  %v949_v63 = vmul.f32 %v948_v1, %v5361_v3  ;;  %v5543_v32 = vsel %vm904_vm4, %v905_v62, %v903_v36 }
 0x17b   : > { %1734 = vadd.xlane.f32.xlu1 %v1733_v51  ;;  %v958_v25 = vmul.f32 0.5, %v957_v18  ;;  %v936_v11 = vmul.f32 %v5445_v24, %v935_v50  ;;  %v924_v18 = vmul.f32 %v5454_v6, %v923_v28  ;;  %v1005_v57 = vmul.f32 %v5507_v40, %v1004_v16  ;;  %v4523_v6 = vld [vmem:[%s4696_s8 + $0x30] sm:$0xff] }
 0x17c   : > { %1737 = vadd.xlane.f32.xlu2 %v1736_v26  ;;  %v915_v26 = vsel %vm914_vm1, %v5346_v45, %v913_v46  ;;  %v992_v46 = vmul.f32 %v5513_v33, %v5406_v34  ;;  %v5551_v45 = vpop.eup %4157  ;;  %v971_v50 = vsub.f32 1.5, %v970_v20  ;;  %v1669_v28 = vmul.f32 %v4523_v6, %v4523_v6 }
 0x17d   : > { %1731 = vadd.xlane.f32.xlu0 %v1730_v38  ;;  %v982_v38 = vmul.f32 0.5, %v981_v13  ;;  %v5539_v27 = vsel %vm916_vm2, %v917_v30, %v915_v26  ;;  %v1018_v26 = vmul.f32 0.5, %v1017_v37  ;;  %v959_v62 = vsub.f32 1.5, %v958_v25  ;;  %v5565_v16 = vpop.eup %4159 }
 0x17e   : > { %v5549_v1 = vpop.xlane.xlu1 %776  ;;  %v993_v36 = vmul.f32 %v5513_v33, %v992_v46  ;;  %v1668_v31 = vmul.f32 %v4524_v47, %v4524_v47  ;;  %v951_v24 = vsel %vm950_vm5, %v5361_v3, %v949_v63  ;;  %v937_v8 = vmul.f32 %v936_v11, %v5366_v58  ;;  %v5572_v6 = vpop.eup %4161 }
 0x17f   : > { %v5523_v51 = vpop.xlane.xlu2 %779  ;;  %v983_v30 = vsub.f32 1.5, %v982_v38  ;;  %v4525_v38 = vld [vmem:[%s4696_s8 + $0x20] sm:$0xff]  ;;  %v925_v25 = vmul.f32 %v924_v18, %v5372_v17  ;;  %v1052_v46 = vmul.f32 %v5551_v45, %v5409_v39  ;;  %v1745_v47 = vsel %vm9108_vm0, %v1669_v28, 0.0 }
 0x180   : > { %v5555_v13 = vpop.xlane.xlu0 %773  ;;  %v1667_v37 = vmul.f32 %v4525_v38, %v4525_v38  ;;  %v972_v11 = vmul.f32 %v5470_v49, %v971_v50  ;;  %v1742_v18 = vsel %vm9108_vm0, %v1668_v31, 0.0  ;;  %v960_v28 = vmul.f32 %v5474_v9, %v959_v62 }
 0x181   : > { %v984_v63 = vmul.f32 %v5468_v55, %v983_v30  ;;  %v1019_v20 = vsub.f32 1.5, %v1018_v26  ;;  %v1006_v54 = vmul.f32 0.5, %v1005_v57  ;;  %v5583_v0 = vmul.f32 0.5, %v993_v36 }
 0x182   : > { %v1739_v38 = vsel %vm9108_vm0, %v1667_v37, 0.0  ;;  %v1040_v30 = vmul.f32 %v5565_v16, %v5411_v53  ;;  %v9200_v50 = vand.u32 2147483648, %v5361_v3  ;;  %v1053_v26 = vmul.f32 %v5551_v45, %v1052_v46  ;;  %v5612_v37 = vpop.eup %4163 }
 0x183   : > { %1743 = vadd.xlane.f32.xlu1 %v1742_v18  ;;  %v1028_v57 = vmul.f32 %v5572_v6, %v5415_v22  ;;  %v939_v62 = vsel %vm938_vm7, %v5366_v58, %v937_v8  ;;  %v927_v36 = vsel %vm926_vm8, %v5372_v17, %v925_v25  ;;  %v985_v3 = vmul.f32 %v984_v63, %v5378_v4  ;;  %v4526_v18 = vld [vmem:[%s4696_s8 + $0x48] sm:$0xff]  ;;  %v5635_v41 = vpop.eup %4165 }
 0x184   : > { %1746 = vadd.xlane.f32.xlu2 %v1745_v47  ;;  %v5596_v9 = vsel %vm952_vm6, %v9200_v50, %v951_v24  ;;  %v973_v24 = vmul.f32 %v972_v11, %v5385_v7  ;;  %v961_v46 = vmul.f32 %v960_v28, %v5389_v43  ;;  %vm964_vm1 = vcmp.eq.f32.partialorder %v5389_v43, 0.0  ;;  %v4527_v50 = vld [vmem:[%s4696_s8 + $0x40] sm:$0xff] }
 0x185   : > { %1740 = vadd.xlane.f32.xlu0 %v1739_v38  ;;  %v1020_v8 = vmul.f32 %v5485_v59, %v1019_v20  ;;  %v1007_v47 = vsub.f32 1.5, %v1006_v54  ;;  %v995_v25 = vsub.f32 1.5, %v5583_v0  ;;  %vm1022_vm2 = vcmp.eq.f32.partialorder %v5394_v56, inf  ;;  %v4528_v0 = vld [vmem:[%s4696_s8 + $0x38] sm:$0xff] }
 0x186   : > { %v5618_v63 = vpop.xlane.xlu1 %785  ;;  %v1041_v11 = vmul.f32 %v5565_v16, %v1040_v30  ;;  %v1672_v38 = vmul.f32 %v4526_v18, %v4526_v18  ;;  %v1671_v28 = vmul.f32 %v4527_v50, %v4527_v50  ;;  %v1054_v31 = vmul.f32 0.5, %v1053_v26 }
 0x187   : > { %v5585_v55 = vpop.xlane.xlu2 %788  ;;  %v1029_v49 = vmul.f32 %v5572_v6, %v1028_v57  ;;  %v1670_v59 = vmul.f32 %v4528_v0, %v4528_v0  ;;  %v1088_v20 = vmul.f32 %v5612_v37, %v5417_v35  ;;  %v9201_v26 = vand.u32 2147483648, %v5366_v58 }
 0x188   : > { %v5627_v54 = vpop.xlane.xlu0 %782  ;;  %v1754_v30 = vsel %vm9108_vm0, %v1672_v38, 0.0  ;;  %v1751_v18 = vsel %vm9108_vm0, %v1671_v28, 0.0  ;;  %v9202_v50 = vand.u32 2147483648, %v5372_v17  ;;  %v987_v28 = vsel %vm986_vm11, %v5378_v4, %v985_v3 }
 0x189   : > { %v5641_v57 = vsel %vm940_vm9, %v9201_v26, %v939_v62  ;;  %v1748_v38 = vsel %vm9108_vm0, %v1670_v59, 0.0  ;;  %v975_v58 = vsel %vm974_vm12, %v5385_v7, %v973_v24  ;;  %v1021_v62 = vmul.f32 %v1020_v8, %v5394_v56  ;;  %v5667_v24 = vpop.eup %4167 }
 0x18a   : > { %v5647_v0 = vsel %vm928_vm10, %v9202_v50, %v927_v36  ;;  %v1042_v17 = vmul.f32 0.5, %v1041_v11  ;;  %v963_v36 = vsel %vm962_vm13, %v5389_v43, %v961_v46  ;;  %v1008_v59 = vmul.f32 %v5507_v40, %v1007_v47  ;;  %v5674_v40 = vpop.eup %4169 }
 0x18b   : > { %1752 = vadd.xlane.f32.xlu1 %v1751_v18  ;;  %vm1010_vm4 = vcmp.eq.f32.partialorder %v5402_v52, inf  ;;  %vm998_vm5 = vcmp.eq.f32.partialorder %v5406_v34, inf  ;;  %v1055_v3 = vsub.f32 1.5, %v1054_v31  ;;  %v996_v8 = vmul.f32 %v5513_v33, %v995_v25 }
 0x18c   : > { %1755 = vadd.xlane.f32.xlu2 %v1754_v30  ;;  %v1030_v30 = vmul.f32 0.5, %v1029_v49  ;;  %v1089_v26 = vmul.f32 %v5612_v37, %v1088_v20  ;;  %v1076_v46 = vmul.f32 %v5635_v41, %v5423_v61  ;;  %v9203_v47 = vand.u32 2147483648, %v5378_v4  ;;  %v5690_v20 = vpop.eup %4171 }
 0x18d   : > { %1749 = vadd.xlane.f32.xlu0 %v1748_v38  ;;  %v9205_v31 = vand.u32 2147483648, %v5385_v7  ;;  %v9206_v50 = vand.u32 2147483648, %v5389_v43  ;;  %vm1012_vm6 = vcmp.eq.f32.partialorder %v5402_v52, 0.0  ;;  %vm1058_vm7 = vcmp.eq.f32.partialorder %v5409_v39, inf }
 0x18e   : > { %v5680_v49 = vsel %vm988_vm14, %v9203_v47, %v987_v28  ;;  %v1043_v7 = vsub.f32 1.5, %v1042_v17  ;;  %v1009_v47 = vmul.f32 %v1008_v59, %v5402_v52  ;;  %vm1000_vm8 = vcmp.eq.f32.partialorder %v5406_v34, 0.0  ;;  %v4529_v28 = vld [vmem:[%s4696_s8 + $0x60] sm:$0xff] }
 0x18f   : > { %v5665_v18 = vpop.xlane.xlu2 %797  ;;  %9204 = vst [vmem:[#allocation11_spill] sm:$0xff] %v5680_v49  ;;  %v5686_v33 = vsel %vm976_vm15, %v9205_v31, %v975_v58  ;;  %v5696_v4 = vsel %vm964_vm1, %v9206_v50, %v963_v36  ;;  %v1023_v58 = vsel %vm1022_vm2, %v5394_v56, %v1021_v62  ;;  %v1056_v43 = vmul.f32 %v5551_v45, %v1055_v3  ;;  %v5708_v31 = vpop.xlane.xlu1 %794 }
 0x190   : > { %v1031_v36 = vsub.f32 1.5, %v1030_v30  ;;  %v997_v50 = vmul.f32 %v996_v8, %v5406_v34  ;;  %v1090_v17 = vmul.f32 0.5, %v1089_v26  ;;  %v1077_v38 = vmul.f32 %v5635_v41, %v1076_v46  ;;  %v5722_v3 = vpop.xlane.xlu0 %791  ;;  %v4530_v26 = vld [vmem:[%s4696_s8 + $0x58] sm:$0xff] }
 0x191   : > { %v1675_v25 = vmul.f32 %v4529_v28, %v4529_v28  ;;  %vm1060_vm9 = vcmp.eq.f32.partialorder %v5409_v39, 0.0  ;;  %vm1046_vm10 = vcmp.eq.f32.partialorder %v5411_v53, inf  ;;  %v1064_v62 = vmul.f32 %v5667_v24, %v5430_v23  ;;  %v5729_v28 = vpop.eup %4173 }
 0x192   : > { %v1124_v45 = vmul.f32 %v5674_v40, %v5439_v21  ;;  %v1112_v59 = vmul.f32 %v5690_v20, %v5448_v15  ;;  %4175 = vrsqrt.f32 %v5472_v42  ;;  %v1044_v30 = vmul.f32 %v5565_v16, %v1043_v7  ;;  %v4531_v7 = vld [vmem:[%s4696_s8 + $0x50] sm:$0xff] }
 0x193   : > { %vm1034_vm11 = vcmp.eq.f32.partialorder %v5415_v22, inf  ;;  %4177 = vrsqrt.f32 %v5490_v5  ;;  %v1763_v8 = vsel %vm9108_vm0, %v1675_v25, 0.0  ;;  %v1674_v46 = vmul.f32 %v4530_v26, %v4530_v26 }
 0x194   : > { %v9207_v11 = vand.u32 2147483648, %v5394_v56  ;;  %v1057_v29 = vmul.f32 %v1056_v43, %v5409_v39  ;;  %v1032_v16 = vmul.f32 %v5572_v6, %v1031_v36  ;;  %1764 = vadd.xlane.f32.xlu2 %v1763_v8  ;;  %v1673_v48 = vmul.f32 %v4531_v7, %v4531_v7 }
 0x195   : > { %v1011_v25 = vsel %vm1010_vm4, %v5402_v52, %v1009_v47  ;;  %v999_v26 = vsel %vm998_vm5, %v5406_v34, %v997_v50  ;;  %v1091_v10 = vsub.f32 1.5, %v1090_v17  ;;  %v1760_v56 = vsel %vm9108_vm0, %v1674_v46, 0.0 }
 0x196   : > { %v5735_v2 = vsel %vm1024_vm3, %v9207_v11, %v1023_v58  ;;  %v1078_v11 = vmul.f32 0.5, %v1077_v38  ;;  %v1065_v58 = vmul.f32 %v5667_v24, %v1064_v62  ;;  %v1125_v43 = vmul.f32 %v5674_v40, %v1124_v45  ;;  %1761 = vadd.xlane.f32.xlu1 %v1760_v56 }
 0x197   : > { %9208 = vst [vmem:[#allocation12_spill] sm:$0xff] %v5735_v2  ;;  %v1113_v6 = vmul.f32 %v5690_v20, %v1112_v59  ;;  %v5750_v36 = vpop.xlane.xlu2 %806  ;;  %v1045_v8 = vmul.f32 %v1044_v30, %v5411_v53  ;;  %v1100_v47 = vmul.f32 %v5729_v28, %v5458_v12  ;;  %4179 = vrsqrt.f32 %v5497_v60 }
 0x198   : > { %v1757_v50 = vsel %vm9108_vm0, %v1673_v48, 0.0  ;;  %v5757_v17 = vpop.eup %4175  ;;  %v9209_v38 = vand.u32 2147483648, %v5402_v52  ;;  %v1059_v45 = vsel %vm1058_vm7, %v5409_v39, %v1057_v29  ;;  %vm1048_vm12 = vcmp.eq.f32.partialorder %v5411_v53, 0.0  ;;  %v5784_v48 = vpop.xlane.xlu1 %803 }
 0x199   : > { %v1033_v59 = vmul.f32 %v1032_v16, %v5415_v22  ;;  %vm1036_vm13 = vcmp.eq.f32.partialorder %v5415_v22, 0.0  ;;  %1758 = vadd.xlane.f32.xlu0 %v1757_v50  ;;  %v5772_v30 = vpop.eup %4177  ;;  %v9210_v46 = vand.u32 2147483648, %v5406_v34  ;;  %v1092_v7 = vmul.f32 %v5612_v37, %v1091_v10 }
 0x19a   : > { %v5763_v62 = vsel %vm1012_vm6, %v9209_v38, %v1011_v25  ;;  %vm1094_vm14 = vcmp.eq.f32.partialorder %v5417_v35, inf  ;;  %v1079_v25 = vsub.f32 1.5, %v1078_v11  ;;  %v1066_v56 = vmul.f32 0.5, %v1065_v58  ;;  %v5806_v11 = vpop.xlane.xlu0 %800 }
 0x19b   : > { %v5778_v52 = vsel %vm1000_vm8, %v9210_v46, %v999_v26  ;;  %v1126_v38 = vmul.f32 0.5, %v1125_v43  ;;  %v1114_v50 = vmul.f32 0.5, %v1113_v6  ;;  %v5790_v34 = vsel %vm1060_vm9, %v9212_v44, %v1059_v45  ;;  %v4532_v6 = vld [vmem:[%s4696_s8 + $0x78] sm:$0xff] }
 0x19c   : > { %9211 = vst [vmem:[#allocation6_spill] sm:$0xff] %v5778_v52  ;;  %v1047_v10 = vsel %vm1046_vm10, %v5411_v53, %v1045_v8  ;;  %v1101_v37 = vmul.f32 %v5729_v28, %v1100_v47  ;;  %4181 = vrsqrt.f32 %v5523_v51  ;;  %v1035_v26 = vsel %vm1034_vm11, %v5415_v22, %v1033_v59  ;;  %v4533_v47 = vld [vmem:[%s4696_s8 + $0x70] sm:$0xff]  ;;  %v4534_v59 = vld [vmem:[%s4696_s8 + $0x68] sm:$0xff] }
 0x19d   : > { %9213 = vst [vmem:[#allocation17_spill] sm:$0xff] %v5790_v34  ;;  %vm1096_vm15 = vcmp.eq.f32.partialorder %v5417_v35, 0.0  ;;  %v1160_v39 = vmul.f32 %v5757_v17, %v5472_v42  ;;  %v1148_v44 = vmul.f32 %v5772_v30, %v5490_v5  ;;  %4183 = vrsqrt.f32 %v5549_v1  ;;  %v5808_v58 = vpop.eup %4179 }
 0x19e   : > { %v1093_v43 = vmul.f32 %v1092_v7, %v5417_v35  ;;  %vm1082_vm1 = vcmp.eq.f32.partialorder %v5423_v61, inf  ;;  %v1678_v8 = vmul.f32 %v4532_v6, %v4532_v6  ;;  %v1677_v45 = vmul.f32 %v4533_v47, %v4533_v47 }
 0x19f   : > { %v1676_v46 = vmul.f32 %v4534_v59, %v4534_v59  ;;  %v1080_v16 = vmul.f32 %v5635_v41, %v1079_v25  ;;  %v1067_v29 = vsub.f32 1.5, %v1066_v56  ;;  %v1127_v19 = vsub.f32 1.5, %v1126_v38  ;;  %v5824_v41 = vpop.xlane.xlu2 %815 }
 0x1a0   : > { %v1115_v14 = vsub.f32 1.5, %v1114_v50  ;;  %v1102_v34 = vmul.f32 0.5, %v1101_v37  ;;  %v1772_v2 = vsel %vm9108_vm0, %v1678_v8, 0.0  ;;  %v1769_v49 = vsel %vm9108_vm0, %v1677_v45, 0.0 }
 0x1a1   : > { %v1766_v7 = vsel %vm9108_vm0, %v1676_v46, 0.0  ;;  %v1161_v52 = vmul.f32 %v5757_v17, %v1160_v39  ;;  %v1149_v6 = vmul.f32 %v5772_v30, %v1148_v44  ;;  %v1136_v47 = vmul.f32 %v5808_v58, %v5497_v60  ;;  %1773 = vadd.xlane.f32.xlu2 %v1772_v2  ;;  %1770 = vadd.xlane.f32.xlu1 %v1769_v49 }
 0x1a2   : > { %4185 = vrsqrt.f32 %v5555_v13  ;;  %v5826_v25 = vpop.eup %4181  ;;  %v9214_v56 = vand.u32 2147483648, %v5411_v53  ;;  %v9215_v50 = vand.u32 2147483648, %v5415_v22  ;;  %vm1084_vm2 = vcmp.eq.f32.partialorder %v5423_v61, 0.0  ;;  %1767 = vadd.xlane.f32.xlu0 %v1766_v7 }
 0x1a3   : > { %4187 = vrsqrt.f32 %v5585_v55  ;;  %v5843_v49 = vpop.eup %4183  ;;  %v1095_v53 = vsel %vm1094_vm14, %v5417_v35, %v1093_v43  ;;  %v1068_v39 = vmul.f32 %v5667_v24, %v1067_v29  ;;  %vm1070_vm3 = vcmp.eq.f32.partialorder %v5430_v23, inf }
 0x1a4   : > { %v5832_v38 = vsel %vm1048_vm12, %v9214_v56, %v1047_v10  ;;  %v5838_v37 = vsel %vm1036_vm13, %v9215_v50, %v1035_v26  ;;  %v1081_v10 = vmul.f32 %v1080_v16, %v5423_v61  ;;  %v1128_v22 = vmul.f32 %v5674_v40, %v1127_v19  ;;  %v5860_v40 = vpop.xlane.xlu1 %812 }
 0x1a5   : > { %vm1130_vm4 = vcmp.eq.f32.partialorder %v5439_v21, inf  ;;  %v1116_v26 = vmul.f32 %v5690_v20, %v1115_v14  ;;  %vm1118_vm5 = vcmp.eq.f32.partialorder %v5448_v15, inf  ;;  %v1103_v8 = vsub.f32 1.5, %v1102_v34 }
 0x1a6   : > { %v1162_v45 = vmul.f32 0.5, %v1161_v52  ;;  %v1150_v16 = vmul.f32 0.5, %v1149_v6  ;;  %v1137_v24 = vmul.f32 %v5808_v58, %v1136_v47  ;;  %v1196_v19 = vmul.f32 %v5826_v25, %v5523_v51  ;;  %v4535_v52 = vld [vmem:[%s4696_s8 + $0x90] sm:$0xff]  ;;  %v5882_v6 = vpop.xlane.xlu0 %809  ;;  %v4536_v47 = vld [vmem:[%s4696_s8 + $0x88] sm:$0xff] }
 0x1a7   : > { %v9216_v29 = vand.u32 2147483648, %v5417_v35  ;;  %vm1072_vm6 = vcmp.eq.f32.partialorder %v5430_v23, 0.0  ;;  %v1184_v20 = vmul.f32 %v5843_v49, %v5549_v1  ;;  %4189 = vrsqrt.f32 %v5618_v63 }
 0x1a8   : > { %v1681_v34 = vmul.f32 %v4535_v52, %v4535_v52  ;;  %v5873_v59 = vpop.eup %4185  ;;  %v1083_v46 = vsel %vm1082_vm1, %v5423_v61, %v1081_v10  ;;  %v1069_v35 = vmul.f32 %v1068_v39, %v5430_v23  ;;  %v1129_v7 = vmul.f32 %v1128_v22, %v5439_v21  ;;  %v4537_v52 = vld [vmem:[%s4696_s8 + $0x80] sm:$0xff] }
 0x1a9   : > { %v5866_v14 = vsel %vm1096_vm15, %v9216_v29, %v1095_v53  ;;  %vm1132_vm7 = vcmp.eq.f32.partialorder %v5439_v21, 0.0  ;;  %vm1120_vm8 = vcmp.eq.f32.partialorder %v5448_v15, 0.0  ;;  %v1680_v56 = vmul.f32 %v4536_v47, %v4536_v47  ;;  %v5885_v50 = vpop.eup %4187 }
 0x1aa   : > { %9217 = vst [vmem:[#allocation18_spill] sm:$0xff] %v5866_v14  ;;  %v1117_v53 = vmul.f32 %v1116_v26, %v5448_v15  ;;  %v1104_v29 = vmul.f32 %v5729_v28, %v1103_v8  ;;  %v1781_v10 = vsel %vm9108_vm0, %v1681_v34, 0.0  ;;  %v1679_v39 = vmul.f32 %v4537_v52, %v4537_v52 }
 0x1ab   : > { %vm1106_vm9 = vcmp.eq.f32.partialorder %v5458_v12, inf  ;;  %v1163_v22 = vsub.f32 1.5, %v1162_v45  ;;  %v1151_v43 = vsub.f32 1.5, %v1150_v16  ;;  %v1138_v44 = vmul.f32 0.5, %v1137_v24  ;;  %1782 = vadd.xlane.f32.xlu2 %v1781_v10  ;;  %v5908_v24 = vpop.xlane.xlu2 %824 }
 0x1ac   : > { %v1197_v2 = vmul.f32 %v5826_v25, %v1196_v19  ;;  %v1185_v47 = vmul.f32 %v5843_v49, %v1184_v20  ;;  %4191 = vrsqrt.f32 %v5627_v54  ;;  %v1778_v26 = vsel %vm9108_vm0, %v1680_v56, 0.0 }
 0x1ad   : > { %v1775_v28 = vsel %vm9108_vm0, %v1679_v39, 0.0  ;;  %v9218_v8 = vand.u32 2147483648, %v5423_v61  ;;  %v1172_v45 = vmul.f32 %v5873_v59, %v5555_v13  ;;  %v1232_v16 = vmul.f32 %v5885_v50, %v5585_v55  ;;  %1779 = vadd.xlane.f32.xlu1 %v1778_v26  ;;  %v5910_v19 = vpop.eup %4189 }
 0x1ae   : > { %4193 = vrsqrt.f32 %v5665_v18  ;;  %v1071_v20 = vsel %vm1070_vm3, %v5430_v23, %v1069_v35  ;;  %vm1108_vm10 = vcmp.eq.f32.partialorder %v5458_v12, 0.0  ;;  %vm1166_vm11 = vcmp.eq.f32.partialorder %v5472_v42, inf  ;;  %1776 = vadd.xlane.f32.xlu0 %v1775_v28 }
 0x1af   : > { %v5901_v34 = vsel %vm1084_vm2, %v9218_v8, %v1083_v46  ;;  %vm1154_vm12 = vcmp.eq.f32.partialorder %v5490_v5, inf  ;;  %v1131_v56 = vsel %vm1130_vm4, %v5439_v21, %v1129_v7  ;;  %v1119_v10 = vsel %vm1118_vm5, %v5448_v15, %v1117_v53  ;;  %v5939_v53 = vpop.xlane.xlu1 %821 }
 0x1b0   : > { %v1164_v35 = vmul.f32 %v5757_v17, %v1163_v22  ;;  %v1152_v52 = vmul.f32 %v5772_v30, %v1151_v43  ;;  %v1105_v39 = vmul.f32 %v1104_v29, %v5458_v12  ;;  %v1139_v26 = vsub.f32 1.5, %v1138_v44 }
 0x1b1   : > { %v1198_v8 = vmul.f32 0.5, %v1197_v2  ;;  %v1186_v61 = vmul.f32 0.5, %v1185_v47  ;;  %v9219_v46 = vand.u32 2147483648, %v5430_v23  ;;  %v1173_v7 = vmul.f32 %v5873_v59, %v1172_v45  ;;  %v5966_v45 = vpop.xlane.xlu0 %818 }
 0x1b2   : > { %v1233_v14 = vmul.f32 %v5885_v50, %v1232_v16  ;;  %v1220_v17 = vmul.f32 %v5910_v19, %v5618_v63  ;;  %v5941_v30 = vpop.eup %4191  ;;  %v9221_v2 = vand.u32 2147483648, %v5439_v21  ;;  %v9223_v23 = vand.u32 2147483648, %v5448_v15  ;;  %v4538_v15 = vld [vmem:[%s4696_s8 + $0xa8] sm:$0xff] }
 0x1b3   : > { %v5933_v28 = vsel %vm1072_vm6, %v9219_v46, %v1071_v20  ;;  %vm1168_vm13 = vcmp.eq.f32.partialorder %v5472_v42, 0.0  ;;  %4195 = vrsqrt.f32 %v5708_v31  ;;  %v1165_v47 = vmul.f32 %v1164_v35, %v5472_v42 }
 0x1b4   : > { %9220 = vst [vmem:[#allocation10_spill] sm:$0xff] %v5933_v28  ;;  %v5947_v44 = vsel %vm1132_vm7, %v9221_v2, %v1131_v56  ;;  %v5953_v43 = vsel %vm1120_vm8, %v9223_v23, %v1119_v10  ;;  %v5958_v22 = vpop.eup %4193  ;;  %v1153_v21 = vmul.f32 %v1152_v52, %v5490_v5  ;;  %vm1156_vm14 = vcmp.eq.f32.partialorder %v5490_v5, 0.0  ;;  %v4540_v28 = vld [vmem:[%s4696_s8 + $0x98] sm:$0xff] }
 0x1b5   : > { %9222 = vst [vmem:[#allocation23_spill] sm:$0xff] %v5947_v44  ;;  %vm1142_vm15 = vcmp.eq.f32.partialorder %v5497_v60, inf  ;;  %4197 = vrsqrt.f32 %v5722_v3  ;;  %v1107_v16 = vsel %vm1106_vm9, %v5458_v12, %v1105_v39  ;;  %v1140_v20 = vmul.f32 %v5808_v58, %v1139_v26  ;;  %v4539_v44 = vld [vmem:[%s4696_s8 + $0xa0] sm:$0xff] }
 0x1b6   : > { %9224 = vst [vmem:[#allocation24_spill] sm:$0xff] %v5953_v43  ;;  %v1199_v46 = vsub.f32 1.5, %v1198_v8  ;;  %v1187_v56 = vsub.f32 1.5, %v1186_v61  ;;  %v1174_v10 = vmul.f32 0.5, %v1173_v7  ;;  %v1234_v35 = vmul.f32 0.5, %v1233_v14  ;;  %v5993_v8 = vpop.xlane.xlu2 %833 }
 0x1b7   : > { %v1221_v52 = vmul.f32 %v5910_v19, %v1220_v17  ;;  %v1208_v2 = vmul.f32 %v5941_v30, %v5627_v54  ;;  %v1268_v23 = vmul.f32 %v5958_v22, %v5665_v18  ;;  %v1684_v29 = vmul.f32 %v4538_v15, %v4538_v15 }
 0x1b8   : > { %v1683_v43 = vmul.f32 %v4539_v44, %v4539_v44  ;;  %v1682_v39 = vmul.f32 %v4540_v28, %v4540_v28  ;;  %v9225_v58 = vand.u32 2147483648, %v5458_v12  ;;  %v1167_v14 = vsel %vm1166_vm11, %v5472_v42, %v1165_v47 }
 0x1b9   : > { %v1155_v26 = vsel %vm1154_vm12, %v5490_v5, %v1153_v21  ;;  %4199 = vrsqrt.f32 %v5750_v36  ;;  %v5995_v7 = vpop.eup %4195  ;;  %v1141_v28 = vmul.f32 %v1140_v20, %v5497_v60  ;;  %vm1144_vm1 = vcmp.eq.f32.partialorder %v5497_v60, 0.0 }
 0x1ba   : > { %v5984_v61 = vsel %vm1108_vm10, %v9225_v58, %v1107_v16  ;;  %vm1202_vm2 = vcmp.eq.f32.partialorder %v5523_v51, inf  ;;  %v1790_v12 = vsel %vm9108_vm0, %v1684_v29, 0.0  ;;  %v1787_v17 = vsel %vm9108_vm0, %v1683_v43, 0.0 }
 0x1bb   : > { %9226 = vst [vmem:[#allocation16_spill] sm:$0xff] %v5984_v61  ;;  %v1784_v44 = vsel %vm9108_vm0, %v1682_v39, 0.0  ;;  %v6003_v47 = vpop.eup %4197  ;;  %v1200_v21 = vmul.f32 %v5826_v25, %v1199_v46  ;;  %v1188_v15 = vmul.f32 %v5843_v49, %v1187_v56  ;;  %v1175_v16 = vsub.f32 1.5, %v1174_v10  ;;  %1791 = vadd.xlane.f32.xlu2 %v1790_v12  ;;  %1788 = vadd.xlane.f32.xlu1 %v1787_v17  ;;  %v6020_v56 = vpop.xlane.xlu1 %830 }
 0x1bc   : > { %v1235_v58 = vsub.f32 1.5, %v1234_v35  ;;  %vm1190_vm3 = vcmp.eq.f32.partialorder %v5549_v1, inf  ;;  %v1222_v20 = vmul.f32 0.5, %v1221_v52  ;;  %v1209_v61 = vmul.f32 %v5941_v30, %v1208_v2  ;;  %1785 = vadd.xlane.f32.xlu0 %v1784_v44  ;;  %v6043_v12 = vpop.xlane.xlu0 %827 }
 0x1bd   : > { %v1269_v29 = vmul.f32 %v5958_v22, %v1268_v23  ;;  %v9227_v43 = vand.u32 2147483648, %v5472_v42  ;;  %v1256_v46 = vmul.f32 %v5995_v7, %v5708_v31  ;;  %v9229_v10 = vand.u32 2147483648, %v5490_v5 }
 0x1be   : > { %v1143_v42 = vsel %vm1142_vm15, %v5497_v60, %v1141_v28  ;;  %vm1204_vm4 = vcmp.eq.f32.partialorder %v5523_v51, 0.0  ;;  %v1244_v2 = vmul.f32 %v6003_v47, %v5722_v3  ;;  %v1189_v5 = vmul.f32 %v1188_v15, %v5549_v1  ;;  %v4541_v15 = vld [vmem:[%s4696_s8 + $0xc0] sm:$0xff]  ;;  %v6067_v52 = vpop.xlane.xlu2 %842 }
 0x1bf   : > { %v6014_v39 = vsel %vm1168_vm13, %v9227_v43, %v1167_v14  ;;  %v6026_v35 = vsel %vm1156_vm14, %v9229_v10, %v1155_v26  ;;  %v6035_v23 = vpop.eup %4199  ;;  %v1201_v14 = vmul.f32 %v1200_v21, %v5523_v51  ;;  %vm1192_vm5 = vcmp.eq.f32.partialorder %v5549_v1, 0.0  ;;  %9232 = vst [vmem:[#allocation22_spill] sm:$0xff] %v6067_v52 }
 0x1c0   : > { %9228 = vst [vmem:[#allocation29_spill] sm:$0xff] %v6014_v39  ;;  %v1176_v26 = vmul.f32 %v5873_v59, %v1175_v16  ;;  %vm1178_vm6 = vcmp.eq.f32.partialorder %v5555_v13, inf  ;;  %v1236_v28 = vmul.f32 %v5885_v50, %v1235_v58  ;;  %vm1238_vm7 = vcmp.eq.f32.partialorder %v5585_v55, inf  ;;  %v4542_v16 = vld [vmem:[%s4696_s8 + $0xb8] sm:$0xff] }
 0x1c1   : > { %v1223_v17 = vsub.f32 1.5, %v1222_v20  ;;  %v1210_v44 = vmul.f32 0.5, %v1209_v61  ;;  %v1270_v43 = vmul.f32 0.5, %v1269_v29  ;;  %4201 = vrsqrt.f32 %v5784_v48  ;;  %v4543_v20 = vld [vmem:[%s4696_s8 + $0xb0] sm:$0xff] }
 0x1c2   : > { %v1257_v21 = vmul.f32 %v5995_v7, %v1256_v46  ;;  %4203 = vrsqrt.f32 %v5806_v11  ;;  %v1687_v59 = vmul.f32 %v4541_v15, %v4541_v15  ;;  %v1686_v10 = vmul.f32 %v4542_v16, %v4542_v16 }
 0x1c3   : > { %v1245_v50 = vmul.f32 %v6003_v47, %v1244_v2  ;;  %v1304_v58 = vmul.f32 %v6035_v23, %v5750_v36  ;;  %4205 = vrsqrt.f32 %v5824_v41  ;;  %v1685_v61 = vmul.f32 %v4543_v20, %v4543_v20 }
 0x1c4   : > { %v9230_v29 = vand.u32 2147483648, %v5497_v60  ;;  %v1203_v15 = vsel %vm1202_vm2, %v5523_v51, %v1201_v14  ;;  %v1799_v16 = vsel %vm9108_vm0, %v1687_v59, 0.0  ;;  %v1796_v2 = vsel %vm9108_vm0, %v1686_v10, 0.0 }
 0x1c5   : > { %v1191_v20 = vsel %vm1190_vm3, %v5549_v1, %v1189_v5  ;;  %v1177_v49 = vmul.f32 %v1176_v26, %v5555_v13  ;;  %v1211_v25 = vsub.f32 1.5, %v1210_v44  ;;  %1800 = vadd.xlane.f32.xlu2 %v1799_v16  ;;  %1797 = vadd.xlane.f32.xlu1 %v1796_v2  ;;  %v1793_v60 = vsel %vm9108_vm0, %v1685_v61, 0.0 }
 0x1c6   : > { %v6060_v46 = vsel %vm1144_vm1, %v9230_v29, %v1143_v42  ;;  %v1237_v42 = vmul.f32 %v1236_v28, %v5585_v55  ;;  %v1224_v14 = vmul.f32 %v5910_v19, %v1223_v17  ;;  %v1271_v59 = vsub.f32 1.5, %v1270_v43  ;;  %1794 = vadd.xlane.f32.xlu0 %v1793_v60  ;;  %v6094_v43 = vpop.xlane.xlu1 %839  ;;  %v6117_v60 = vpop.xlane.xlu0 %836 }
 0x1c7   : > { %9231 = vst [vmem:[#allocation30_spill] sm:$0xff] %v6060_v46  ;;  %v1258_v29 = vmul.f32 0.5, %v1257_v21  ;;  %v6076_v10 = vpop.eup %4201  ;;  %vm1226_vm8 = vcmp.eq.f32.partialorder %v5618_v63, inf  ;;  %v1246_v39 = vmul.f32 0.5, %v1245_v50  ;;  %v1305_v26 = vmul.f32 %v6035_v23, %v1304_v58 }
 0x1c8   : > { %v6081_v44 = vpop.eup %4203  ;;  %v9233_v61 = vand.u32 2147483648, %v5523_v51  ;;  %vm1180_vm9 = vcmp.eq.f32.partialorder %v5555_v13, 0.0  ;;  %vm1214_vm10 = vcmp.eq.f32.partialorder %v5627_v54, inf  ;;  %4207 = vrsqrt.f32 %v5860_v40 }
 0x1c9   : > { %v6096_v21 = vpop.eup %4205  ;;  %v9235_v50 = vand.u32 2147483648, %v5549_v1  ;;  %v1179_v58 = vsel %vm1178_vm6, %v5555_v13, %v1177_v49  ;;  %vm1240_vm11 = vcmp.eq.f32.partialorder %v5585_v55, 0.0  ;;  %vm1274_vm12 = vcmp.eq.f32.partialorder %v5665_v18, inf }
 0x1ca   : > { %v6087_v28 = vsel %vm1204_vm4, %v9233_v61, %v1203_v15  ;;  %v1212_v15 = vmul.f32 %v5941_v30, %v1211_v25  ;;  %v1239_v2 = vsel %vm1238_vm7, %v5585_v55, %v1237_v42  ;;  %v1225_v1 = vmul.f32 %v1224_v14, %v5618_v63  ;;  %v4544_v14 = vld [vmem:[%s4696_s8 + $0xd8] sm:$0xff] }
 0x1cb   : > { %9234 = vst [vmem:[#allocation28_spill] sm:$0xff] %v6087_v28  ;;  %v6102_v51 = vsel %vm1192_vm5, %v9235_v50, %v1191_v20  ;;  %vm1228_vm13 = vcmp.eq.f32.partialorder %v5618_v63, 0.0  ;;  %v1272_v20 = vmul.f32 %v5958_v22, %v1271_v59  ;;  %v1259_v49 = vsub.f32 1.5, %v1258_v29  ;;  %v4545_v29 = vld [vmem:[%s4696_s8 + $0xd0] sm:$0xff]  ;;  %v4546_v50 = vld [vmem:[%s4696_s8 + $0xc8] sm:$0xff]  ;;  %v6143_v28 = vpop.xlane.xlu2 %851 }
 0x1cc   : > { %9236 = vst [vmem:[#allocation83_spill] sm:$0xff] %v6102_v51  ;;  %vm1216_vm14 = vcmp.eq.f32.partialorder %v5627_v54, 0.0  ;;  %v1247_v30 = vsub.f32 1.5, %v1246_v39  ;;  %v1306_v25 = vmul.f32 0.5, %v1305_v26  ;;  %v1292_v61 = vmul.f32 %v6076_v10, %v5784_v48 }
 0x1cd   : > { %4209 = vrsqrt.f32 %v5882_v6  ;;  %vm1276_vm15 = vcmp.eq.f32.partialorder %v5665_v18, 0.0  ;;  %v1280_v42 = vmul.f32 %v6081_v44, %v5806_v11  ;;  %v1340_v22 = vmul.f32 %v6096_v21, %v5824_v41 }
 0x1ce   : > { %4211 = vrsqrt.f32 %v5908_v24  ;;  %v1690_v59 = vmul.f32 %v4544_v14, %v4544_v14  ;;  %v1213_v39 = vmul.f32 %v1212_v15, %v5627_v54  ;;  %vm1262_vm1 = vcmp.eq.f32.partialorder %v5708_v31, inf  ;;  %v6135_v17 = vpop.eup %4207 }
 0x1cf   : > { %4213 = vrsqrt.f32 %v5939_v53  ;;  %v1689_v26 = vmul.f32 %v4545_v29, %v4545_v29  ;;  %v1688_v16 = vmul.f32 %v4546_v50, %v4546_v50  ;;  %v1227_v19 = vsel %vm1226_vm8, %v5618_v63, %v1225_v1 }
 0x1d0   : > { %v1273_v5 = vmul.f32 %v1272_v20, %v5665_v18  ;;  %v1260_v14 = vmul.f32 %v5995_v7, %v1259_v49  ;;  %v1808_v15 = vsel %vm9108_vm0, %v1690_v59, 0.0  ;;  %v1248_v51 = vmul.f32 %v6003_v47, %v1247_v30 }
 0x1d1   : > { %v1307_v46 = vsub.f32 1.5, %v1306_v25  ;;  %1809 = vadd.xlane.f32.xlu2 %v1808_v15  ;;  %v1805_v29 = vsel %vm9108_vm0, %v1689_v26, 0.0  ;;  %v1802_v50 = vsel %vm9108_vm0, %v1688_v16, 0.0  ;;  %vm1250_vm2 = vcmp.eq.f32.partialorder %v5722_v3, inf }
 0x1d2   : > { %v1293_v1 = vmul.f32 %v6076_v10, %v1292_v61  ;;  %v1281_v20 = vmul.f32 %v6081_v44, %v1280_v42  ;;  %v1341_v7 = vmul.f32 %v6096_v21, %v1340_v22  ;;  %1806 = vadd.xlane.f32.xlu1 %v1805_v29  ;;  %1803 = vadd.xlane.f32.xlu0 %v1802_v50  ;;  %v9237_v47 = vand.u32 2147483648, %v5555_v13 }
 0x1d3   : > { %v6152_v49 = vpop.eup %4209  ;;  %v1215_v16 = vsel %vm1214_vm10, %v5627_v54, %v1213_v39  ;;  %v1328_v61 = vmul.f32 %v6135_v17, %v5860_v40  ;;  %v9239_v22 = vand.u32 2147483648, %v5585_v55  ;;  %v1275_v13 = vsel %vm1274_vm12, %v5665_v18, %v1273_v5  ;;  %v6180_v39 = vpop.xlane.xlu1 %848 }
 0x1d4   : > { %v6158_v30 = vsel %vm1180_vm9, %v9237_v47, %v1179_v58  ;;  %v6166_v42 = vpop.eup %4211  ;;  %v1261_v58 = vmul.f32 %v1260_v14, %v5708_v31  ;;  %vm1264_vm3 = vcmp.eq.f32.partialorder %v5708_v31, 0.0  ;;  %4215 = vrsqrt.f32 %v5966_v45 }
 0x1d5   : > { %9238 = vst [vmem:[#allocation84_spill] sm:$0xff] %v6158_v30  ;;  %v6172_v59 = vsel %vm1240_vm11, %v9239_v22, %v1239_v2  ;;  %v6182_v26 = vpop.eup %4213  ;;  %v9241_v15 = vand.u32 2147483648, %v5618_v63  ;;  %v1249_v2 = vmul.f32 %v1248_v51, %v5722_v3  ;;  %v1308_v5 = vmul.f32 %v6035_v23, %v1307_v46  ;;  %v6201_v51 = vpop.xlane.xlu0 %845 }
 0x1d6   : > { %9240 = vst [vmem:[#allocation85_spill] sm:$0xff] %v6172_v59  ;;  %vm1310_vm4 = vcmp.eq.f32.partialorder %v5750_v36, inf  ;;  %v1313_v14 = vand.u32 2147483648, %v5750_v36  ;;  %v9243_v29 = vand.u32 2147483648, %v5627_v54  ;;  %vm1252_vm5 = vcmp.eq.f32.partialorder %v5722_v3, 0.0 }
 0x1d7   : > { %v6188_v55 = vsel %vm1228_vm13, %v9241_v15, %v1227_v19  ;;  %v1294_v63 = vmul.f32 0.5, %v1293_v1  ;;  %v1282_v19 = vmul.f32 0.5, %v1281_v20  ;;  %v1342_v47 = vmul.f32 0.5, %v1341_v7  ;;  %9245 = vst [vmem:[#allocation88_spill] sm:$0xff] %v6201_v51 }
 0x1d8   : > { %9242 = vst [vmem:[#allocation86_spill] sm:$0xff] %v6188_v55  ;;  %v6198_v50 = vsel %vm1216_vm14, %v9243_v29, %v1215_v16  ;;  %v9246_v23 = vand.u32 2147483648, %v5665_v18  ;;  %v1329_v54 = vmul.f32 %v6135_v17, %v1328_v61  ;;  %v1316_v16 = vmul.f32 %v6152_v49, %v5882_v6  ;;  %v4548_v29 = vld [vmem:[%s4696_s8 + $0xe8] sm:$0xff] }
 0x1d9   : > { %9244 = vst [vmem:[#allocation87_spill] sm:$0xff] %v6198_v50  ;;  %v1263_v1 = vsel %vm1262_vm1, %v5708_v31, %v1261_v58  ;;  %vm1312_vm6 = vcmp.eq.f32.partialorder %v5750_v36, 0.0  ;;  %v1376_v20 = vmul.f32 %v6166_v42, %v5908_v24  ;;  %v1364_v18 = vmul.f32 %v6182_v26, %v5939_v53  ;;  %v6231_v50 = vpop.xlane.xlu2 %860 }
 0x1da   : > { %v6207_v46 = vsel %vm1276_vm15, %v9246_v23, %v1275_v13  ;;  %4217 = vrsqrt.f32 %v5993_v8  ;;  %v1251_v7 = vsel %vm1250_vm2, %v5722_v3, %v1249_v2  ;;  %v1309_v61 = vmul.f32 %v1308_v5, %v5750_v36  ;;  %v4547_v13 = vld [vmem:[%s4696_s8 + $0xf0] sm:$0xff]  ;;  %v6228_v23 = vpop.eup %4215 }
 0x1db   : > { %9247 = vst [vmem:[#allocation89_spill] sm:$0xff] %v6207_v46  ;;  %v1693_v15 = vmul.f32 %v4547_v13, %v4547_v13  ;;  %v1692_v58 = vmul.f32 %v4548_v29, %v4548_v29  ;;  %v1295_v22 = vsub.f32 1.5, %v1294_v63  ;;  %v1283_v25 = vsub.f32 1.5, %v1282_v19  ;;  %v4549_v46 = vld [vmem:[%s4696_s8 + $0xe0] sm:$0xff] }
 0x1dc   : > { %v1343_v51 = vsub.f32 1.5, %v1342_v47  ;;  %v1691_v59 = vmul.f32 %v4549_v46, %v4549_v46  ;;  %v1330_v55 = vmul.f32 0.5, %v1329_v54  ;;  %v1317_v30 = vmul.f32 %v6152_v49, %v1316_v16 }
 0x1dd   : > { %v1817_v2 = vsel %vm9108_vm0, %v1693_v15, 0.0  ;;  %v1814_v5 = vsel %vm9108_vm0, %v1692_v58, 0.0  ;;  %v1377_v13 = vmul.f32 %v6166_v42, %v1376_v20  ;;  %v1365_v29 = vmul.f32 %v6182_v26, %v1364_v18 }
 0x1de   : > { %4219 = vrsqrt.f32 %v6020_v56  ;;  %1818 = vadd.xlane.f32.xlu2 %v1817_v2  ;;  %1815 = vadd.xlane.f32.xlu1 %v1814_v5  ;;  %v1811_v63 = vsel %vm9108_vm0, %v1691_v59, 0.0  ;;  %v9248_v19 = vand.u32 2147483648, %v5708_v31  ;;  %v1352_v54 = vmul.f32 %v6228_v23, %v5966_v45  ;;  %v6271_v5 = vpop.xlane.xlu0 %854 }
 0x1df   : > { %4221 = vrsqrt.f32 %v6043_v12  ;;  %1812 = vadd.xlane.f32.xlu0 %v1811_v63  ;;  %v1311_v59 = vsel %vm1310_vm4, %v5750_v36, %v1309_v61  ;;  %v1296_v20 = vmul.f32 %v6076_v10, %v1295_v22  ;;  %vm1298_vm7 = vcmp.eq.f32.partialorder %v5784_v48, inf }
 0x1e0   : > { %v6244_v47 = vsel %vm1264_vm3, %v9248_v19, %v1263_v1  ;;  %v6250_v16 = vpop.eup %4217  ;;  %v1284_v31 = vmul.f32 %v6081_v44, %v1283_v25  ;;  %vm1286_vm8 = vcmp.eq.f32.partialorder %v5806_v11, inf  ;;  %vm1346_vm9 = vcmp.eq.f32.partialorder %v5824_v41, inf  ;;  %v6260_v1 = vpop.xlane.xlu1 %857 }
 0x1e1   : > { %9249 = vst [vmem:[#allocation90_spill] sm:$0xff] %v6244_v47  ;;  %v9250_v18 = vand.u32 2147483648, %v5722_v3  ;;  %v1344_v61 = vmul.f32 %v6096_v21, %v1343_v51  ;;  %v1331_v58 = vsub.f32 1.5, %v1330_v55  ;;  %v1318_v44 = vmul.f32 0.5, %v1317_v30  ;;  %v6298_v10 = vpop.xlane.xlu2 %869 }
 0x1e2   : > { %v1378_v25 = vmul.f32 0.5, %v1377_v13  ;;  %v1366_v2 = vmul.f32 0.5, %v1365_v29  ;;  %v6275_v63 = vsel %vm1312_vm6, %v1313_v14, %v1311_v59  ;;  %vm1300_vm10 = vcmp.eq.f32.partialorder %v5784_v48, 0.0  ;;  %v4550_v29 = vld [vmem:[%s4696_s8 + $0x108] sm:$0xff] }
 0x1e3   : > { %v6266_v15 = vsel %vm1252_vm5, %v9250_v18, %v1251_v7  ;;  %9252 = vst [vmem:[#allocation92_spill] sm:$0xff] %v6275_v63  ;;  %vm1288_vm11 = vcmp.eq.f32.partialorder %v5806_v11, 0.0  ;;  %v1353_v21 = vmul.f32 %v6228_v23, %v1352_v54  ;;  %v1412_v30 = vmul.f32 %v6250_v16, %v5993_v8  ;;  %v4551_v54 = vld [vmem:[%s4696_s8 + $0x100] sm:$0xff]  ;;  %v4552_v18 = vld [vmem:[%s4696_s8 + $0xf8] sm:$0xff] }
 0x1e4   : > { %9251 = vst [vmem:[#allocation91_spill] sm:$0xff] %v6266_v15  ;;  %v6283_v55 = vpop.eup %4219  ;;  %v1297_v36 = vmul.f32 %v1296_v20, %v5784_v48  ;;  %v1285_v14 = vmul.f32 %v1284_v31, %v5806_v11  ;;  %4223 = vrsqrt.f32 %v6094_v43  ;;  %v1345_v13 = vmul.f32 %v1344_v61, %v5824_v41 }
 0x1e5   : > { %v6289_v7 = vpop.eup %4221  ;;  %vm1348_vm12 = vcmp.eq.f32.partialorder %v5824_v41, 0.0  ;;  %vm1334_vm13 = vcmp.eq.f32.partialorder %v5860_v40, inf  ;;  %v1696_v19 = vmul.f32 %v4550_v29, %v4550_v29  ;;  %v1695_v59 = vmul.f32 %v4551_v54, %v4551_v54 }
 0x1e6   : > { %v1694_v20 = vmul.f32 %v4552_v18, %v4552_v18  ;;  %v1332_v31 = vmul.f32 %v6135_v17, %v1331_v58  ;;  %v1319_v3 = vsub.f32 1.5, %v1318_v44  ;;  %v1379_v51 = vsub.f32 1.5, %v1378_v25 }
 0x1e7   : > { %v1367_v22 = vsub.f32 1.5, %v1366_v2  ;;  %v1354_v46 = vmul.f32 0.5, %v1353_v21  ;;  %v1413_v61 = vmul.f32 %v6250_v16, %v1412_v30  ;;  %v1400_v63 = vmul.f32 %v6283_v55, %v6020_v56 }
 0x1e8   : > { %v1826_v15 = vsel %vm9108_vm0, %v1696_v19, 0.0  ;;  %v1388_v29 = vmul.f32 %v6289_v7, %v6043_v12  ;;  %4225 = vrsqrt.f32 %v6117_v60  ;;  %v1823_v17 = vsel %vm9108_vm0, %v1695_v59, 0.0 }
 0x1e9   : > { %1827 = vadd.xlane.f32.xlu2 %v1826_v15  ;;  %v1820_v58 = vsel %vm9108_vm0, %v1694_v20, 0.0  ;;  %v1299_v44 = vsel %vm1298_vm7, %v5784_v48, %v1297_v36  ;;  %v1287_v25 = vsel %vm1286_vm8, %v5806_v11, %v1285_v14  ;;  %v1347_v2 = vsel %vm1346_vm9, %v5824_v41, %v1345_v13  ;;  %1824 = vadd.xlane.f32.xlu1 %v1823_v17  ;;  %v6328_v13 = vpop.xlane.xlu1 %866 }
 0x1ea   : > { %4227 = vrsqrt.f32 %v6143_v28  ;;  %1821 = vadd.xlane.f32.xlu0 %v1820_v58  ;;  %v6319_v15 = vpop.eup %4223  ;;  %v1333_v21 = vmul.f32 %v1332_v31, %v5860_v40  ;;  %vm1336_vm14 = vcmp.eq.f32.partialorder %v5860_v40, 0.0  ;;  %v1320_v30 = vmul.f32 %v6152_v49, %v1319_v3 }
 0x1eb   : > { %vm1322_vm15 = vcmp.eq.f32.partialorder %v5882_v6, inf  ;;  %v1380_v36 = vmul.f32 %v6166_v42, %v1379_v51  ;;  %vm1382_vm1 = vcmp.eq.f32.partialorder %v5908_v24, inf  ;;  %v1368_v14 = vmul.f32 %v6182_v26, %v1367_v22 }
 0x1ec   : > { %v1355_v19 = vsub.f32 1.5, %v1354_v46  ;;  %v1414_v54 = vmul.f32 0.5, %v1413_v61  ;;  %v1401_v59 = vmul.f32 %v6283_v55, %v1400_v63  ;;  %4229 = vrsqrt.f32 %v6067_v52  ;;  %v6346_v46 = vpop.xlane.xlu0 %863 }
 0x1ed   : > { %v9253_v18 = vand.u32 2147483648, %v5784_v48  ;;  %v9255_v42 = vand.u32 2147483648, %v5806_v11  ;;  %vm1370_vm2 = vcmp.eq.f32.partialorder %v5939_v53, inf  ;;  %v1389_v26 = vmul.f32 %v6289_v7, %v1388_v29 }
 0x1ee   : > { %vm1324_vm3 = vcmp.eq.f32.partialorder %v5882_v6, 0.0  ;;  %v1436_v63 = vmul.f32 %v6319_v15, %v6094_v43  ;;  %4231 = vrsqrt.f32 %v6180_v39  ;;  %v6354_v11 = vpop.eup %4225  ;;  %v9257_v51 = vand.u32 2147483648, %v5824_v41 }
 0x1ef   : > { %v6336_v49 = vsel %vm1300_vm10, %v9253_v18, %v1299_v44  ;;  %v6342_v3 = vsel %vm1288_vm11, %v9255_v42, %v1287_v25  ;;  %v1335_v31 = vsel %vm1334_vm13, %v5860_v40, %v1333_v21  ;;  %v1321_v61 = vmul.f32 %v1320_v30, %v5882_v6  ;;  %v4553_v21 = vld [vmem:[%s4696_s8 + $0x180] sm:$0xff]  ;;  %v6377_v42 = vpop.xlane.xlu2 %878 }
 0x1f0   : > { %9254 = vst [vmem:[#allocation93_spill] sm:$0xff] %v6336_v49  ;;  %v6360_v20 = vsel %vm1348_vm12, %v9257_v51, %v1347_v2  ;;  %v1381_v29 = vmul.f32 %v1380_v36, %v5908_v24  ;;  %vm1384_vm4 = vcmp.eq.f32.partialorder %v5908_v24, 0.0  ;;  %v6368_v17 = vpop.eup %4227  ;;  %v1369_v58 = vmul.f32 %v1368_v14, %v5939_v53  ;;  %v4554_v36 = vld [vmem:[%s4696_s8 + $0x118] sm:$0xff] }
 0x1f1   : > { %9256 = vst [vmem:[#allocation94_spill] sm:$0xff] %v6342_v3  ;;  %vm1372_vm5 = vcmp.eq.f32.partialorder %v5939_v53, 0.0  ;;  %v1356_v41 = vmul.f32 %v6228_v23, %v1355_v19  ;;  %v1415_v44 = vsub.f32 1.5, %v1414_v54  ;;  %v1402_v25 = vmul.f32 0.5, %v1401_v59  ;;  %v4555_v19 = vld [vmem:[%s4696_s8 + $0x110] sm:$0xff] }
 0x1f2   : > { %9258 = vst [vmem:[#allocation95_spill] sm:$0xff] %v6360_v20  ;;  %vm1358_vm6 = vcmp.eq.f32.partialorder %v5966_v45, inf  ;;  %v1390_v2 = vmul.f32 0.5, %v1389_v26  ;;  %4233 = vrsqrt.f32 %v6231_v50  ;;  %v1711_v30 = vmul.f32 %v4553_v21, %v4553_v21  ;;  %v6379_v51 = vpop.eup %4229 }
 0x1f3   : > { %v1698_v18 = vmul.f32 %v4554_v36, %v4554_v36  ;;  %v1437_v14 = vmul.f32 %v6319_v15, %v1436_v63  ;;  %v1424_v23 = vmul.f32 %v6354_v11, %v6117_v60  ;;  %4235 = vrsqrt.f32 %v6260_v1 }
 0x1f4   : > { %v1697_v54 = vmul.f32 %v4555_v19, %v4555_v19  ;;  %v1484_v59 = vmul.f32 %v6368_v17, %v6143_v28  ;;  %4237 = vrsqrt.f32 %v6271_v5  ;;  %v1871_v26 = vsel %vm9108_vm0, %v1711_v30, 0.0  ;;  %v6391_v36 = vpop.eup %4231 }
 0x1f5   : > { %v1832_v21 = vsel %vm9108_vm0, %v1698_v18, 0.0  ;;  %v9259_v63 = vand.u32 2147483648, %v5860_v40  ;;  %v1323_v19 = vsel %vm1322_vm15, %v5882_v6, %v1321_v61  ;;  %v1383_v22 = vsel %vm1382_vm1, %v5908_v24, %v1381_v29  ;;  %1872 = vadd.xlane.f32.xlu2 %v1871_v26 }
 0x1f6   : > { %1833 = vadd.xlane.f32.xlu1 %v1832_v21  ;;  %v1829_v30 = vsel %vm9108_vm0, %v1697_v54, 0.0  ;;  %v1371_v18 = vsel %vm1370_vm2, %v5939_v53, %v1369_v58  ;;  %v1403_v20 = vsub.f32 1.5, %v1402_v25  ;;  %v1391_v40 = vsub.f32 1.5, %v1390_v2 }
 0x1f7   : > { %v6397_v48 = vsel %vm1336_vm14, %v9259_v63, %v1335_v31  ;;  %v1448_v31 = vmul.f32 %v6379_v51, %v6067_v52  ;;  %1830 = vadd.xlane.f32.xlu0 %v1829_v30  ;;  %v6411_v63 = vpop.xlane.xlu1 %875  ;;  %v1357_v61 = vmul.f32 %v1356_v41, %v5966_v45  ;;  %v1416_v29 = vmul.f32 %v6250_v16, %v1415_v44  ;;  %v6430_v44 = vpop.xlane.xlu0 %872 }
 0x1f8   : > { %9260 = vst [vmem:[#allocation96_spill] sm:$0xff] %v6397_v48  ;;  %v1438_v26 = vmul.f32 0.5, %v1437_v14  ;;  %v1425_v21 = vmul.f32 %v6354_v11, %v1424_v23  ;;  %v6416_v54 = vpop.eup %4233  ;;  %v9261_v48 = vand.u32 2147483648, %v5882_v6  ;;  %vm1360_vm7 = vcmp.eq.f32.partialorder %v5966_v45, 0.0 }
 0x1f9   : > { %vm1418_vm8 = vcmp.eq.f32.partialorder %v5993_v8, inf  ;;  %v1485_v41 = vmul.f32 %v6368_v17, %v1484_v59  ;;  %v1472_v16 = vmul.f32 %v6391_v36, %v6180_v39  ;;  %v6432_v2 = vpop.eup %4235  ;;  %v9263_v14 = vand.u32 2147483648, %v5908_v24 }
 0x1fa   : > { %v6422_v58 = vsel %vm1324_vm3, %v9261_v48, %v1323_v19  ;;  %4239 = vrsqrt.f32 %v6298_v10  ;;  %v6443_v59 = vpop.eup %4237  ;;  %v9265_v19 = vand.u32 2147483648, %v5939_v53  ;;  %v1404_v25 = vmul.f32 %v6283_v55, %v1403_v20 }
 0x1fb   : > { %9262 = vst [vmem:[#allocation97_spill] sm:$0xff] %v6422_v58  ;;  %v6438_v6 = vsel %vm1384_vm4, %v9263_v14, %v1383_v22  ;;  %vm1406_vm9 = vcmp.eq.f32.partialorder %v6020_v56, inf  ;;  %v1392_v24 = vmul.f32 %v6289_v7, %v1391_v40  ;;  %vm1394_vm10 = vcmp.eq.f32.partialorder %v6043_v12, inf  ;;  %v4556_v40 = vld [vmem:[%s4696_s8 + $0x198] sm:$0xff] }
 0x1fc   : > { %9264 = vst [vmem:[#allocation98_spill] sm:$0xff] %v6438_v6  ;;  %v6449_v30 = vsel %vm1372_vm5, %v9265_v19, %v1371_v18  ;;  %v1449_v22 = vmul.f32 %v6379_v51, %v1448_v31  ;;  %v1359_v14 = vsel %vm1358_vm6, %v5966_v45, %v1357_v61  ;;  %v1417_v23 = vmul.f32 %v1416_v29, %v5993_v8  ;;  %v6465_v19 = vpop.xlane.xlu2 %887 }
 0x1fd   : > { %9266 = vst [vmem:[#allocation99_spill] sm:$0xff] %v6449_v30  ;;  %vm1420_vm11 = vcmp.eq.f32.partialorder %v5993_v8, 0.0  ;;  %v1439_v53 = vsub.f32 1.5, %v1438_v26  ;;  %v1426_v55 = vmul.f32 0.5, %v1425_v21  ;;  %v1486_v20 = vmul.f32 0.5, %v1485_v41  ;;  %v4557_v26 = vld [vmem:[%s4696_s8 + $0x190] sm:$0xff] }
 0x1fe   : > { %v1473_v18 = vmul.f32 %v6391_v36, %v1472_v16  ;;  %v1520_v7 = vmul.f32 %v6416_v54, %v6231_v50  ;;  %v1714_v31 = vmul.f32 %v4556_v40, %v4556_v40  ;;  %vm1408_vm12 = vcmp.eq.f32.partialorder %v6020_v56, 0.0  ;;  %v4558_v41 = vld [vmem:[%s4696_s8 + $0x188] sm:$0xff] }
 0x1ff   : > { %vm1396_vm13 = vcmp.eq.f32.partialorder %v6043_v12, 0.0  ;;  %v1508_v61 = vmul.f32 %v6432_v2, %v6260_v1  ;;  %v1496_v29 = vmul.f32 %v6443_v59, %v6271_v5  ;;  %v1713_v21 = vmul.f32 %v4557_v26, %v4557_v26 }
 0x200   : > { %v1712_v16 = vmul.f32 %v4558_v41, %v4558_v41  ;;  %v1405_v48 = vmul.f32 %v1404_v25, %v6020_v56  ;;  %v1393_v40 = vmul.f32 %v1392_v24, %v6043_v12  ;;  %v1450_v52 = vmul.f32 0.5, %v1449_v22  ;;  %v6479_v30 = vpop.eup %4239  ;;  %v6486_v22 = vpop.xlane.xlu1 %884 }
 0x201   : > { %vm1442_vm14 = vcmp.eq.f32.partialorder %v6094_v43, inf  ;;  %v1880_v6 = vsel %vm9108_vm0, %v1714_v31, 0.0  ;;  %v1440_v58 = vmul.f32 %v6319_v15, %v1439_v53  ;;  %v1427_v3 = vsub.f32 1.5, %v1426_v55 }
 0x202   : > { %1881 = vadd.xlane.f32.xlu2 %v1880_v6  ;;  %v1877_v49 = vsel %vm9108_vm0, %v1713_v21, 0.0  ;;  %v1874_v26 = vsel %vm9108_vm0, %v1712_v16, 0.0  ;;  %v1445_v41 = vand.u32 2147483648, %v6094_v43  ;;  %v1487_v25 = vsub.f32 1.5, %v1486_v20 }
 0x203   : > { %v1474_v47 = vmul.f32 0.5, %v1473_v18  ;;  %v1521_v24 = vmul.f32 %v6416_v54, %v1520_v7  ;;  %1878 = vadd.xlane.f32.xlu1 %v1877_v49  ;;  %1875 = vadd.xlane.f32.xlu0 %v1874_v26  ;;  %v9267_v31 = vand.u32 2147483648, %v5966_v45  ;;  %v1419_v6 = vsel %vm1418_vm8, %v5993_v8, %v1417_v23  ;;  %v6503_v7 = vpop.xlane.xlu0 %881 }
 0x204   : > { %v1509_v53 = vmul.f32 %v6432_v2, %v1508_v61  ;;  %v1497_v55 = vmul.f32 %v6443_v59, %v1496_v29  ;;  %v1451_v20 = vsub.f32 1.5, %v1450_v52  ;;  %v1433_v49 = vand.u32 2147483648, %v6117_v60 }
 0x205   : > { %v6492_v15 = vsel %vm1360_vm7, %v9267_v31, %v1359_v14  ;;  %v1556_v18 = vmul.f32 %v6479_v30, %v6298_v10  ;;  %4241 = vrsqrt.f32 %v6328_v13  ;;  %v1407_v45 = vsel %vm1406_vm9, %v6020_v56, %v1405_v48 }
 0x206   : > { %v1395_v23 = vsel %vm1394_vm10, %v6043_v12, %v1393_v40  ;;  %v1441_v14 = vmul.f32 %v1440_v58, %v6094_v43  ;;  %vm1444_vm15 = vcmp.eq.f32.partialorder %v6094_v43, 0.0  ;;  %v1428_v52 = vmul.f32 %v6354_v11, %v1427_v3 }
 0x207   : > { %vm1430_vm1 = vcmp.eq.f32.partialorder %v6117_v60, inf  ;;  %v9268_v61 = vand.u32 2147483648, %v5993_v8  ;;  %v1488_v48 = vmul.f32 %v6368_v17, %v1487_v25  ;;  %v1475_v21 = vsub.f32 1.5, %v1474_v47 }
 0x208   : > { %v1522_v16 = vmul.f32 0.5, %v1521_v24  ;;  %vm1490_vm2 = vcmp.eq.f32.partialorder %v6143_v28, inf  ;;  %v1493_v58 = vand.u32 2147483648, %v6143_v28  ;;  %v1510_v40 = vmul.f32 0.5, %v1509_v53  ;;  %v6541_v24 = vpop.xlane.xlu2 %1728  ;;  %v4560_v53 = vld [vmem:[%s4696_s8 + $0x128] sm:$0xff] }
 0x209   : > { %v6519_v29 = vsel %vm1420_vm11, %v9268_v61, %v1419_v6  ;;  %v1498_v3 = vmul.f32 0.5, %v1497_v55  ;;  %v9270_v11 = vand.u32 2147483648, %v6020_v56  ;;  %v9272_v8 = vand.u32 2147483648, %v6043_v12  ;;  %v4559_v12 = vld [vmem:[%s4696_s8 + $0x1a0] sm:$0xff] }
 0x20a   : > { %9269 = vst [vmem:[#allocation100_spill] sm:$0xff] %v6519_v29  ;;  %v6537_v47 = vmul.f32 %v6379_v51, %v1451_v20  ;;  %vm1432_vm3 = vcmp.eq.f32.partialorder %v6117_v60, 0.0  ;;  %v1557_v25 = vmul.f32 %v6479_v30, %v1556_v18  ;;  %v1443_v56 = vsel %vm1442_vm14, %v6094_v43, %v1441_v14 }
 0x20b   : > { %v6528_v26 = vsel %vm1408_vm12, %v9270_v11, %v1407_v45  ;;  %v6534_v17 = vsel %vm1396_vm13, %v9272_v8, %v1395_v23  ;;  %v1429_v31 = vmul.f32 %v1428_v52, %v6117_v60  ;;  %vm1492_vm4 = vcmp.eq.f32.partialorder %v6143_v28, 0.0  ;;  %v6550_v51 = vpop.eup %4241  ;;  %v4561_v23 = vld [vmem:[%s4696_s8 + $0x120] sm:$0xff] }
 0x20c   : > { %9271 = vst [vmem:[#allocation101_spill] sm:$0xff] %v6528_v26  ;;  %v1715_v6 = vmul.f32 %v4559_v12, %v4559_v12  ;;  %v1700_v55 = vmul.f32 %v4560_v53, %v4560_v53  ;;  %v1489_v20 = vmul.f32 %v1488_v48, %v6143_v28  ;;  %v1476_v18 = vmul.f32 %v6391_v36, %v1475_v21  ;;  %v6560_v53 = vpop.xlane.xlu1 %893 }
 0x20d   : > { %9273 = vst [vmem:[#allocation102_spill] sm:$0xff] %v6534_v17  ;;  %v1523_v45 = vsub.f32 1.5, %v1522_v16  ;;  %v1699_v61 = vmul.f32 %v4561_v23, %v4561_v23  ;;  %v1511_v11 = vsub.f32 1.5, %v1510_v40  ;;  %v1499_v8 = vsub.f32 1.5, %v1498_v3 }
 0x20e   : > { %9274 = vst [vmem:[#allocation103_spill] sm:$0xff] %v6537_v47  ;;  %v1883_v14 = vsel %vm9108_vm0, %v1715_v6, 0.0  ;;  %v1838_v52 = vsel %vm9108_vm0, %v1700_v55, 0.0  ;;  %vm1478_vm5 = vcmp.eq.f32.partialorder %v6180_v39, inf  ;;  %v1558_v12 = vmul.f32 0.5, %v1557_v25  ;;  %v6578_v25 = vpop.xlane.xlu0 %890 }
 0x20f   : > { %4243 = vrsqrt.f32 %v6346_v46  ;;  %1884 = vadd.xlane.f32.xlu2 %v1883_v14  ;;  %1839 = vadd.xlane.f32.xlu1 %v1838_v52  ;;  %v1835_v48 = vsel %vm9108_vm0, %v1699_v61, 0.0  ;;  %vm1480_vm6 = vcmp.eq.f32.partialorder %v6180_v39, 0.0  ;;  %v1481_v36 = vand.u32 2147483648, %v6180_v39  ;;  %9276 = vst [vmem:[#allocation105_spill] sm:$0xff] %v6578_v25 }
 0x210   : > { %v1544_v21 = vmul.f32 %v6550_v51, %v6328_v13  ;;  %1836 = vadd.xlane.f32.xlu0 %v1835_v48  ;;  %4245 = vrsqrt.f32 %v6541_v24  ;;  %v6571_v16 = vsel %vm1444_vm15, %v1445_v41, %v1443_v56  ;;  %v1431_v40 = vsel %vm1430_vm1, %v6117_v60, %v1429_v31 }
 0x211   : > { %9275 = vst [vmem:[#allocation104_spill] sm:$0xff] %v6571_v16  ;;  %v1477_v3 = vmul.f32 %v1476_v18, %v6180_v39  ;;  %vm1526_vm7 = vcmp.eq.f32.partialorder %v6231_v50, inf  ;;  %v1491_v6 = vsel %vm1490_vm2, %v6143_v28, %v1489_v20  ;;  %v1524_v55 = vmul.f32 %v6416_v54, %v1523_v45  ;;  %v6611_v45 = vpop.xlane.xlu2 %1737 }
 0x212   : > { %v1512_v43 = vmul.f32 %v6432_v2, %v1511_v11  ;;  %v1500_v41 = vmul.f32 %v6443_v59, %v1499_v8  ;;  %v1529_v56 = vand.u32 2147483648, %v6231_v50  ;;  %vm1514_vm8 = vcmp.eq.f32.partialorder %v6260_v1, inf }
 0x213   : > { %v1559_v31 = vsub.f32 1.5, %v1558_v12  ;;  %4247 = vrsqrt.f32 %v6377_v42  ;;  %v6593_v18 = vsel %vm1432_vm3, %v1433_v49, %v1431_v40  ;;  %vm1528_vm9 = vcmp.eq.f32.partialorder %v6231_v50, 0.0  ;;  %v4563_v12 = vld [vmem:[%s4696_s8 + $0x130] sm:$0xff] }
 0x214   : > { %9277 = vst [vmem:[#allocation106_spill] sm:$0xff] %v6593_v18  ;;  %vm1516_vm10 = vcmp.eq.f32.partialorder %v6260_v1, 0.0  ;;  %v1517_v54 = vand.u32 2147483648, %v6260_v1  ;;  %vm1502_vm11 = vcmp.eq.f32.partialorder %v6271_v5, inf  ;;  %v1545_v2 = vmul.f32 %v6550_v51, %v1544_v21  ;;  %v4564_v21 = vld [vmem:[%s4696_s8 + $0x1a8] sm:$0xff] }
 0x215   : > { %v6600_v59 = vpop.eup %4243  ;;  %v6604_v20 = vsel %vm1492_vm4, %v1493_v58, %v1491_v6  ;;  %v1479_v60 = vsel %vm1478_vm5, %v6180_v39, %v1477_v3  ;;  %vm1504_vm12 = vcmp.eq.f32.partialorder %v6271_v5, 0.0  ;;  %v1505_v49 = vand.u32 2147483648, %v6271_v5  ;;  %v4562_v58 = vld [vmem:[%s4696_s8 + $0x138] sm:$0xff] }
 0x216   : > { %v4246_v23 = vpop.eup %4245  ;;  %v1525_v61 = vmul.f32 %v1524_v55, %v6231_v50  ;;  %v1513_v11 = vmul.f32 %v1512_v43, %v6260_v1  ;;  %v1501_v28 = vmul.f32 %v1500_v41, %v6271_v5  ;;  %vm1562_vm13 = vcmp.eq.f32.partialorder %v6298_v10, inf }
 0x217   : > { %v1702_v8 = vmul.f32 %v4562_v58, %v4562_v58  ;;  %v1560_v14 = vmul.f32 %v6479_v30, %v1559_v31  ;;  %v1920_v52 = vmul.f32 %v4246_v23, %v6541_v24  ;;  %v1701_v48 = vmul.f32 %v4563_v12, %v4563_v12 }
 0x218   : > { %v1716_v40 = vmul.f32 %v4564_v21, %v4564_v21  ;;  %v1546_v3 = vmul.f32 0.5, %v1545_v2  ;;  %v1532_v6 = vmul.f32 %v6600_v59, %v6346_v46  ;;  %4249 = vrsqrt.f32 %v6611_v45  ;;  %v6634_v2 = vpop.xlane.xlu1 %1734 }
 0x219   : > { %v1844_v55 = vsel %vm9108_vm0, %v1702_v8, 0.0  ;;  %v6626_v43 = vpop.eup %4247  ;;  %v6630_v41 = vsel %vm1480_vm6, %v1481_v36, %v1479_v60  ;;  %v1921_v31 = vmul.f32 %v4246_v23, %v1920_v52  ;;  %v1841_v58 = vsel %vm9108_vm0, %v1701_v48, 0.0 }
 0x21a   : > { %1845 = vadd.xlane.f32.xlu2 %v1844_v55  ;;  %v1527_v8 = vsel %vm1526_vm7, %v6231_v50, %v1525_v61  ;;  %v1515_v12 = vsel %vm1514_vm8, %v6260_v1, %v1513_v11  ;;  %1842 = vadd.xlane.f32.xlu1 %v1841_v58  ;;  %v1886_v36 = vsel %vm9108_vm0, %v1716_v40, 0.0  ;;  %v1503_v60 = vsel %vm1502_vm11, %v6271_v5, %v1501_v28  ;;  %v6649_v61 = vpop.xlane.xlu0 %1731 }
 0x21b   : > { %v1561_v52 = vmul.f32 %v1560_v14, %v6298_v10  ;;  %v1922_v21 = vmul.f32 0.5, %v1921_v31  ;;  %1887 = vadd.xlane.f32.xlu0 %v1886_v36  ;;  %v1547_v55 = vsub.f32 1.5, %v1546_v3  ;;  %v1533_v11 = vmul.f32 %v6600_v59, %v1532_v6 }
 0x21c   : > { %v1592_v58 = vmul.f32 %v6626_v43, %v6377_v42  ;;  %4251 = vrsqrt.f32 %v6634_v2  ;;  %v6657_v40 = vsel %vm1528_vm9, %v1529_v56, %v1527_v8  ;;  %v6661_v28 = vsel %vm1516_vm10, %v1517_v54, %v1515_v12  ;;  %v6677_v56 = vpop.xlane.xlu2 %1746  ;;  %v4565_v12 = vld [vmem:[%s4696_s8 + $0x140] sm:$0xff] }
 0x21d   : > { %4253 = vrsqrt.f32 %v6411_v63  ;;  %v1923_v14 = vsub.f32 1.5, %v1922_v21  ;;  %v6666_v6 = vsel %vm1504_vm12, %v1505_v49, %v1503_v60  ;;  %v1563_v50 = vsel %vm1562_vm13, %v6298_v10, %v1561_v52 }
 0x21e   : > { %v4250_v3 = vpop.eup %4249  ;;  %4255 = vrsqrt.f32 %v6649_v61  ;;  %vm1564_vm14 = vcmp.eq.f32.partialorder %v6298_v10, 0.0  ;;  %v1548_v54 = vmul.f32 %v6550_v51, %v1547_v55  ;;  %vm1550_vm15 = vcmp.eq.f32.partialorder %v6328_v13, inf  ;;  %v4567_v51 = vld [vmem:[%s4696_s8 + $0x1b0] sm:$0xff] }
 0x21f   : > { %4257 = vrsqrt.f32 %v6430_v44  ;;  %v1924_v1 = vmul.f32 %v4246_v23, %v1923_v14  ;;  %v1956_v5 = vmul.f32 %v4250_v3, %v6611_v45  ;;  %v1534_v49 = vmul.f32 0.5, %v1533_v11  ;;  %v4566_v23 = vld [vmem:[%s4696_s8 + $0x1b8] sm:$0xff] }
 0x220   : > { %v1593_v8 = vmul.f32 %v6626_v43, %v1592_v58  ;;  %v1703_v60 = vmul.f32 %v4565_v12, %v4565_v12  ;;  %vm1926_vm1 = vcmp.eq.f32.partialorder %v6541_v24, inf  ;;  %v1718_v14 = vmul.f32 %v4566_v23, %v4566_v23 }
 0x221   : > { %v1925_v52 = vmul.f32 %v1924_v1, %v6541_v24  ;;  %v1957_v21 = vmul.f32 %v4250_v3, %v1956_v5  ;;  %v1929_v31 = vand.u32 2147483648, %v6541_v24  ;;  %v1717_v55 = vmul.f32 %v4567_v51, %v4567_v51 }
 0x222   : > { %v4252_v36 = vpop.eup %4251  ;;  %v1847_v48 = vsel %vm9108_vm0, %v1703_v60, 0.0  ;;  %4259 = vrsqrt.f32 %v6677_v56  ;;  %vm1928_vm2 = vcmp.eq.f32.partialorder %v6541_v24, 0.0  ;;  %v1535_v23 = vsub.f32 1.5, %v1534_v49 }
 0x223   : > { %v6690_v11 = vpop.eup %4253  ;;  %v1927_v58 = vsel %vm1926_vm1, %v6541_v24, %v1925_v52  ;;  %v1958_v1 = vmul.f32 0.5, %v1957_v21  ;;  %v1944_v5 = vmul.f32 %v4252_v36, %v6634_v2  ;;  %1848 = vadd.xlane.f32.xlu2 %v1847_v48  ;;  %v1892_v30 = vsel %vm9108_vm0, %v1718_v14, 0.0  ;;  %v6703_v21 = vpop.xlane.xlu1 %1743 }
 0x224   : > { %v4256_v12 = vpop.eup %4255  ;;  %v1930_v39 = vsel %vm1928_vm2, %v1929_v31, %v1927_v58  ;;  %v1889_v60 = vsel %vm9108_vm0, %v1717_v55, 0.0  ;;  %v1549_v47 = vmul.f32 %v1548_v54, %v6328_v13  ;;  %v6700_v18 = vmul.f32 0.5, %v1593_v8  ;;  %1893 = vadd.xlane.f32.xlu1 %v1892_v30 }
 0x225   : > { %v6697_v51 = vpop.eup %4257  ;;  %v2687_v52 = vmul.f32 %v1930_v39, %v5543_v32  ;;  %v1959_v24 = vsub.f32 1.5, %v1958_v1  ;;  %1890 = vadd.xlane.f32.xlu0 %v1889_v60  ;;  %4261 = vrsqrt.f32 %v6465_v19  ;;  %v1945_v31 = vmul.f32 %v4252_v36, %v1944_v5 }
 0x226   : > { %v1932_v49 = vmul.f32 %v4256_v12, %v6649_v61  ;;  %v1580_v14 = vmul.f32 %v6690_v11, %v6411_v63  ;;  %v3839_v54 = vlaneseq  ;;  %v9278_v30 = vand.u32 2147483648, %v6298_v10 }
 0x227   : > { %v6710_v8 = vmax.f32 %v2687_v52, 1e-08  ;;  %v1960_v55 = vmul.f32 %v4250_v3, %v1959_v24  ;;  %v1946_v58 = vmul.f32 0.5, %v1945_v31  ;;  %4263 = vrsqrt.f32 %v6703_v21 }
 0x228   : > { %v4260_v32 = vpop.eup %4259  ;;  %v6716_v39 = vsel %vm1564_vm14, %v9278_v30, %v1563_v50  ;;  %v1933_v1 = vmul.f32 %v4256_v12, %v1932_v49  ;;  %v6722_v5 = vsel %vm1550_vm15, %v6328_v13, %v1549_v47  ;;  %v6725_v60 = vmul.f32 %v6600_v59, %v1535_v23 }
 0x229   : > { %4265 = vrcp.f32 %v6710_v8  ;;  %v1961_v10 = vmul.f32 %v1960_v55, %v6611_v45  ;;  %v1947_v50 = vsub.f32 1.5, %v1946_v58  ;;  %v1992_v24 = vmul.f32 %v4260_v32, %v6677_v56 }
 0x22a   : > { %v1934_v52 = vmul.f32 0.5, %v1933_v1  ;;  %v6732_v31 = vmul.f32 %v6690_v11, %v1580_v14  ;;  %v6734_v49 = vand.u32 127, %v3839_v54  ;;  %vm1962_vm3 = vcmp.eq.f32.partialorder %v6611_v45, inf  ;;  %v6744_v54 = vpop.xlane.xlu0 %1740 }
 0x22b   : > { %v1965_v47 = vand.u32 2147483648, %v6611_v45  ;;  %v6738_v59 = vpop.eup %4261  ;;  %v1963_v23 = vsel %vm1962_vm3, %v6611_v45, %v1961_v10  ;;  %vm1964_vm4 = vcmp.eq.f32.partialorder %v6611_v45, 0.0  ;;  %v1948_v55 = vmul.f32 %v4252_v36, %v1947_v50 }
 0x22c   : > { %v1935_v30 = vsub.f32 1.5, %v1934_v52  ;;  %vm1950_vm5 = vcmp.eq.f32.partialorder %v6634_v2, inf  ;;  %vm1952_vm6 = vcmp.eq.f32.partialorder %v6634_v2, 0.0  ;;  %v1993_v14 = vmul.f32 %v4260_v32, %v1992_v24 }
 0x22d   : > { %v1966_v58 = vsel %vm1964_vm4, %v1965_v47, %v1963_v23  ;;  %v4264_v1 = vpop.eup %4263  ;;  %v1949_v3 = vmul.f32 %v1948_v55, %v6634_v2  ;;  %v1953_v16 = vand.u32 2147483648, %v6634_v2  ;;  %vm1938_vm7 = vcmp.eq.f32.partialorder %v6649_v61, inf }
 0x22e   : > { %v2690_v48 = vmul.f32 %v1966_v58, %v5641_v57  ;;  %v1936_v10 = vmul.f32 %v4256_v12, %v1935_v30  ;;  %vm1940_vm8 = vcmp.eq.f32.partialorder %v6649_v61, 0.0  ;;  %v1994_v45 = vmul.f32 0.5, %v1993_v14 }
 0x22f   : > { %v6749_v26 = vpop.eup %4265  ;;  %v1980_v36 = vmul.f32 %v4264_v1, %v6703_v21  ;;  %v1951_v57 = vsel %vm1950_vm5, %v6634_v2, %v1949_v3  ;;  %4267 = vrsqrt.f32 %v6744_v54  ;;  %v2824_v30 = vand.u32 2147483647, %v6710_v8 }
 0x230   : > { %v2816_v50 = vmul.f32 %v6749_v26, %v6710_v8  ;;  %v6756_v52 = vmax.f32 %v2690_v48, 1e-08  ;;  %v1954_v12 = vsel %vm1952_vm6, %v1953_v16, %v1951_v57  ;;  %v1937_v24 = vmul.f32 %v1936_v10, %v6649_v61 }
 0x231   : > { %v1995_v47 = vsub.f32 1.5, %v1994_v45  ;;  %v1981_v23 = vmul.f32 %v4264_v1, %v1980_v36  ;;  %v1941_v48 = vand.u32 2147483648, %v6649_v61  ;;  %v2826_v58 = vand.u32 2147483648, %v6710_v8 }
 0x232   : > { %v2817_v55 = vsub.f32 1.0, %v2816_v50  ;;  %4269 = vrcp.f32 %v6756_v52  ;;  %v2689_v3 = vmul.f32 %v1954_v12, %v5647_v0  ;;  %v1939_v2 = vsel %vm1938_vm7, %v6649_v61, %v1937_v24 }
 0x233   : > { %v1996_v16 = vmul.f32 %v4260_v32, %v1995_v47  ;;  %v6774_v14 = vadd.s32 4294967288, %v6734_v49  ;;  %v1942_v10 = vsel %vm1940_vm8, %v1941_v48, %v1939_v2  ;;  %vm1998_vm9 = vcmp.eq.f32.partialorder %v6677_v56, inf }
 0x234   : > { %v1982_v45 = vmul.f32 0.5, %v1981_v23  ;;  %v2818_v36 = vmul.f32 %v6749_v26, %v2817_v55  ;;  %v6780_v50 = vmax.f32 %v2689_v3, 1e-08  ;;  %v2688_v0 = vmul.f32 %v1942_v10, %v5539_v27 }
 0x235   : > { %v1997_v57 = vmul.f32 %v1996_v16, %v6677_v56  ;;  %v6784_v12 = vpop.eup %4267  ;;  %vm2820_vm10 = vweird.f32 %v6710_v8  ;;  %vm2000_vm11 = vcmp.eq.f32.partialorder %v6677_v56, 0.0  ;;  %v2001_v61 = vand.u32 2147483648, %v6677_v56 }
 0x236   : > { %v1983_v32 = vsub.f32 1.5, %v1982_v45  ;;  %vm6789_vm12 = vcmp.eq.f32.partialorder %v2824_v30, 8.507059e+37  ;;  %v2827_v47 = vor.u32 1.1754944e-38, %v2826_v58  ;;  %v2869_v23 = vand.u32 2147483647, %v6756_v52 }
 0x237   : > { %4271 = vrcp.f32 %v6780_v50  ;;  %vm1986_vm13 = vcmp.eq.f32.partialorder %v6703_v21, inf  ;;  %v2871_v55 = vand.u32 2147483648, %v6756_v52  ;;  %v6797_v48 = vmax.f32 %v2688_v0, 1e-08  ;;  %v4568_v0 = vld [vmem:[%s4696_s8 + $0x1c8] sm:$0xff] }
 0x238   : > { %v4270_v27 = vpop.eup %4269  ;;  %v1999_v30 = vsel %vm1998_vm9, %v6677_v56, %v1997_v57  ;;  %v1984_v3 = vmul.f32 %v4264_v1, %v1983_v32  ;;  %v2819_v2 = vadd.f32 %v6749_v26, %v2818_v36  ;;  %vm2821_vm14 = vweird.f32 %v6749_v26  ;;  %v4569_v1 = vld [vmem:[%s4696_s8 + $0x1c0] sm:$0xff] }
 0x239   : > { %v2861_v58 = vmul.f32 %v4270_v27, %v6756_v52  ;;  %v1968_v16 = vmul.f32 %v6784_v12, %v6744_v54  ;;  %vm2865_vm15 = vweird.f32 %v6756_v52  ;;  %4273 = vrcp.f32 %v6797_v48  ;;  %vm6820_vm3 = vmor %vm2820_vm10, %vm2821_vm14 }
 0x23a   : > { %vm1988_vm1 = vcmp.eq.f32.partialorder %v6703_v21, 0.0  ;;  %v1989_v10 = vand.u32 2147483648, %v6703_v21  ;;  %vm6811_vm2 = vcmp.eq.f32.partialorder %v2869_v23, 8.507059e+37  ;;  %v2002_v36 = vsel %vm2000_vm11, %v2001_v61, %v1999_v30 }
 0x23b   : > { %v2862_v45 = vsub.f32 1.0, %v2861_v58  ;;  %v1720_v57 = vmul.f32 %v4568_v0, %v4568_v0  ;;  %v2872_v29 = vor.u32 1.1754944e-38, %v2871_v55  ;;  %v2856_v17 = vand.u32 2147483648, %v6780_v50 }
 0x23c   : > { %v2693_v58 = vmul.f32 %v2002_v36, %v5686_v33  ;;  %v1985_v23 = vmul.f32 %v1984_v3, %v6703_v21  ;;  %v2823_v56 = vsel %vm6820_vm3, %v6749_v26, %v2819_v2  ;;  %vm2866_vm4 = vweird.f32 %v4270_v27 }
 0x23d   : > { %v4272_v25 = vpop.eup %4271  ;;  %v2863_v61 = vmul.f32 %v4270_v27, %v2862_v45  ;;  %v1969_v8 = vmul.f32 %v6784_v12, %v1968_v16  ;;  %vm2850_vm5 = vweird.f32 %v6780_v50  ;;  %v1898_v26 = vsel %vm9108_vm0, %v1720_v57, 0.0  ;;  %vm2867_vm6 = vmor %vm2865_vm15, %vm2866_vm4 }
 0x23e   : > { %v2846_v30 = vmul.f32 %v4272_v25, %v6780_v50  ;;  %v6833_v55 = vmax.f32 %v2693_v58, 1e-08  ;;  %v1987_v33 = vsel %vm1986_vm13, %v6703_v21, %v1985_v23  ;;  %v2828_v16 = vsel %vm6789_vm12, %v2827_v47, %v2823_v56  ;;  %1899 = vadd.xlane.f32.xlu2 %v1898_v26  ;;  %v6854_v47 = vpop.xlane.xlu2 %1755 }
 0x23f   : > { %v2864_v3 = vadd.f32 %v4270_v27, %v2863_v61  ;;  %v1990_v36 = vsel %vm1988_vm1, %v1989_v10, %v1987_v33  ;;  %v1970_v0 = vmul.f32 0.5, %v1969_v8  ;;  %v4274_v2 = vpop.eup %4273  ;;  %v2854_v32 = vand.u32 2147483647, %v6780_v50  ;;  %v9285_v61 = vld [vmem:[#allocation14_spill] sm:$0xff] }
 0x240   : > { %v2847_v45 = vsub.f32 1.0, %v2846_v30  ;;  %v2857_v58 = vor.u32 1.1754944e-38, %v2856_v17  ;;  %vm3844_vm7 = vcmask 130112   ;;  %vm2851_vm8 = vweird.f32 %v4272_v25 }
 0x241   : > { %v2868_v23 = vsel %vm2867_vm6, %v4270_v27, %v2864_v3  ;;  %v2831_v21 = vmul.f32 %v4274_v2, %v6797_v48  ;;  %v2839_v10 = vand.u32 2147483647, %v6797_v48  ;;  %vm1974_vm9 = vcmp.eq.f32.partialorder %v6744_v54, inf  ;;  %vm2852_vm12 = vmor %vm2850_vm5, %vm2851_vm8 }
 0x242   : > { %vm1552_vm10 = vcmp.eq.f32.partialorder %v6328_v13, 0.0  ;;  %v2873_v52 = vsel %vm6811_vm2, %v2872_v29, %v2868_v23  ;;  %v2848_v24 = vmul.f32 %v4272_v25, %v2847_v45  ;;  %4275 = vrcp.f32 %v6833_v55  ;;  %v9286_v23 = vld [vmem:[#allocation9_spill] sm:$0xff] }
 0x243   : > { %v2692_v17 = vmul.f32 %v1990_v36, %v5696_v4  ;;  %v2832_v27 = vsub.f32 1.0, %v2831_v21  ;;  %vm2836_vm11 = vweird.f32 %v4274_v2  ;;  %v2841_v57 = vand.u32 2147483648, %v6797_v48  ;;  %v4570_v36 = vld [vmem:[%s4696_s8 + $0x148] sm:$0xff] }
 0x244   : > { %v1971_v56 = vsub.f32 1.5, %v1970_v0  ;;  %v2874_v8 = vmul.f32 %v2873_v52, %v9285_v61  ;;  %v2849_v30 = vadd.f32 %v4272_v25, %v2848_v24  ;;  %v1719_v29 = vmul.f32 %v4569_v1, %v4569_v1 }
 0x245   : > { %v6858_v33 = vmax.f32 %v2692_v17, 1e-08  ;;  %v2833_v3 = vmul.f32 %v4274_v2, %v2832_v27  ;;  %v1704_v26 = vmul.f32 %v4570_v36, %v4570_v36  ;;  %4277 = vrsqrt.f32 %v6854_v47  ;;  %v9287_v17 = vld [vmem:[#allocation8_spill] sm:$0xff] }
 0x246   : > { %v1972_v4 = vmul.f32 %v6784_v12, %v1971_v56  ;;  %v2853_v45 = vsel %vm2852_vm12, %v4272_v25, %v2849_v30  ;;  %vm2855_vm13 = vcmp.eq.f32.partialorder %v2854_v32, 8.507059e+37  ;;  %v1977_v0 = vand.u32 2147483648, %v6744_v54  ;;  %v9289_v30 = vld [vmem:[#allocation15_spill] sm:$0xff] }
 0x247   : > { %4279 = vrcp.f32 %v6858_v33  ;;  %v2829_v21 = vmul.f32 %v2828_v16, %v9286_v23  ;;  %v2858_v52 = vsel %vm2855_vm13, %v2857_v58, %v2853_v45  ;;  %v2834_v24 = vadd.f32 %v4274_v2, %v2833_v3 }
 0x248   : > { %vm2835_vm14 = vweird.f32 %v6797_v48  ;;  %v6871_v50 = vpop.eup %4275  ;;  %vm1538_vm15 = vcmp.eq.f32.partialorder %v6346_v46, inf  ;;  %v3847_v12 = vperm.slane %v2874_v8, %v6774_v14  ;;  %v2859_v27 = vmul.f32 %v2858_v52, %v9287_v17 }
 0x249   : > { %vm2837_vm1 = vmor %vm2835_vm14, %vm2836_vm11  ;;  %v2842_v25 = vor.u32 1.1754944e-38, %v2841_v57  ;;  %v1973_v32 = vmul.f32 %v1972_v4, %v6744_v54  ;;  %vm2840_vm2 = vcmp.eq.f32.partialorder %v2839_v10, 8.507059e+37  ;;  %v1895_v16 = vsel %vm9108_vm0, %v1719_v29, 0.0  ;;  %v6895_v4 = vpop.xlane.xlu1 %1752 }
 0x24a   : > { %v2838_v56 = vsel %vm2837_vm1, %v4274_v2, %v2834_v24  ;;  %v1850_v58 = vsel %vm9108_vm0, %v1704_v26, 0.0  ;;  %v3846_v48 = vperm.slane %v2859_v27, %v6734_v49  ;;  %vm1976_vm3 = vcmp.eq.f32.partialorder %v6744_v54, 0.0  ;;  %1896 = vadd.xlane.f32.xlu1 %v1895_v16 }
 0x24b   : > { %v2843_v61 = vsel %vm2840_vm2, %v2842_v25, %v2838_v56  ;;  %v1975_v8 = vsel %vm1974_vm9, %v6744_v54, %v1973_v32  ;;  %1851 = vadd.xlane.f32.xlu0 %v1850_v58  ;;  %v4278_v57 = vpop.eup %4277  ;;  %v9288_v2 = vand.u32 2147483648, %v6328_v13  ;;  %v2906_v29 = vmul.f32 %v6871_v50, %v6833_v55  ;;  %v6921_v25 = vpop.xlane.xlu0 %1749 }
 0x24c   : > { %v2844_v1 = vmul.f32 %v2843_v61, %v9289_v30  ;;  %v1978_v3 = vsel %vm1976_vm3, %v1977_v0, %v1975_v8  ;;  %v1537_v54 = vmul.f32 %v6725_v60, %v6346_v46  ;;  %v3848_v26 = vsel %vm3844_vm7, %v3847_v12, %v3846_v48  ;;  %v6946_v30 = vpop.xlane.xlu2 %1764 }
 0x24d   : > { %v6890_v10 = vsel %vm1552_vm10, %v9288_v2, %v6722_v5  ;;  %v6897_v36 = vpop.eup %4279  ;;  %v2691_v45 = vmul.f32 %v1978_v3, %v5596_v9  ;;  %v2028_v13 = vmul.f32 %v4278_v57, %v6854_v47  ;;  %v3841_v5 = vperm.slane %v2829_v21, %v6734_v49 }
 0x24e   : > { %vm3939_vm4 = vcmask 1041409   ;;  %v3843_v23 = vperm.slane %v2844_v1, %v6774_v14  ;;  %v2891_v0 = vmul.f32 %v6897_v36, %v6858_v33  ;;  %v6910_v52 = vmul.f32 %v6697_v51, %v6430_v44 }
 0x24f   : > { %v6912_v24 = vmax.f32 %v2691_v45, 1e-08  ;;  %v2029_v60 = vmul.f32 %v4278_v57, %v2028_v13  ;;  %4281 = vrsqrt.f32 %v6895_v4  ;;  %v9290_v9 = vsub.f32 1.5, %v6700_v18  ;;  %v4571_v45 = vld [vmem:[%s4696_s8 + $0x1d0] sm:$0xff] }
 0x250   : > { %v3845_v21 = vsel %vm3844_vm7, %v3843_v23, %v3841_v5  ;;  %v2907_v17 = vsub.f32 1.0, %v2906_v29  ;;  %v2892_v27 = vsub.f32 1.0, %v2891_v0  ;;  %v2899_v56 = vand.u32 2147483647, %v6858_v33  ;;  %v4572_v5 = vld [vmem:[%s4696_s8 + $0x158] sm:$0xff] }
 0x251   : > { %v6918_v12 = vmul.f32 %v6626_v43, %v9290_v9  ;;  %v6924_v32 = vsel %vm3939_vm4, %v3848_v26, %v3845_v21  ;;  %v2901_v16 = vand.u32 2147483648, %v6858_v33  ;;  %4283 = vrcp.f32 %v6912_v24  ;;  %v4573_v21 = vld [vmem:[%s4696_s8 + $0x150] sm:$0xff] }
 0x252   : > { %v6932_v18 = vsel %vm1538_vm15, %v6346_v46, %v1537_v54  ;;  %v6935_v43 = vmul.f32 0.5, %v6732_v31  ;;  %4285 = vrsqrt.f32 %v6486_v22  ;;  %v2893_v58 = vmul.f32 %v6897_v36, %v2892_v27 }
 0x253   : > { %vm2896_vm5 = vweird.f32 %v6897_v36  ;;  %v2030_v61 = vmul.f32 0.5, %v2029_v60  ;;  %4287 = vrsqrt.f32 %v6921_v25  ;;  %v2908_v8 = vmul.f32 %v6871_v50, %v2907_v17 }
 0x254   : > { %v2894_v31 = vadd.f32 %v6897_v36, %v2893_v58  ;;  %vm2895_vm6 = vweird.f32 %v6858_v33  ;;  %vm6948_vm8 = vcmp.eq.f32.partialorder %v2899_v56, 8.507059e+37  ;;  %v2902_v3 = vor.u32 1.1754944e-38, %v2901_v16 }
 0x255   : > { %v4282_v1 = vpop.eup %4281  ;;  %v2031_v54 = vsub.f32 1.5, %v2030_v61  ;;  %vm2034_vm9 = vcmp.eq.f32.partialorder %v6854_v47, inf  ;;  %vm6953_vm10 = vmor %vm2895_vm6, %vm2896_vm5  ;;  %vm2036_vm11 = vcmp.eq.f32.partialorder %v6854_v47, 0.0  ;;  %v1721_v13 = vmul.f32 %v4571_v45, %v4571_v45 }
 0x256   : > { %v2016_v33 = vmul.f32 %v4282_v1, %v6895_v4  ;;  %v1706_v23 = vmul.f32 %v4572_v5, %v4572_v5  ;;  %vm2911_vm12 = vweird.f32 %v6871_v50  ;;  %v2898_v60 = vsel %vm6953_vm10, %v6897_v36, %v2894_v31 }
 0x257   : > { %v4284_v0 = vpop.eup %4283  ;;  %v2032_v9 = vmul.f32 %v4278_v57, %v2031_v54  ;;  %v1705_v17 = vmul.f32 %v4573_v21, %v4573_v21  ;;  %4289 = vrsqrt.f32 %v6946_v30  ;;  %v6970_v56 = vadd.f32 %v6871_v50, %v2908_v8  ;;  %v6983_v21 = vpop.xlane.xlu1 %1761 }
 0x258   : > { %v6967_v27 = vpop.eup %4285  ;;  %v2876_v16 = vmul.f32 %v4284_v0, %v6912_v24  ;;  %v2037_v58 = vand.u32 2147483648, %v6854_v47  ;;  %v2017_v61 = vmul.f32 %v4282_v1, %v2016_v33  ;;  %vm2910_vm13 = vweird.f32 %v6833_v55 }
 0x259   : > { %v4288_v45 = vpop.eup %4287  ;;  %v2033_v36 = vmul.f32 %v2032_v9, %v6854_v47  ;;  %vm2022_vm14 = vcmp.eq.f32.partialorder %v6895_v4, inf  ;;  %v1901_v57 = vsel %vm9108_vm0, %v1721_v13, 0.0  ;;  %v1856_v31 = vsel %vm9108_vm0, %v1706_v23, 0.0 }
 0x25a   : > { %v1853_v54 = vsel %vm9108_vm0, %v1705_v17, 0.0  ;;  %v2903_v8 = vsel %vm6948_vm8, %v2902_v3, %v2898_v60  ;;  %v2877_v26 = vsub.f32 1.0, %v2876_v16  ;;  %v2018_v5 = vmul.f32 0.5, %v2017_v61  ;;  %1902 = vadd.xlane.f32.xlu2 %v1901_v57  ;;  %1857 = vadd.xlane.f32.xlu1 %v1856_v31  ;;  %v6992_v16 = vpop.xlane.xlu0 %1758  ;;  %v9295_v57 = vld [vmem:[#allocation13_spill] sm:$0xff]  ;;  %vm7011_vm8 = vmor %vm2910_vm13, %vm2911_vm12 }
 0x25b   : > { %v2004_v33 = vmul.f32 %v4288_v45, %v6921_v25  ;;  %vm2881_vm15 = vweird.f32 %v4284_v0  ;;  %v2884_v9 = vand.u32 2147483647, %v6912_v24  ;;  %v2886_v13 = vand.u32 2147483648, %v6912_v24  ;;  %1854 = vadd.xlane.f32.xlu0 %v1853_v54 }
 0x25c   : > { %v2035_v23 = vsel %vm2034_vm9, %v6854_v47, %v2033_v36  ;;  %vm9107_vm1 = vcmask 1042434   ;;  %v2878_v29 = vmul.f32 %v4284_v0, %v2877_v26  ;;  %v2019_v60 = vsub.f32 1.5, %v2018_v5 }
 0x25d   : > { %v2038_v3 = vsel %vm2036_vm11, %v2037_v58, %v2035_v23  ;;  %v2005_v17 = vmul.f32 %v4288_v45, %v2004_v33  ;;  %v4290_v61 = vpop.eup %4289  ;;  %v2904_v31 = vmul.f32 %v2903_v8, %v9295_v57  ;;  %vm2880_vm2 = vweird.f32 %v6912_v24 }
 0x25e   : > { %v2696_v48 = vmul.f32 %v2038_v3, %v5763_v62  ;;  %4291 = vrsqrt.f32 %v6983_v21  ;;  %v2879_v36 = vadd.f32 %v4284_v0, %v2878_v29  ;;  %v2020_v54 = vmul.f32 %v4282_v1, %v2019_v60  ;;  %vm2882_vm3 = vmor %vm2880_vm2, %vm2881_vm15 }
 0x25f   : > { %v2006_v2 = vmul.f32 0.5, %v2005_v17  ;;  %v2064_v26 = vmul.f32 %v4290_v61, %v6946_v30  ;;  %vm2885_vm5 = vcmp.eq.f32.partialorder %v2884_v9, 8.507059e+37  ;;  %v2887_v47 = vor.u32 1.1754944e-38, %v2886_v13  ;;  %v9298_v9 = vld [vmem:[#allocation7_spill] sm:$0xff] }
 0x260   : > { %v7000_v58 = vmax.f32 %v2696_v48, 1e-08  ;;  %4293 = vrsqrt.f32 %v6992_v16  ;;  %v2883_v8 = vsel %vm2882_vm3, %v4284_v0, %v2879_v36  ;;  %v2021_v24 = vmul.f32 %v2020_v54, %v6895_v4  ;;  %v9300_v54 = vld [vmem:[#allocation6_spill] sm:$0xff] }
 0x261   : > { %v2007_v5 = vsub.f32 1.5, %v2006_v2  ;;  %v2065_v62 = vmul.f32 %v4290_v61, %v2064_v26  ;;  %v2888_v33 = vsel %vm2885_vm5, %v2887_v47, %v2883_v8  ;;  %vm2024_vm6 = vcmp.eq.f32.partialorder %v6895_v4, 0.0 }
 0x262   : > { %4295 = vrcp.f32 %v7000_v58  ;;  %v2025_v1 = vand.u32 2147483648, %v6895_v4  ;;  %v3850_v0 = vperm.slane %v2904_v31, %v6774_v14  ;;  %v2889_v2 = vmul.f32 %v2888_v33, %v9298_v9 }
 0x263   : > { %v2023_v13 = vsel %vm2022_vm14, %v6895_v4, %v2021_v24  ;;  %v2008_v23 = vmul.f32 %v4288_v45, %v2007_v5  ;;  %v9299_v60 = vand.u32 2147483648, %v6833_v55  ;;  %v2066_v36 = vmul.f32 0.5, %v2065_v62 }
 0x264   : > { %v4292_v29 = vpop.eup %4291  ;;  %v2026_v57 = vsel %vm2024_vm6, %v2025_v1, %v2023_v13  ;;  %v3849_v31 = vperm.slane %v2889_v2, %v6734_v49  ;;  %vm2010_vm9 = vcmp.eq.f32.partialorder %v6921_v25, inf  ;;  %vm2012_vm10 = vcmp.eq.f32.partialorder %v6921_v25, 0.0 }
 0x265   : > { %v7026_v17 = vor.u32 1.1754944e-38, %v9299_v60  ;;  %v2695_v26 = vmul.f32 %v2026_v57, %v9300_v54  ;;  %v2009_v47 = vmul.f32 %v2008_v23, %v6921_v25  ;;  %v2013_v45 = vand.u32 2147483648, %v6921_v25 }
 0x266   : > { %v7032_v4 = vpop.eup %4293  ;;  %v2067_v8 = vsub.f32 1.5, %v2066_v36  ;;  %v2052_v24 = vmul.f32 %v4292_v29, %v6983_v21  ;;  %v3851_v5 = vsel %vm3844_vm7, %v3850_v0, %v3849_v31  ;;  %vm2070_vm11 = vcmp.eq.f32.partialorder %v6946_v30, inf  ;;  %v9301_v0 = vld [vmem:[#allocation11_spill] sm:$0xff] }
 0x267   : > { %v7038_v62 = vmax.f32 %v2695_v26, 1e-08  ;;  %v2011_v33 = vsel %vm2010_vm9, %v6921_v25, %v2009_v47  ;;  %v2040_v1 = vmul.f32 %v7032_v4, %v6992_v16  ;;  %v7045_v2 = vsel %vm9107_vm1, %v3851_v5, %v6924_v32 }
 0x268   : > { %v4296_v9 = vpop.eup %4295  ;;  %v2014_v13 = vsel %vm2012_vm10, %v2013_v45, %v2011_v33  ;;  %v2068_v23 = vmul.f32 %v4290_v61, %v2067_v8  ;;  %v2053_v60 = vmul.f32 %v4292_v29, %v2052_v24  ;;  %vm2072_vm12 = vcmp.eq.f32.partialorder %v6946_v30, 0.0 }
 0x269   : > { %v2951_v57 = vmul.f32 %v4296_v9, %v7000_v58  ;;  %4297 = vrcp.f32 %v7038_v62  ;;  %v2959_v25 = vand.u32 2147483647, %v7000_v58  ;;  %v2694_v36 = vmul.f32 %v2014_v13, %v9301_v0 }
 0x26a   : > { %v2069_v31 = vmul.f32 %v2068_v23, %v6946_v30  ;;  %v2073_v32 = vand.u32 2147483648, %v6946_v30  ;;  %v2054_v26 = vmul.f32 0.5, %v2053_v60  ;;  %vm2058_vm13 = vcmp.eq.f32.partialorder %v6983_v21, inf }
 0x26b   : > { %v2952_v54 = vsub.f32 1.0, %v2951_v57  ;;  %v2061_v61 = vand.u32 2147483648, %v6983_v21  ;;  %v2041_v47 = vmul.f32 %v7032_v4, %v2040_v1  ;;  %vm2956_vm14 = vweird.f32 %v4296_v9 }
 0x26c   : > { %v2961_v45 = vand.u32 2147483648, %v7000_v58  ;;  %v7059_v8 = vmax.f32 %v2694_v36, 1e-08  ;;  %v2071_v24 = vsel %vm2070_vm11, %v6946_v30, %v2069_v31  ;;  %v2055_v13 = vsub.f32 1.5, %v2054_v26 }
 0x26d   : > { %v2953_v5 = vmul.f32 %v4296_v9, %v2952_v54  ;;  %v2074_v33 = vsel %vm2072_vm12, %v2073_v32, %v2071_v24  ;;  %vm2060_vm15 = vcmp.eq.f32.partialorder %v6983_v21, 0.0  ;;  %v2042_v23 = vmul.f32 0.5, %v2041_v47 }
 0x26e   : > { %vm2955_vm2 = vweird.f32 %v7000_v58  ;;  %vm7064_vm3 = vcmp.eq.f32.partialorder %v2959_v25, 8.507059e+37  ;;  %v2944_v1 = vand.u32 2147483647, %v7038_v62  ;;  %4299 = vrcp.f32 %v7059_v8 }
 0x26f   : > { %v4298_v57 = vpop.eup %4297  ;;  %v2954_v0 = vadd.f32 %v4296_v9, %v2953_v5  ;;  %v2946_v30 = vand.u32 2147483648, %v7038_v62  ;;  %v2699_v36 = vmul.f32 %v2074_v33, %v5832_v38  ;;  %v2056_v31 = vmul.f32 %v4292_v29, %v2055_v13  ;;  %vm2957_vm6 = vmor %vm2955_vm2, %vm2956_vm14  ;;  %v4574_v13 = vld [vmem:[%s4696_s8 + $0x168] sm:$0xff] }
 0x270   : > { %vm2046_vm5 = vcmp.eq.f32.partialorder %v6992_v16, inf  ;;  %v2962_v58 = vor.u32 1.1754944e-38, %v2961_v45  ;;  %v2936_v25 = vmul.f32 %v4298_v57, %v7038_v62  ;;  %vm2048_vm9 = vcmp.eq.f32.partialorder %v6992_v16, 0.0 }
 0x271   : > { %v2049_v32 = vand.u32 2147483648, %v6992_v16  ;;  %v9304_v54 = vand.u32 2147483647, %v6833_v55  ;;  %v2958_v38 = vsel %vm2957_vm6, %v4296_v9, %v2954_v0  ;;  %v7083_v29 = vmax.f32 %v2699_v36, 1e-08  ;;  %v4575_v0 = vld [vmem:[%s4696_s8 + $0x160] sm:$0xff] }
 0x272   : > { %v2057_v47 = vmul.f32 %v2056_v31, %v6983_v21  ;;  %v2043_v24 = vsub.f32 1.5, %v2042_v23  ;;  %v2963_v45 = vsel %vm7064_vm3, %v2962_v58, %v2958_v38  ;;  %v2937_v5 = vsub.f32 1.0, %v2936_v25 }
 0x273   : > { %vm7079_vm10 = vcmp.eq.f32.partialorder %v9304_v54, 8.507059e+37  ;;  %vm2940_vm11 = vweird.f32 %v7038_v62  ;;  %vm7089_vm12 = vcmp.eq.f32.partialorder %v2944_v1, 8.507059e+37  ;;  %v2947_v55 = vor.u32 1.1754944e-38, %v2946_v30  ;;  %v9309_v1 = vld [vmem:[#allocation27_spill] sm:$0xff] }
 0x274   : > { %4301 = vrcp.f32 %v7083_v29  ;;  %v1708_v9 = vmul.f32 %v4574_v13, %v4574_v13  ;;  %v1707_v36 = vmul.f32 %v4575_v0, %v4575_v0  ;;  %v4300_v54 = vpop.eup %4299  ;;  %v2938_v31 = vmul.f32 %v4298_v57, %v2937_v5  ;;  %v7105_v13 = vpop.xlane.xlu2 %1773 }
 0x275   : > { %vm2941_vm14 = vweird.f32 %v4298_v57  ;;  %v2059_v23 = vsel %vm2058_vm13, %v6983_v21, %v2057_v47  ;;  %v2044_v60 = vmul.f32 %v7032_v4, %v2043_v24  ;;  %vm1540_vm2 = vcmp.eq.f32.partialorder %v6346_v46, 0.0  ;;  %v4576_v21 = vld [vmem:[%s4696_s8 + $0x1d8] sm:$0xff] }
 0x276   : > { %v2964_v58 = vmul.f32 %v2963_v45, %v9309_v1  ;;  %v2921_v30 = vmul.f32 %v4300_v54, %v7059_v8  ;;  %v2929_v25 = vand.u32 2147483647, %v7059_v8  ;;  %v2931_v38 = vand.u32 2147483648, %v7059_v8  ;;  %vm2942_vm13 = vmor %vm2940_vm11, %vm2941_vm14 }
 0x277   : > { %v2939_v5 = vadd.f32 %v4298_v57, %v2938_v31  ;;  %vm2926_vm3 = vweird.f32 %v4300_v54  ;;  %v2062_v47 = vsel %vm2060_vm15, %v2061_v61, %v2059_v23  ;;  %v2045_v4 = vmul.f32 %v2044_v60, %v6992_v16 }
 0x278   : > { %v2922_v24 = vsub.f32 1.0, %v2921_v30  ;;  %v2698_v45 = vmul.f32 %v2062_v47, %v5838_v37  ;;  %v1862_v0 = vsel %vm9108_vm0, %v1708_v9, 0.0  ;;  %v1859_v1 = vsel %vm9108_vm0, %v1707_v36, 0.0 }
 0x279   : > { %v2943_v3 = vsel %vm2942_vm13, %v4298_v57, %v2939_v5  ;;  %v2047_v31 = vsel %vm2046_vm5, %v6992_v16, %v2045_v4  ;;  %1863 = vadd.xlane.f32.xlu2 %v1862_v0  ;;  %1860 = vadd.xlane.f32.xlu1 %v1859_v1  ;;  %v1722_v61 = vmul.f32 %v4576_v21, %v4576_v21  ;;  %4303 = vrsqrt.f32 %v7105_v13  ;;  %v9311_v5 = vld [vmem:[#allocation19_spill] sm:$0xff]  ;;  %v9315_v1 = vld [vmem:[#allocation20_spill] sm:$0xff] }
 0x27a   : > { %v7120_v62 = vpop.eup %4301  ;;  %v2948_v37 = vsel %vm7089_vm12, %v2947_v55, %v2943_v3  ;;  %v2923_v23 = vmul.f32 %v4300_v54, %v2922_v24  ;;  %v7124_v9 = vmax.f32 %v2698_v45, 1e-08  ;;  %v2050_v57 = vsel %vm2048_vm9, %v2049_v32, %v2047_v31  ;;  %v9312_v3 = vld [vmem:[#allocation12_spill] sm:$0xff]  ;;  %v9313_v32 = vld [vmem:[#allocation21_spill] sm:$0xff] }
 0x27b   : > { %v9310_v36 = vsel %vm7011_vm8, %v6871_v50, %v6970_v56  ;;  %v3856_v30 = vperm.slane %v2964_v58, %v6774_v14  ;;  %v2949_v33 = vmul.f32 %v2948_v37, %v9311_v5  ;;  %v2697_v55 = vmul.f32 %v2050_v57, %v9312_v3  ;;  %v7183_v5 = vpop.xlane.xlu0 %1767 }
 0x27c   : > { %v2918_v60 = vsel %vm7079_vm10, %v7026_v17, %v9310_v36  ;;  %v7141_v47 = vmul.f32 %v6697_v51, %v6910_v52  ;;  %v2924_v16 = vadd.f32 %v4300_v54, %v2923_v23  ;;  %vm2925_vm15 = vweird.f32 %v7059_v8 }
 0x27d   : > { %4305 = vrcp.f32 %v7124_v9  ;;  %v3855_v50 = vperm.slane %v2949_v33, %v6734_v49  ;;  %vm2927_vm8 = vmor %vm2925_vm15, %vm2926_vm3  ;;  %v2932_v56 = vor.u32 1.1754944e-38, %v2931_v38  ;;  %v2996_v48 = vmul.f32 %v7120_v62, %v7083_v29 }
 0x27e   : > { %v7149_v17 = vmax.f32 %v2697_v55, 1e-08  ;;  %v2919_v26 = vmul.f32 %v2918_v60, %v9313_v32  ;;  %v2928_v58 = vsel %vm2927_vm8, %v4300_v54, %v2924_v16  ;;  %vm2930_vm5 = vcmp.eq.f32.partialorder %v2929_v25, 8.507059e+37  ;;  %v7165_v54 = vpop.xlane.xlu1 %1770 }
 0x27f   : > { %v1904_v52 = vsel %vm9108_vm0, %v1722_v61, 0.0  ;;  %v4304_v4 = vpop.eup %4303  ;;  %v9314_v8 = vand.u32 2147483648, %v6346_v46  ;;  %v7162_v38 = vmul.f32 %v6918_v12, %v6377_v42  ;;  %v3857_v45 = vsel %vm3844_vm7, %v3856_v30, %v3855_v50 }
 0x280   : > { %v2933_v0 = vsel %vm2930_vm5, %v2932_v56, %v2928_v58  ;;  %1905 = vadd.xlane.f32.xlu0 %v1904_v52  ;;  %v2989_v21 = vand.u32 2147483647, %v7124_v9  ;;  %4307 = vrcp.f32 %v7149_v17  ;;  %v7173_v46 = vmul.f32 %v6738_v59, %v6465_v19 }
 0x281   : > { %v7158_v24 = vsel %vm1540_vm2, %v9314_v8, %v6932_v18  ;;  %v2934_v31 = vmul.f32 %v2933_v0, %v9315_v1  ;;  %v2997_v12 = vsub.f32 1.0, %v2996_v48  ;;  %v2991_v18 = vand.u32 2147483648, %v7124_v9  ;;  %v7203_v0 = vpop.xlane.xlu2 %1782 }
 0x282   : > { %v2100_v61 = vmul.f32 %v4304_v4, %v7105_v13  ;;  %v3852_v23 = vperm.slane %v2919_v26, %v6734_v49  ;;  %vm3943_vm6 = vcmask 1043459   ;;  %4309 = vrsqrt.f32 %v7165_v54 }
 0x283   : > { %v4306_v37 = vpop.eup %4305  ;;  %v3853_v57 = vperm.slane %v2934_v31, %v6774_v14  ;;  %vm3945_vm9 = vcmask 1044484   ;;  %vm2985_vm10 = vweird.f32 %v7124_v9  ;;  %vm7187_vm11 = vcmp.eq.f32.partialorder %v2989_v21, 8.507059e+37 }
 0x284   : > { %v2981_v30 = vmul.f32 %v4306_v37, %v7124_v9  ;;  %v2101_v55 = vmul.f32 %v4304_v4, %v2100_v61  ;;  %v2998_v50 = vmul.f32 %v7120_v62, %v2997_v12  ;;  %v2992_v48 = vor.u32 1.1754944e-38, %v2991_v18 }
 0x285   : > { %v3854_v33 = vsel %vm3844_vm7, %v3853_v57, %v3852_v23  ;;  %vm2106_vm12 = vcmp.eq.f32.partialorder %v7105_v13, inf  ;;  %vm2970_vm14 = vweird.f32 %v7149_v17  ;;  %4311 = vrsqrt.f32 %v7183_v5  ;;  %v4577_v23 = vld [vmem:[%s4696_s8 + $0x170] sm:$0xff] }
 0x286   : > { %v3944_v16 = vsel %vm3943_vm6, %v3854_v33, %v7045_v2  ;;  %v2982_v56 = vsub.f32 1.0, %v2981_v30  ;;  %v4308_v32 = vpop.eup %4307  ;;  %v2102_v58 = vmul.f32 0.5, %v2101_v55  ;;  %vm3001_vm2 = vweird.f32 %v7120_v62  ;;  %v4578_v33 = vld [vmem:[%s4696_s8 + $0x1e8] sm:$0xff] }
 0x287   : > { %v7196_v26 = vsel %vm3945_vm9, %v3857_v45, %v3944_v16  ;;  %vm2986_vm3 = vweird.f32 %v4306_v37  ;;  %v2966_v2 = vmul.f32 %v4308_v32, %v7149_v17  ;;  %v2974_v8 = vand.u32 2147483647, %v7149_v17  ;;  %v4579_v16 = vld [vmem:[%s4696_s8 + $0x1e0] sm:$0xff] }
 0x288   : > { %v2983_v52 = vmul.f32 %v4306_v37, %v2982_v56  ;;  %v4310_v45 = vpop.eup %4309  ;;  %vm2971_vm13 = vweird.f32 %v4308_v32  ;;  %v2976_v1 = vand.u32 2147483648, %v7149_v17  ;;  %v2103_v31 = vsub.f32 1.5, %v2102_v58  ;;  %vm2987_vm8 = vmor %vm2985_vm10, %vm2986_vm3 }
 0x289   : > { %v2109_v21 = vand.u32 2147483648, %v7105_v13  ;;  %vm3000_vm15 = vweird.f32 %v7083_v29  ;;  %v2967_v18 = vsub.f32 1.0, %v2966_v2  ;;  %v2088_v61 = vmul.f32 %v4310_v45, %v7165_v54  ;;  %vm2972_vm10 = vmor %vm2970_vm14, %vm2971_vm13 }
 0x28a   : > { %v2984_v12 = vadd.f32 %v4306_v37, %v2983_v52  ;;  %v1709_v57 = vmul.f32 %v4577_v23, %v4577_v23  ;;  %v2104_v30 = vmul.f32 %v4304_v4, %v2103_v31  ;;  %v1724_v55 = vmul.f32 %v4578_v33, %v4578_v33  ;;  %v9318_v33 = vld [vmem:[#allocation25_spill] sm:$0xff] }
 0x28b   : > { %v1723_v56 = vmul.f32 %v4579_v16, %v4579_v16  ;;  %4313 = vrsqrt.f32 %v7203_v0  ;;  %vm3947_vm5 = vcmask 1045509   ;;  %v2968_v25 = vmul.f32 %v4308_v32, %v2967_v18  ;;  %v4312_v60 = vpop.eup %4311 }
 0x28c   : > { %v2988_v58 = vsel %vm2987_vm8, %v4306_v37, %v2984_v12  ;;  %v2089_v52 = vmul.f32 %v4310_v45, %v2088_v61  ;;  %v1865_v2 = vsel %vm9108_vm0, %v1709_v57, 0.0  ;;  %v2105_v9 = vmul.f32 %v2104_v30, %v7105_v13  ;;  %v7232_v61 = vpop.xlane.xlu1 %1779 }
 0x28d   : > { %v2993_v23 = vsel %vm7187_vm11, %v2992_v48, %v2988_v58  ;;  %1866 = vadd.xlane.f32.xlu2 %v1865_v2  ;;  %v1910_v4 = vsel %vm9108_vm0, %v1724_v55, 0.0  ;;  %v1907_v31 = vsel %vm9108_vm0, %v1723_v56, 0.0  ;;  %v2969_v36 = vadd.f32 %v4308_v32, %v2968_v25 }
 0x28e   : > { %v2994_v16 = vmul.f32 %v2993_v23, %v9318_v33  ;;  %v2090_v37 = vmul.f32 0.5, %v2089_v52  ;;  %v2076_v12 = vmul.f32 %v4312_v60, %v7183_v5  ;;  %1911 = vadd.xlane.f32.xlu1 %v1910_v4  ;;  %1908 = vadd.xlane.f32.xlu0 %v1907_v31  ;;  %v2999_v18 = vadd.f32 %v7120_v62, %v2998_v50 }
 0x28f   : > { %v2977_v3 = vor.u32 1.1754944e-38, %v2976_v1  ;;  %v2107_v48 = vsel %vm2106_vm12, %v7105_v13, %v2105_v9  ;;  %vm2108_vm11 = vcmp.eq.f32.partialorder %v7105_v13, 0.0  ;;  %v2973_v25 = vsel %vm2972_vm10, %v4308_v32, %v2969_v36  ;;  %v9319_v1 = vld [vmem:[#allocation26_spill] sm:$0xff]  ;;  %vm7243_vm12 = vmor %vm3000_vm15, %vm3001_vm2 }
 0x290   : > { %vm2975_vm3 = vcmp.eq.f32.partialorder %v2974_v8, 8.507059e+37  ;;  %v2110_v57 = vsel %vm2108_vm11, %v2109_v21, %v2107_v48  ;;  %v2091_v30 = vsub.f32 1.5, %v2090_v37  ;;  %v3859_v50 = vperm.slane %v2994_v16, %v6774_v14  ;;  %v7266_v16 = vpop.xlane.xlu0 %1776 }
 0x291   : > { %v4314_v55 = vpop.eup %4313  ;;  %v2978_v56 = vsel %vm2975_vm3, %v2977_v3, %v2973_v25  ;;  %v2702_v17 = vmul.f32 %v2110_v57, %v5901_v34  ;;  %v2077_v58 = vmul.f32 %v4312_v60, %v2076_v12  ;;  %4315 = vrsqrt.f32 %v7232_v61 }
 0x292   : > { %v2979_v52 = vmul.f32 %v2978_v56, %v9319_v1  ;;  %v2092_v2 = vmul.f32 %v4310_v45, %v2091_v30  ;;  %v2136_v23 = vmul.f32 %v4314_v55, %v7203_v0  ;;  %v9322_v36 = vand.u32 2147483647, %v7083_v29  ;;  %v9326_v56 = vld [vmem:[#allocation10_spill] sm:$0xff] }
 0x293   : > { %v9325_v32 = vand.u32 2147483648, %v7083_v29  ;;  %v7255_v45 = vmax.f32 %v2702_v17, 1e-08  ;;  %v2078_v21 = vmul.f32 0.5, %v2077_v58  ;;  %v3003_v9 = vsel %vm7243_vm12, %v7120_v62, %v2999_v18 }
 0x294   : > { %vm7249_vm14 = vcmp.eq.f32.partialorder %v9322_v36, 8.507059e+37  ;;  %v3858_v4 = vperm.slane %v2979_v52, %v6734_v49  ;;  %v2093_v31 = vmul.f32 %v2092_v2, %v7165_v54  ;;  %v2137_v33 = vmul.f32 %v4314_v55, %v2136_v23  ;;  %v4580_v2 = vld [vmem:[%s4696_s8 + $0x1f8] sm:$0xff] }
 0x295   : > { %v3007_v8 = vor.u32 1.1754944e-38, %v9325_v32  ;;  %4317 = vrcp.f32 %v7255_v45  ;;  %vm2094_vm2 = vcmp.eq.f32.partialorder %v7165_v54, inf  ;;  %vm2096_vm13 = vcmp.eq.f32.partialorder %v7165_v54, 0.0 }
 0x296   : > { %v2097_v29 = vand.u32 2147483648, %v7165_v54  ;;  %v3860_v37 = vsel %vm3844_vm7, %v3859_v50, %v3858_v4  ;;  %v2095_v12 = vsel %vm2094_vm2, %v7165_v54, %v2093_v31  ;;  %v2079_v62 = vsub.f32 1.5, %v2078_v21  ;;  %v4581_v4 = vld [vmem:[%s4696_s8 + $0x1f0] sm:$0xff] }
 0x297   : > { %v2138_v18 = vmul.f32 0.5, %v2137_v33  ;;  %v7271_v3 = vmul.f32 0.5, %v7141_v47  ;;  %v3008_v48 = vsel %vm7249_vm14, %v3007_v8, %v3003_v9  ;;  %v7277_v25 = vsel %vm3947_vm5, %v3860_v37, %v7196_v26  ;;  %v4316_v30 = vpop.eup %4315  ;;  %v4582_v33 = vld [vmem:[%s4696_s8 + $0x178] sm:$0xff] }
 0x298   : > { %v2098_v57 = vsel %vm2096_vm13, %v2097_v29, %v2095_v12  ;;  %v2080_v50 = vmul.f32 %v4312_v60, %v2079_v62  ;;  %4319 = vrsqrt.f32 %v7266_v16  ;;  %vm2082_vm15 = vcmp.eq.f32.partialorder %v7183_v5, inf }
 0x299   : > { %v2701_v17 = vmul.f32 %v2098_v57, %v9326_v56  ;;  %v2139_v58 = vsub.f32 1.5, %v2138_v18  ;;  %vm2084_vm8 = vcmp.eq.f32.partialorder %v7183_v5, 0.0  ;;  %v2085_v47 = vand.u32 2147483648, %v7183_v5  ;;  %v9327_v56 = vld [vmem:[#allocation17_spill] sm:$0xff] }
 0x29a   : > { %v2124_v54 = vmul.f32 %v4316_v30, %v7232_v61  ;;  %v2081_v26 = vmul.f32 %v2080_v50, %v7183_v5  ;;  %v1726_v60 = vmul.f32 %v4580_v2, %v4580_v2  ;;  %vm2142_vm10 = vcmp.eq.f32.partialorder %v7203_v0, inf }
 0x29b   : > { %v7285_v1 = vmax.f32 %v2701_v17, 1e-08  ;;  %v2140_v52 = vmul.f32 %v4314_v55, %v2139_v58  ;;  %v4318_v23 = vpop.eup %4317  ;;  %vm2144_vm11 = vcmp.eq.f32.partialorder %v7203_v0, 0.0  ;;  %v2145_v13 = vand.u32 2147483648, %v7203_v0  ;;  %v7296_v55 = vpop.xlane.xlu2 %1791 }
 0x29c   : > { %v2125_v36 = vmul.f32 %v4316_v30, %v2124_v54  ;;  %v3041_v34 = vmul.f32 %v4318_v23, %v7255_v45  ;;  %v3049_v32 = vand.u32 2147483647, %v7255_v45  ;;  %v3051_v8 = vand.u32 2147483648, %v7255_v45 }
 0x29d   : > { %4321 = vrcp.f32 %v7285_v1  ;;  %v2083_v21 = vsel %vm2082_vm15, %v7183_v5, %v2081_v26  ;;  %v2141_v9 = vmul.f32 %v2140_v52, %v7203_v0  ;;  %v1725_v31 = vmul.f32 %v4581_v4, %v4581_v4  ;;  %v9328_v52 = vld [vmem:[#allocation24_spill] sm:$0xff] }
 0x29e   : > { %v1710_v29 = vmul.f32 %v4582_v33, %v4582_v33  ;;  %v4320_v37 = vpop.eup %4319  ;;  %v3042_v12 = vsub.f32 1.0, %v3041_v34  ;;  %v2086_v62 = vsel %vm2084_vm8, %v2085_v47, %v2083_v21  ;;  %v2126_v18 = vmul.f32 0.5, %v2125_v36 }
 0x29f   : > { %v1916_v57 = vsel %vm9108_vm0, %v1726_v60, 0.0  ;;  %vm3046_vm3 = vweird.f32 %v4318_v23  ;;  %v2700_v17 = vmul.f32 %v2086_v62, %v9327_v56  ;;  %v2143_v50 = vsel %vm2142_vm10, %v7203_v0, %v2141_v9  ;;  %v9329_v0 = vld [vmem:[#allocation33_spill] sm:$0xff] }
 0x2a0   : > { %1917 = vadd.xlane.f32.xlu2 %v1916_v57  ;;  %4323 = vrsqrt.f32 %v7296_v55  ;;  %v3043_v58 = vmul.f32 %v4318_v23, %v3042_v12  ;;  %v2146_v54 = vsel %vm2144_vm11, %v2145_v13, %v2143_v50  ;;  %v2127_v26 = vsub.f32 1.5, %v2126_v18 }
 0x2a1   : > { %v2112_v5 = vmul.f32 %v4320_v37, %v7266_v16  ;;  %v7315_v47 = vmax.f32 %v2700_v17, 1e-08  ;;  %v2705_v2 = vmul.f32 %v2146_v54, %v9328_v52  ;;  %v1913_v60 = vsel %vm9108_vm0, %v1725_v31, 0.0  ;;  %v9330_v54 = vld [vmem:[#allocation36_spill] sm:$0xff] }
 0x2a2   : > { %v1868_v36 = vsel %vm9108_vm0, %v1710_v29, 0.0  ;;  %v3044_v21 = vadd.f32 %v4318_v23, %v3043_v58  ;;  %vm3045_vm12 = vweird.f32 %v7255_v45  ;;  %v2128_v9 = vmul.f32 %v4316_v30, %v2127_v26  ;;  %1914 = vadd.xlane.f32.xlu1 %v1913_v60 }
 0x2a3   : > { %v4322_v34 = vpop.eup %4321  ;;  %v2113_v4 = vmul.f32 %v4320_v37, %v2112_v5  ;;  %1869 = vadd.xlane.f32.xlu0 %v1868_v36  ;;  %v7322_v13 = vmul.f32 %v3008_v48, %v9329_v0  ;;  %vm3047_vm14 = vmor %vm3045_vm12, %vm3046_vm3  ;;  %4325 = vrcp.f32 %v7315_v47  ;;  %vm2130_vm2 = vcmp.eq.f32.partialorder %v7232_v61, inf  ;;  %v9331_v36 = vld [vmem:[#allocation16_spill] sm:$0xff] }
 0x2a4   : > { %v3026_v33 = vmul.f32 %v4322_v34, %v7285_v1  ;;  %v3048_v31 = vsel %vm3047_vm14, %v4318_v23, %v3044_v21  ;;  %vm3050_vm13 = vcmp.eq.f32.partialorder %v3049_v32, 8.507059e+37  ;;  %v3052_v29 = vor.u32 1.1754944e-38, %v3051_v8 }
 0x2a5   : > { %v7328_v12 = vmax.f32 %v2705_v2, 1e-08  ;;  %v3034_v62 = vand.u32 2147483647, %v7285_v1  ;;  %v2129_v48 = vmul.f32 %v2128_v9, %v7232_v61  ;;  %v2114_v18 = vmul.f32 0.5, %v2113_v4 }
 0x2a6   : > { %v4324_v45 = vpop.eup %4323  ;;  %v3027_v30 = vsub.f32 1.0, %v3026_v33  ;;  %v3053_v57 = vsel %vm3050_vm13, %v3052_v29, %v3048_v31  ;;  %v3036_v56 = vand.u32 2147483648, %v7285_v1  ;;  %vm2132_vm15 = vcmp.eq.f32.partialorder %v7232_v61, 0.0 }
 0x2a7   : > { %4327 = vrcp.f32 %v7328_v12  ;;  %vm3031_vm8 = vweird.f32 %v4322_v34  ;;  %v2133_v23 = vand.u32 2147483648, %v7232_v61  ;;  %vm2118_vm10 = vcmp.eq.f32.partialorder %v7266_v16, inf }
 0x2a8   : > { %v3028_v17 = vmul.f32 %v4322_v34, %v3027_v30  ;;  %vm3030_vm11 = vweird.f32 %v7285_v1  ;;  %v2131_v32 = vsel %vm2130_vm2, %v7232_v61, %v2129_v48  ;;  %v2115_v8 = vsub.f32 1.5, %v2114_v18  ;;  %v9332_v18 = vld [vmem:[#allocation31_spill] sm:$0xff] }
 0x2a9   : > { %v2172_v50 = vmul.f32 %v4324_v45, %v7296_v55  ;;  %v4326_v58 = vpop.eup %4325  ;;  %v3054_v26 = vmul.f32 %v3053_v57, %v9330_v54  ;;  %vm3035_vm3 = vcmp.eq.f32.partialorder %v3034_v62, 8.507059e+37  ;;  %v2134_v52 = vsel %vm2132_vm15, %v2133_v23, %v2131_v32  ;;  %vm3032_vm12 = vmor %vm3030_vm11, %vm3031_vm8 }
 0x2aa   : > { %v3029_v5 = vadd.f32 %v4322_v34, %v3028_v17  ;;  %v3037_v2 = vor.u32 1.1754944e-38, %v3036_v56  ;;  %v3011_v60 = vmul.f32 %v4326_v58, %v7315_v47  ;;  %v2704_v21 = vmul.f32 %v2134_v52, %v9331_v36  ;;  %v7370_v36 = vpop.xlane.xlu0 %1785 }
 0x2ab   : > { %v2116_v1 = vmul.f32 %v4320_v37, %v2115_v8  ;;  %v3019_v4 = vand.u32 2147483647, %v7315_v47  ;;  %v3021_v61 = vand.u32 2147483648, %v7315_v47  ;;  %v2173_v0 = vmul.f32 %v4324_v45, %v2172_v50  ;;  %v7364_v8 = vpop.xlane.xlu1 %1788 }
 0x2ac   : > { %v3033_v9 = vsel %vm3032_vm12, %v4322_v34, %v3029_v5  ;;  %v3012_v29 = vsub.f32 1.0, %v3011_v60  ;;  %v7349_v30 = vmax.f32 %v2704_v21, 1e-08  ;;  %v3865_v48 = vperm.slane %v3054_v26, %v6774_v14  ;;  %v9333_v60 = vld [vmem:[#allocation18_spill] sm:$0xff] }
 0x2ad   : > { %v7347_v33 = vpop.eup %4327  ;;  %v3038_v31 = vsel %vm3035_vm3, %v3037_v2, %v3033_v9  ;;  %v2117_v62 = vmul.f32 %v2116_v1, %v7266_v16  ;;  %v2174_v34 = vmul.f32 0.5, %v2173_v0  ;;  %vm3016_vm14 = vweird.f32 %v4326_v58 }
 0x2ae   : > { %v3039_v57 = vmul.f32 %v3038_v31, %v9332_v18  ;;  %v3086_v37 = vmul.f32 %v7347_v33, %v7328_v12  ;;  %v3013_v56 = vmul.f32 %v4326_v58, %v3012_v29  ;;  %4329 = vrcp.f32 %v7349_v30 }
 0x2af   : > { %v2121_v17 = vand.u32 2147483648, %v7266_v16  ;;  %vm3015_vm2 = vweird.f32 %v7315_v47  ;;  %v2119_v32 = vsel %vm2118_vm10, %v7266_v16, %v2117_v62  ;;  %vm2120_vm13 = vcmp.eq.f32.partialorder %v7266_v16, 0.0 }
 0x2b0   : > { %v3864_v23 = vperm.slane %v3039_v57, %v6734_v49  ;;  %v3014_v50 = vadd.f32 %v4326_v58, %v3013_v56  ;;  %v3087_v54 = vsub.f32 1.0, %v3086_v37  ;;  %v2175_v5 = vsub.f32 1.5, %v2174_v34  ;;  %vm3017_vm15 = vmor %vm3015_vm2, %vm3016_vm14 }
 0x2b1   : > { %v2122_v26 = vsel %vm2120_vm13, %v2121_v17, %v2119_v32  ;;  %vm3020_vm8 = vcmp.eq.f32.partialorder %v3019_v4, 8.507059e+37  ;;  %v3022_v2 = vor.u32 1.1754944e-38, %v3021_v61  ;;  %v3094_v1 = vand.u32 2147483647, %v7328_v12  ;;  %v9334_v4 = vld [vmem:[#allocation32_spill] sm:$0xff] }
 0x2b2   : > { %v7367_v52 = vsel %vm3844_vm7, %v3865_v48, %v3864_v23  ;;  %v2703_v47 = vmul.f32 %v2122_v26, %v9333_v60  ;;  %v3018_v21 = vsel %vm3017_vm15, %v4326_v58, %v3014_v50  ;;  %v2176_v16 = vmul.f32 %v4324_v45, %v2175_v5 }
 0x2b3   : > { %4331 = vrsqrt.f32 %v7364_v8  ;;  %v3861_v9 = vperm.slane %v7322_v13, %v6734_v49  ;;  %vm9106_vm10 = vcmask 1046534   ;;  %v3023_v0 = vsel %vm3020_vm8, %v3022_v2, %v3018_v21 }
 0x2b4   : > { %v7376_v31 = vmax.f32 %v2703_v47, 1e-08  ;;  %v4330_v29 = vpop.eup %4329  ;;  %v3024_v61 = vmul.f32 %v3023_v0, %v9334_v4  ;;  %v3088_v62 = vmul.f32 %v7347_v33, %v3087_v54  ;;  %v2177_v48 = vmul.f32 %v2176_v16, %v7296_v55  ;;  %v7399_v54 = vpop.xlane.xlu2 %1800 }
 0x2b5   : > { %4333 = vrsqrt.f32 %v7370_v36  ;;  %vm3090_vm11 = vweird.f32 %v7328_v12  ;;  %v3071_v45 = vmul.f32 %v4330_v29, %v7349_v30  ;;  %vm2178_vm3 = vcmp.eq.f32.partialorder %v7296_v55, inf }
 0x2b6   : > { %4335 = vrcp.f32 %v7376_v31  ;;  %v3862_v13 = vperm.slane %v3024_v61, %v6774_v14  ;;  %vm7387_vm12 = vcmp.eq.f32.partialorder %v3094_v1, 8.507059e+37  ;;  %v3096_v18 = vand.u32 2147483648, %v7328_v12 }
 0x2b7   : > { %v2181_v57 = vand.u32 2147483648, %v7296_v55  ;;  %v3072_v37 = vsub.f32 1.0, %v3071_v45  ;;  %v3081_v34 = vand.u32 2147483648, %v7349_v30  ;;  %v2179_v56 = vsel %vm2178_vm3, %v7296_v55, %v2177_v48  ;;  %v7424_v45 = vpop.xlane.xlu1 %1797 }
 0x2b8   : > { %vm2180_vm14 = vcmp.eq.f32.partialorder %v7296_v55, 0.0  ;;  %v3863_v23 = vsel %vm3844_vm7, %v3862_v13, %v3861_v9  ;;  %v3089_v32 = vadd.f32 %v7347_v33, %v3088_v62  ;;  %vm3091_vm2 = vweird.f32 %v7347_v33 }
 0x2b9   : > { %v4332_v17 = vpop.eup %4331  ;;  %v2182_v50 = vsel %vm2180_vm14, %v2181_v57, %v2179_v56  ;;  %v7403_v26 = vsel %vm9106_vm10, %v3863_v23, %v7277_v25  ;;  %v3073_v5 = vmul.f32 %v4330_v29, %v3072_v37  ;;  %vm3076_vm13 = vweird.f32 %v4330_v29  ;;  %vm7411_vm8 = vmor %vm3090_vm11, %vm3091_vm2  ;;  %v7437_v23 = vpop.xlane.xlu0 %1794 }
 0x2ba   : > { %v3079_v2 = vand.u32 2147483647, %v7349_v30  ;;  %v3097_v55 = vor.u32 1.1754944e-38, %v3096_v18  ;;  %vm3075_vm15 = vweird.f32 %v7349_v30  ;;  %v2708_v47 = vmul.f32 %v2182_v50, %v6026_v35  ;;  %v9339_v50 = vld [vmem:[#allocation34_spill] sm:$0xff] }
 0x2bb   : > { %v4334_v60 = vpop.eup %4333  ;;  %v2160_v21 = vmul.f32 %v4332_v17, %v7364_v8  ;;  %v3074_v25 = vadd.f32 %v4330_v29, %v3073_v5  ;;  %v3082_v9 = vor.u32 1.1754944e-38, %v3081_v34  ;;  %4337 = vrsqrt.f32 %v7399_v54  ;;  %vm3077_vm3 = vmor %vm3075_vm15, %vm3076_vm13 }
 0x2bc   : > { %v4336_v1 = vpop.eup %4335  ;;  %v2148_v0 = vmul.f32 %v4334_v60, %v7370_v36  ;;  %v3093_v30 = vsel %vm7411_vm8, %v7347_v33, %v3089_v32  ;;  %v7421_v4 = vmax.f32 %v2708_v47, 1e-08  ;;  %vm3080_vm11 = vcmp.eq.f32.partialorder %v3079_v2, 8.507059e+37 }
 0x2bd   : > { %v3056_v35 = vmul.f32 %v4336_v1, %v7376_v31  ;;  %v2161_v12 = vmul.f32 %v4332_v17, %v2160_v21  ;;  %v3078_v61 = vsel %vm3077_vm3, %v4330_v29, %v3074_v25  ;;  %v3064_v62 = vand.u32 2147483647, %v7376_v31 }
 0x2be   : > { %v2149_v48 = vmul.f32 %v4334_v60, %v2148_v0  ;;  %v3083_v13 = vsel %vm3080_vm11, %v3082_v9, %v3078_v61  ;;  %v3066_v57 = vand.u32 2147483648, %v7376_v31  ;;  %4339 = vrcp.f32 %v7421_v4  ;;  %v7452_v61 = vpop.xlane.xlu2 %1809 }
 0x2bf   : > { %v3057_v18 = vsub.f32 1.0, %v3056_v35  ;;  %vm2166_vm14 = vcmp.eq.f32.partialorder %v7364_v8, inf  ;;  %v7431_v33 = vsel %vm7387_vm12, %v3097_v55, %v3093_v30  ;;  %vm3060_vm2 = vweird.f32 %v7376_v31 }
 0x2c0   : > { %v2162_v29 = vmul.f32 0.5, %v2161_v12  ;;  %vm2168_vm13 = vcmp.eq.f32.partialorder %v7364_v8, 0.0  ;;  %v2169_v37 = vand.u32 2147483648, %v7364_v8  ;;  %vm3061_vm15 = vweird.f32 %v4336_v1 }
 0x2c1   : > { %v3058_v34 = vmul.f32 %v4336_v1, %v3057_v18  ;;  %v2150_v56 = vmul.f32 0.5, %v2149_v48  ;;  %4341 = vrsqrt.f32 %v7424_v45  ;;  %v4338_v32 = vpop.eup %4337  ;;  %v3084_v5 = vmul.f32 %v3083_v13, %v9339_v50  ;;  %vm3062_vm3 = vmor %vm3060_vm2, %vm3061_vm15  ;;  %v9342_v18 = vld [vmem:[#allocation35_spill] sm:$0xff] }
 0x2c2   : > { %vm7440_vm8 = vcmp.eq.f32.partialorder %v3064_v62, 8.507059e+37  ;;  %v2163_v2 = vsub.f32 1.5, %v2162_v29  ;;  %vm2154_vm12 = vcmp.eq.f32.partialorder %v7370_v36, inf  ;;  %v3067_v47 = vor.u32 1.1754944e-38, %v3066_v57 }
 0x2c3   : > { %v3059_v55 = vadd.f32 %v4336_v1, %v3058_v34  ;;  %v2151_v21 = vsub.f32 1.5, %v2150_v56  ;;  %v2208_v16 = vmul.f32 %v4338_v32, %v7399_v54  ;;  %vm2156_vm11 = vcmp.eq.f32.partialorder %v7370_v36, 0.0 }
 0x2c4   : > { %v2164_v25 = vmul.f32 %v4332_v17, %v2163_v2  ;;  %v2157_v9 = vand.u32 2147483648, %v7370_v36  ;;  %4343 = vrsqrt.f32 %v7437_v23  ;;  %v4340_v0 = vpop.eup %4339  ;;  %vm3135_vm10 = vweird.f32 %v7421_v4 }
 0x2c5   : > { %v3063_v30 = vsel %vm3062_vm3, %v4336_v1, %v3059_v55  ;;  %v2152_v35 = vmul.f32 %v4334_v60, %v2151_v21  ;;  %v2209_v12 = vmul.f32 %v4338_v32, %v2208_v16  ;;  %v3868_v62 = vperm.slane %v3084_v5, %v6774_v14  ;;  %v9343_v21 = vld [vmem:[#allocation30_spill] sm:$0xff] }
 0x2c6   : > { %v3068_v31 = vsel %vm7440_vm8, %v3067_v47, %v3063_v30  ;;  %v3131_v17 = vmul.f32 %v4340_v0, %v7421_v4  ;;  %v2165_v48 = vmul.f32 %v2164_v25, %v7364_v8  ;;  %vm3136_vm2 = vweird.f32 %v4340_v0 }
 0x2c7   : > { %v4342_v13 = vpop.eup %4341  ;;  %v3069_v57 = vmul.f32 %v3068_v31, %v9342_v18  ;;  %v2153_v1 = vmul.f32 %v2152_v35, %v7370_v36  ;;  %v2210_v29 = vmul.f32 0.5, %v2209_v12  ;;  %4345 = vrsqrt.f32 %v7452_v61  ;;  %v9344_v12 = vld [vmem:[#allocation23_spill] sm:$0xff] }
 0x2c8   : > { %v3132_v60 = vsub.f32 1.0, %v3131_v17  ;;  %v2167_v34 = vsel %vm2166_vm14, %v7364_v8, %v2165_v48  ;;  %v2196_v56 = vmul.f32 %v4342_v13, %v7424_v45  ;;  %v3139_v48 = vand.u32 2147483647, %v7421_v4  ;;  %vm7496_vm14 = vmor %vm3135_vm10, %vm3136_vm2 }
 0x2c9   : > { %v3867_v50 = vperm.slane %v3069_v57, %v6734_v49  ;;  %v2170_v5 = vsel %vm2168_vm13, %v2169_v37, %v2167_v34  ;;  %v2155_v58 = vsel %vm2154_vm12, %v7370_v36, %v2153_v1  ;;  %v2211_v2 = vsub.f32 1.5, %v2210_v29 }
 0x2ca   : > { %v4344_v55 = vpop.eup %4343  ;;  %v3133_v47 = vmul.f32 %v4340_v0, %v3132_v60  ;;  %v2707_v16 = vmul.f32 %v2170_v5, %v9343_v21  ;;  %v2158_v25 = vsel %vm2156_vm11, %v2157_v9, %v2155_v58  ;;  %v2197_v30 = vmul.f32 %v4342_v13, %v2196_v56  ;;  %v9345_v60 = vld [vmem:[#allocation39_spill] sm:$0xff] }
 0x2cb   : > { %v7476_v35 = vsel %vm3844_vm7, %v3868_v62, %v3867_v50  ;;  %v2706_v31 = vmul.f32 %v2158_v25, %v9344_v12  ;;  %v2212_v8 = vmul.f32 %v4338_v32, %v2211_v2  ;;  %v2184_v37 = vmul.f32 %v4344_v55, %v7437_v23 }
 0x2cc   : > { %v3134_v17 = vadd.f32 %v4340_v0, %v3133_v47  ;;  %v3141_v18 = vand.u32 2147483648, %v7421_v4  ;;  %v7482_v57 = vmax.f32 %v2707_v16, 1e-08  ;;  %v2198_v9 = vmul.f32 0.5, %v2197_v30  ;;  %v7512_v47 = vpop.xlane.xlu1 %1806  ;;  %v9348_v30 = vld [vmem:[#allocation83_spill] sm:$0xff] }
 0x2cd   : > { %v7484_v1 = vmax.f32 %v2706_v31, 1e-08  ;;  %v2213_v36 = vmul.f32 %v2212_v8, %v7399_v54  ;;  %v2185_v29 = vmul.f32 %v4344_v55, %v2184_v37  ;;  %v7487_v62 = vpop.eup %4345  ;;  %v7491_v32 = vmul.f32 %v7431_v33, %v9345_v60 }
 0x2ce   : > { %4347 = vrcp.f32 %v7482_v57  ;;  %vm2214_vm13 = vcmp.eq.f32.partialorder %v7399_v54, inf  ;;  %vm2216_vm15 = vcmp.eq.f32.partialorder %v7399_v54, 0.0  ;;  %v3138_v56 = vsel %vm7496_vm14, %v4340_v0, %v3134_v17 }
 0x2cf   : > { %4349 = vrcp.f32 %v7484_v1  ;;  %v2217_v33 = vand.u32 2147483648, %v7399_v54  ;;  %vm2202_vm8 = vcmp.eq.f32.partialorder %v7424_v45, inf  ;;  %vm3140_vm12 = vcmp.eq.f32.partialorder %v3139_v48, 8.507059e+37 }
 0x2d0   : > { %v3142_v4 = vor.u32 1.1754944e-38, %v3141_v18  ;;  %vm2204_vm10 = vcmp.eq.f32.partialorder %v7424_v45, 0.0  ;;  %v2205_v50 = vand.u32 2147483648, %v7424_v45  ;;  %v2215_v5 = vsel %vm2214_vm13, %v7399_v54, %v2213_v36  ;;  %v9349_v18 = vld [vmem:[#allocation42_spill] sm:$0xff] }
 0x2d1   : > { %v2199_v58 = vsub.f32 1.5, %v2198_v9  ;;  %v2186_v2 = vmul.f32 0.5, %v2185_v29  ;;  %vm2190_vm3 = vcmp.eq.f32.partialorder %v7437_v23, inf  ;;  %v3124_v21 = vand.u32 2147483647, %v7482_v57 }
 0x2d2   : > { %v3143_v0 = vsel %vm3140_vm12, %v3142_v4, %v3138_v56  ;;  %v2218_v16 = vsel %vm2216_vm15, %v2217_v33, %v2215_v5  ;;  %vm2192_vm11 = vcmp.eq.f32.partialorder %v7437_v23, 0.0  ;;  %v2193_v25 = vand.u32 2147483648, %v7437_v23 }
 0x2d3   : > { %v2711_v12 = vmul.f32 %v2218_v16, %v9348_v30  ;;  %v2200_v31 = vmul.f32 %v4342_v13, %v2199_v58  ;;  %v2187_v8 = vsub.f32 1.5, %v2186_v2  ;;  %v2244_v37 = vmul.f32 %v7487_v62, %v7452_v61 }
 0x2d4   : > { %v4348_v17 = vpop.eup %4347  ;;  %vm3120_vm2 = vweird.f32 %v7482_v57  ;;  %v3126_v48 = vand.u32 2147483648, %v7482_v57  ;;  %vm3105_vm14 = vweird.f32 %v7484_v1  ;;  %4351 = vrsqrt.f32 %v7512_v47 }
 0x2d5   : > { %v4350_v54 = vpop.eup %4349  ;;  %v7527_v36 = vmul.f32 %v3143_v0, %v9349_v18  ;;  %v3116_v9 = vmul.f32 %v4348_v17, %v7482_v57  ;;  %v7530_v13 = vmax.f32 %v2711_v12, 1e-08  ;;  %v2201_v29 = vmul.f32 %v2200_v31, %v7424_v45 }
 0x2d6   : > { %vm7533_vm13 = vcmp.eq.f32.partialorder %v3124_v21, 8.507059e+37  ;;  %v3101_v34 = vmul.f32 %v4350_v54, %v7484_v1  ;;  %v2188_v56 = vmul.f32 %v4344_v55, %v2187_v8  ;;  %v2245_v33 = vmul.f32 %v7487_v62, %v2244_v37  ;;  %v9352_v37 = vld [vmem:[#allocation84_spill] sm:$0xff] }
 0x2d7   : > { %v3117_v4 = vsub.f32 1.0, %v3116_v9  ;;  %v3109_v5 = vand.u32 2147483647, %v7484_v1  ;;  %v3111_v58 = vand.u32 2147483648, %v7484_v1  ;;  %4353 = vrcp.f32 %v7530_v13  ;;  %v9354_v1 = vld [vmem:[#allocation37_spill] sm:$0xff] }
 0x2d8   : > { %v3127_v2 = vor.u32 1.1754944e-38, %v3126_v48  ;;  %v3102_v0 = vsub.f32 1.0, %v3101_v34  ;;  %v2203_v21 = vsel %vm2202_vm8, %v7424_v45, %v2201_v29  ;;  %v2189_v16 = vmul.f32 %v2188_v56, %v7437_v23 }
 0x2d9   : > { %v3118_v30 = vmul.f32 %v4348_v17, %v3117_v4  ;;  %vm3121_vm15 = vweird.f32 %v4348_v17  ;;  %v2206_v55 = vsel %vm2204_vm10, %v2205_v50, %v2203_v21  ;;  %v2246_v12 = vmul.f32 0.5, %v2245_v33  ;;  %v7558_v50 = vpop.xlane.xlu0 %1803 }
 0x2da   : > { %v7548_v31 = vpop.eup %4351  ;;  %v3103_v8 = vmul.f32 %v4350_v54, %v3102_v0  ;;  %vm3106_vm12 = vweird.f32 %v4350_v54  ;;  %v2710_v18 = vmul.f32 %v2206_v55, %v9352_v37  ;;  %v2191_v48 = vsel %vm2190_vm3, %v7437_v23, %v2189_v16  ;;  %vm3122_vm8 = vmor %vm3120_vm2, %vm3121_vm15  ;;  %v9353_v23 = vld [vmem:[#allocation29_spill] sm:$0xff] }
 0x2db   : > { %v3119_v9 = vadd.f32 %v4348_v17, %v3118_v30  ;;  %v2194_v29 = vsel %vm2192_vm11, %v2193_v25, %v2191_v48  ;;  %v2247_v34 = vsub.f32 1.5, %v2246_v12  ;;  %v2232_v45 = vmul.f32 %v7548_v31, %v7512_v47  ;;  %vm3107_vm3 = vmor %vm3105_vm14, %vm3106_vm12 }
 0x2dc   : > { %v3104_v56 = vadd.f32 %v4350_v54, %v3103_v8  ;;  %vm3110_vm10 = vcmp.eq.f32.partialorder %v3109_v5, 8.507059e+37  ;;  %v3112_v33 = vor.u32 1.1754944e-38, %v3111_v58  ;;  %v7562_v4 = vmax.f32 %v2710_v18, 1e-08  ;;  %v9355_v8 = vld [vmem:[#allocation38_spill] sm:$0xff] }
 0x2dd   : > { %v7564_v0 = vpop.eup %4353  ;;  %v3123_v21 = vsel %vm3122_vm8, %v4348_v17, %v3119_v9  ;;  %v2709_v25 = vmul.f32 %v2194_v29, %v9353_v23  ;;  %v2248_v16 = vmul.f32 %v7487_v62, %v2247_v34  ;;  %v2233_v30 = vmul.f32 %v7548_v31, %v2232_v45 }
 0x2de   : > { %v3128_v57 = vsel %vm7533_vm13, %v3127_v2, %v3123_v21  ;;  %v3108_v5 = vsel %vm3107_vm3, %v4350_v54, %v3104_v56  ;;  %v3176_v58 = vmul.f32 %v7564_v0, %v7530_v13  ;;  %4355 = vrsqrt.f32 %v7558_v50 }
 0x2df   : > { %v3874_v17 = vperm.slane %v7527_v36, %v6774_v14  ;;  %v3129_v55 = vmul.f32 %v3128_v57, %v9354_v1  ;;  %v3113_v12 = vsel %vm3110_vm10, %v3112_v33, %v3108_v5  ;;  %4357 = vrcp.f32 %v7562_v4  ;;  %v9358_v1 = vld [vmem:[#allocation86_spill] sm:$0xff] }
 0x2e0   : > { %v3870_v62 = vperm.slane %v7491_v32, %v6734_v49  ;;  %v3114_v60 = vmul.f32 %v3113_v12, %v9355_v8  ;;  %v3177_v2 = vsub.f32 1.0, %v3176_v58  ;;  %vm2250_vm11 = vcmp.eq.f32.partialorder %v7452_v61, inf }
 0x2e1   : > { %v3873_v54 = vperm.slane %v3129_v55, %v6734_v49  ;;  %v7586_v37 = vmax.f32 %v2709_v25, 1e-08  ;;  %v2249_v18 = vmul.f32 %v2248_v16, %v7452_v61  ;;  %v2234_v36 = vmul.f32 0.5, %v2233_v30 }
 0x2e2   : > { %v3871_v48 = vperm.slane %v3114_v60, %v6774_v14  ;;  %v3178_v9 = vmul.f32 %v7564_v0, %v3177_v2  ;;  %vm2252_vm2 = vcmp.eq.f32.partialorder %v7452_v61, 0.0  ;;  %v2253_v32 = vand.u32 2147483648, %v7452_v61 }
 0x2e3   : > { %v3875_v29 = vsel %vm3844_vm7, %v3874_v17, %v3873_v54  ;;  %v3184_v34 = vand.u32 2147483647, %v7530_v13  ;;  %4359 = vrcp.f32 %v7586_v37  ;;  %vm2238_vm14 = vcmp.eq.f32.partialorder %v7512_v47, inf }
 0x2e4   : > { %v7597_v45 = vpop.eup %4355  ;;  %v3872_v56 = vsel %vm3844_vm7, %v3871_v48, %v3870_v62  ;;  %vm3180_vm13 = vweird.f32 %v7530_v13  ;;  %v3186_v33 = vand.u32 2147483648, %v7530_v13  ;;  %v2251_v21 = vsel %vm2250_vm11, %v7452_v61, %v2249_v18 }
 0x2e5   : > { %vm2240_vm15 = vcmp.eq.f32.partialorder %v7512_v47, 0.0  ;;  %v4358_v23 = vpop.eup %4357  ;;  %v3953_v25 = vsel %vm3939_vm4, %v3872_v56, %v7476_v35  ;;  %v3169_v16 = vand.u32 2147483647, %v7562_v4  ;;  %v2254_v30 = vsel %vm2252_vm2, %v2253_v32, %v2251_v21 }
 0x2e6   : > { %v2235_v57 = vsub.f32 1.5, %v2234_v36  ;;  %vm1598_vm12 = vcmp.eq.f32.partialorder %v6377_v42, inf  ;;  %v3179_v5 = vadd.f32 %v7564_v0, %v3178_v9  ;;  %vm3181_vm8 = vweird.f32 %v7564_v0 }
 0x2e7   : > { %v3161_v58 = vmul.f32 %v4358_v23, %v7562_v4  ;;  %v7614_v61 = vsel %vm9107_vm1, %v3875_v29, %v3953_v25  ;;  %vm7616_vm10 = vcmp.eq.f32.partialorder %v3184_v34, 8.507059e+37  ;;  %v3171_v35 = vand.u32 2147483648, %v7562_v4  ;;  %vm7628_vm3 = vmor %vm3180_vm13, %vm3181_vm8  ;;  %v7644_v29 = vpop.xlane.xlu2 %1818 }
 0x2e8   : > { %v2714_v55 = vmul.f32 %v2254_v30, %v9358_v1  ;;  %v2236_v12 = vmul.f32 %v7548_v31, %v2235_v57  ;;  %v3187_v62 = vor.u32 1.1754944e-38, %v3186_v33  ;;  %v2241_v60 = vand.u32 2147483648, %v7512_v47 }
 0x2e9   : > { %v3162_v8 = vsub.f32 1.0, %v3161_v58  ;;  %v2220_v2 = vmul.f32 %v7597_v45, %v7558_v50  ;;  %v4360_v54 = vpop.eup %4359  ;;  %vm3165_vm11 = vweird.f32 %v7562_v4  ;;  %vm7633_vm2 = vcmp.eq.f32.partialorder %v3169_v16, 8.507059e+37 }
 0x2ea   : > { %v7637_v31 = vmax.f32 %v2714_v55, 1e-08  ;;  %v2237_v48 = vmul.f32 %v2236_v12, %v7512_v47  ;;  %v3183_v9 = vsel %vm7628_vm3, %v7564_v0, %v3179_v5  ;;  %vm3166_vm1 = vweird.f32 %v4358_v23  ;;  %v7661_v12 = vpop.xlane.xlu1 %1815 }
 0x2eb   : > { %v3163_v32 = vmul.f32 %v4358_v23, %v3162_v8  ;;  %v3146_v13 = vmul.f32 %v4360_v54, %v7586_v37  ;;  %v3172_v34 = vor.u32 1.1754944e-38, %v3171_v35  ;;  %v3154_v56 = vand.u32 2147483647, %v7586_v37  ;;  %vm3167_vm13 = vmor %vm3165_vm11, %vm3166_vm1  ;;  %v9363_v35 = vld [vmem:[#allocation87_spill] sm:$0xff] }
 0x2ec   : > { %v3156_v33 = vand.u32 2147483648, %v7586_v37  ;;  %4361 = vrcp.f32 %v7637_v31  ;;  %v2239_v16 = vsel %vm2238_vm14, %v7512_v47, %v2237_v48  ;;  %v2221_v0 = vmul.f32 %v7597_v45, %v2220_v2 }
 0x2ed   : > { %v3164_v21 = vadd.f32 %v4358_v23, %v3163_v32  ;;  %v3147_v25 = vsub.f32 1.0, %v3146_v13  ;;  %v3188_v30 = vsel %vm7616_vm10, %v3187_v62, %v3183_v9  ;;  %vm3151_vm8 = vweird.f32 %v4360_v54  ;;  %v9365_v62 = vld [vmem:[#allocation40_spill] sm:$0xff]  ;;  %v9366_v9 = vld [vmem:[#allocation45_spill] sm:$0xff] }
 0x2ee   : > { %v2242_v57 = vsel %vm2240_vm15, %v2241_v60, %v2239_v16  ;;  %4363 = vrsqrt.f32 %v7644_v29  ;;  %v2222_v55 = vmul.f32 0.5, %v2221_v0  ;;  %v7667_v17 = vsel %vm1598_vm12, %v6377_v42, %v7162_v38 }
 0x2ef   : > { %v3168_v5 = vsel %vm3167_vm13, %v4358_v23, %v3164_v21  ;;  %v3148_v58 = vmul.f32 %v4360_v54, %v3147_v25  ;;  %v2713_v1 = vmul.f32 %v2242_v57, %v9363_v35  ;;  %v9364_v4 = vsub.f32 1.5, %v6935_v43  ;;  %v7696_v0 = vpop.xlane.xlu2 %1827 }
 0x2f0   : > { %v3173_v23 = vsel %vm7633_vm2, %v3172_v34, %v3168_v5  ;;  %vm3150_vm1 = vweird.f32 %v7586_v37  ;;  %v2223_v18 = vsub.f32 1.5, %v2222_v55  ;;  %v7681_v38 = vmul.f32 %v3188_v30, %v9366_v9  ;;  %v7688_v37 = vpop.xlane.xlu0 %1812 }
 0x2f1   : > { %v7672_v47 = vmul.f32 %v6690_v11, %v9364_v4  ;;  %v3174_v8 = vmul.f32 %v3173_v23, %v9365_v62  ;;  %v3149_v60 = vadd.f32 %v4360_v54, %v3148_v58  ;;  %v7678_v2 = vmax.f32 %v2713_v1, 1e-08  ;;  %vm3152_vm14 = vmor %vm3150_vm1, %vm3151_vm8 }
 0x2f2   : > { %v4362_v48 = vpop.eup %4361  ;;  %vm3155_vm15 = vcmp.eq.f32.partialorder %v3154_v56, 8.507059e+37  ;;  %v3157_v11 = vor.u32 1.1754944e-38, %v3156_v33  ;;  %4365 = vrsqrt.f32 %v7661_v12  ;;  %vm2226_vm12 = vcmp.eq.f32.partialorder %v7558_v50, inf  ;;  %v9367_v33 = vld [vmem:[#allocation41_spill] sm:$0xff] }
 0x2f3   : > { %v3153_v43 = vsel %vm3152_vm14, %v4360_v54, %v3149_v60  ;;  %v3221_v36 = vmul.f32 %v4362_v48, %v7637_v31  ;;  %vm2228_vm10 = vcmp.eq.f32.partialorder %v7558_v50, 0.0  ;;  %v3229_v34 = vand.u32 2147483647, %v7637_v31 }
 0x2f4   : > { %v4364_v32 = vpop.eup %4363  ;;  %v3158_v13 = vsel %vm3155_vm15, %v3157_v11, %v3153_v43  ;;  %v3231_v21 = vand.u32 2147483648, %v7637_v31  ;;  %4367 = vrcp.f32 %v7678_v2  ;;  %v3877_v56 = vperm.slane %v3174_v8, %v6774_v14 }
 0x2f5   : > { %v3159_v54 = vmul.f32 %v3158_v13, %v9367_v33  ;;  %v3222_v25 = vsub.f32 1.0, %v3221_v36  ;;  %v2224_v16 = vmul.f32 %v7597_v45, %v2223_v18  ;;  %vm3225_vm3 = vweird.f32 %v7637_v31  ;;  %v7732_v31 = vpop.xlane.xlu1 %1824 }
 0x2f6   : > { %v2229_v30 = vand.u32 2147483648, %v7558_v50  ;;  %v2280_v57 = vmul.f32 %v4364_v32, %v7644_v29  ;;  %4369 = vrsqrt.f32 %v7688_v37  ;;  %vm3226_vm11 = vweird.f32 %v4362_v48 }
 0x2f7   : > { %v3876_v5 = vperm.slane %v3159_v54, %v6734_v49  ;;  %v3223_v58 = vmul.f32 %v4362_v48, %v3222_v25  ;;  %v2225_v35 = vmul.f32 %v2224_v16, %v7558_v50  ;;  %vm7704_vm2 = vcmp.eq.f32.partialorder %v3229_v34, 8.507059e+37  ;;  %vm7720_vm13 = vmor %vm3225_vm3, %vm3226_vm11 }
 0x2f8   : > { %v4366_v1 = vpop.eup %4365  ;;  %v3232_v45 = vor.u32 1.1754944e-38, %v3231_v21  ;;  %v2281_v4 = vmul.f32 %v4364_v32, %v2280_v57  ;;  %4371 = vrsqrt.f32 %v7696_v0  ;;  %vm2286_vm8 = vcmp.eq.f32.partialorder %v7644_v29, inf  ;;  %v9372_v21 = vld [vmem:[#allocation28_spill] sm:$0xff] }
 0x2f9   : > { %v3878_v23 = vsel %vm3844_vm7, %v3877_v56, %v3876_v5  ;;  %v3224_v62 = vadd.f32 %v4362_v48, %v3223_v58  ;;  %v2227_v8 = vsel %vm2226_vm12, %v7558_v50, %v2225_v35  ;;  %v2268_v60 = vmul.f32 %v4366_v1, %v7661_v12 }
 0x2fa   : > { %v4368_v18 = vpop.eup %4367  ;;  %v7716_v9 = vsel %vm3943_vm6, %v3878_v23, %v7614_v61  ;;  %v2230_v43 = vsel %vm2228_vm10, %v2229_v30, %v2227_v8  ;;  %v2282_v36 = vmul.f32 0.5, %v2281_v4  ;;  %vm2288_vm1 = vcmp.eq.f32.partialorder %v7644_v29, 0.0 }
 0x2fb   : > { %v3228_v13 = vsel %vm7720_vm13, %v4362_v48, %v3224_v62  ;;  %v3206_v34 = vmul.f32 %v4368_v18, %v7678_v2  ;;  %v2712_v61 = vmul.f32 %v2230_v43, %v9372_v21  ;;  %v3214_v33 = vand.u32 2147483647, %v7678_v2 }
 0x2fc   : > { %v4370_v56 = vpop.eup %4369  ;;  %v2283_v54 = vsub.f32 1.5, %v2282_v36  ;;  %v2289_v50 = vand.u32 2147483648, %v7644_v29  ;;  %v2269_v25 = vmul.f32 %v4366_v1, %v2268_v60  ;;  %v3216_v30 = vand.u32 2147483648, %v7678_v2 }
 0x2fd   : > { %v3207_v16 = vsub.f32 1.0, %v3206_v34  ;;  %v7737_v57 = vmax.f32 %v2712_v61, 1e-08  ;;  %vm2274_vm14 = vcmp.eq.f32.partialorder %v7661_v12, inf  ;;  %v2256_v48 = vmul.f32 %v4370_v56, %v7688_v37 }
 0x2fe   : > { %v4372_v5 = vpop.eup %4371  ;;  %v3233_v58 = vsel %vm7704_vm2, %v3232_v45, %v3228_v13  ;;  %v2284_v35 = vmul.f32 %v4364_v32, %v2283_v54  ;;  %v2270_v4 = vmul.f32 0.5, %v2269_v25  ;;  %vm2276_vm15 = vcmp.eq.f32.partialorder %v7661_v12, 0.0  ;;  %v9375_v45 = vld [vmem:[#allocation48_spill] sm:$0xff] }
 0x2ff   : > { %4373 = vrsqrt.f32 %v7732_v31  ;;  %v3208_v23 = vmul.f32 %v4368_v18, %v3207_v16  ;;  %vm3211_vm12 = vweird.f32 %v4368_v18  ;;  %v2277_v62 = vand.u32 2147483648, %v7661_v12 }
 0x300   : > { %4375 = vrcp.f32 %v7737_v57  ;;  %vm3210_vm10 = vweird.f32 %v7678_v2  ;;  %vm7748_vm3 = vcmp.eq.f32.partialorder %v3214_v33, 8.507059e+37  ;;  %v2285_v55 = vmul.f32 %v2284_v35, %v7644_v29 }
 0x301   : > { %v2271_v32 = vsub.f32 1.5, %v2270_v4  ;;  %v3234_v60 = vmul.f32 %v3233_v58, %v9375_v45  ;;  %v3209_v11 = vadd.f32 %v4368_v18, %v3208_v23  ;;  %v2257_v43 = vmul.f32 %v4370_v56, %v2256_v48  ;;  %vm3212_vm11 = vmor %vm3210_vm10, %vm3211_vm12  ;;  %v9376_v48 = vld [vmem:[#allocation90_spill] sm:$0xff]  ;;  %v9377_v4 = vld [vmem:[#allocation43_spill] sm:$0xff] }
 0x302   : > { %v2316_v36 = vmul.f32 %v4372_v5, %v7696_v0  ;;  %v3217_v13 = vor.u32 1.1754944e-38, %v3216_v30  ;;  %v2287_v34 = vsel %vm2286_vm8, %v7644_v29, %v2285_v55  ;;  %vm2262_vm2 = vcmp.eq.f32.partialorder %v7688_v37, inf }
 0x303   : > { %v2272_v2 = vmul.f32 %v4366_v1, %v2271_v32  ;;  %v3213_v21 = vsel %vm3212_vm11, %v4368_v18, %v3209_v11  ;;  %v2290_v61 = vsel %vm2288_vm1, %v2289_v50, %v2287_v34  ;;  %v2258_v33 = vmul.f32 0.5, %v2257_v43 }
 0x304   : > { %v2317_v54 = vmul.f32 %v4372_v5, %v2316_v36  ;;  %v3218_v16 = vsel %vm7748_vm3, %v3217_v13, %v3213_v21  ;;  %v2717_v58 = vmul.f32 %v2290_v61, %v9376_v48  ;;  %vm2264_vm13 = vcmp.eq.f32.partialorder %v7688_v37, 0.0  ;;  %v9378_v61 = vld [vmem:[#allocation91_spill] sm:$0xff] }
 0x305   : > { %v4374_v25 = vpop.eup %4373  ;;  %v2273_v30 = vmul.f32 %v2272_v2, %v7661_v12  ;;  %v3883_v1 = vperm.slane %v3234_v60, %v6774_v14  ;;  %v3219_v18 = vmul.f32 %v3218_v16, %v9377_v4  ;;  %v2259_v23 = vsub.f32 1.5, %v2258_v33 }
 0x306   : > { %v4376_v35 = vpop.eup %4375  ;;  %v2318_v29 = vmul.f32 0.5, %v2317_v54  ;;  %v7769_v55 = vmax.f32 %v2717_v58, 1e-08  ;;  %v2304_v32 = vmul.f32 %v4374_v25, %v7732_v31  ;;  %vm1600_vm8 = vcmp.eq.f32.partialorder %v6377_v42, 0.0 }
 0x307   : > { %v3191_v50 = vmul.f32 %v4376_v35, %v7737_v57  ;;  %v2275_v8 = vsel %vm2274_vm14, %v7661_v12, %v2273_v30  ;;  %v3882_v45 = vperm.slane %v3219_v18, %v6734_v49  ;;  %v2260_v60 = vmul.f32 %v4370_v56, %v2259_v23 }
 0x308   : > { %v2278_v11 = vsel %vm2276_vm15, %v2277_v62, %v2275_v8  ;;  %v2319_v43 = vsub.f32 1.5, %v2318_v29  ;;  %v3199_v13 = vand.u32 2147483647, %v7737_v57  ;;  %4377 = vrcp.f32 %v7769_v55  ;;  %v9379_v29 = vld [vmem:[#allocation85_spill] sm:$0xff] }
 0x309   : > { %v3192_v36 = vsub.f32 1.0, %v3191_v50  ;;  %v2265_v34 = vand.u32 2147483648, %v7688_v37  ;;  %v7783_v2 = vsel %vm3844_vm7, %v3883_v1, %v3882_v45  ;;  %v3201_v21 = vand.u32 2147483648, %v7737_v57 }
 0x30a   : > { %v2716_v12 = vmul.f32 %v2278_v11, %v9378_v61  ;;  %v2261_v62 = vmul.f32 %v2260_v60, %v7688_v37  ;;  %vm3196_vm1 = vweird.f32 %v4376_v35  ;;  %v2320_v33 = vmul.f32 %v4372_v5, %v2319_v43  ;;  %v9380_v11 = vld [vmem:[#allocation44_spill] sm:$0xff]  ;;  %v9382_v61 = vld [vmem:[#allocation93_spill] sm:$0xff] }
 0x30b   : > { %v3193_v56 = vmul.f32 %v4376_v35, %v3192_v36  ;;  %v2305_v54 = vmul.f32 %v4374_v25, %v2304_v32  ;;  %vm3195_vm14 = vweird.f32 %v7737_v57  ;;  %vm2322_vm15 = vcmp.eq.f32.partialorder %v7696_v0, inf }
 0x30c   : > { %v7790_v16 = vmax.f32 %v2716_v12, 1e-08  ;;  %v2263_v48 = vsel %vm2262_vm2, %v7688_v37, %v2261_v62  ;;  %v2321_v5 = vmul.f32 %v2320_v33, %v7696_v0  ;;  %vm3197_vm12 = vmor %vm3195_vm14, %vm3196_vm1  ;;  %vm3200_vm10 = vcmp.eq.f32.partialorder %v3199_v13, 8.507059e+37 }
 0x30d   : > { %v3194_v58 = vadd.f32 %v4376_v35, %v3193_v56  ;;  %v2266_v30 = vsel %vm2264_vm13, %v2265_v34, %v2263_v48  ;;  %v2306_v1 = vmul.f32 0.5, %v2305_v54  ;;  %v3202_v57 = vor.u32 1.1754944e-38, %v3201_v21 }
 0x30e   : > { %4379 = vrcp.f32 %v7790_v16  ;;  %v2325_v4 = vand.u32 2147483648, %v7696_v0  ;;  %v7801_v18 = vpop.eup %4377  ;;  %v2715_v50 = vmul.f32 %v2266_v30, %v9379_v29  ;;  %v2323_v8 = vsel %vm2322_vm15, %v7696_v0, %v2321_v5 }
 0x30f   : > { %v3198_v23 = vsel %vm3197_vm12, %v4376_v35, %v3194_v58  ;;  %v2307_v32 = vsub.f32 1.5, %v2306_v1  ;;  %4381 = vrsqrt.f32 %v6503_v7  ;;  %v3266_v45 = vmul.f32 %v7801_v18, %v7769_v55 }
 0x310   : > { %v3203_v37 = vsel %vm3200_vm10, %v3202_v57, %v3198_v23  ;;  %vm2324_vm3 = vcmp.eq.f32.partialorder %v7696_v0, 0.0  ;;  %v7816_v35 = vmul.f32 %v6738_v59, %v7173_v46  ;;  %v7819_v43 = vmax.f32 %v2715_v50, 1e-08 }
 0x311   : > { %v3204_v60 = vmul.f32 %v3203_v37, %v9380_v11  ;;  %v2326_v36 = vsel %vm2324_vm3, %v2325_v4, %v2323_v8  ;;  %v9381_v13 = vand.u32 2147483648, %v6377_v42  ;;  %v1571_v21 = vsub.f32 1.5, %v7271_v3  ;;  %v7864_v4 = vpop.xlane.xlu0 %1821 }
 0x312   : > { %v2720_v0 = vmul.f32 %v2326_v36, %v9382_v61  ;;  %v2308_v12 = vmul.f32 %v4374_v25, %v2307_v32  ;;  %v7832_v46 = vmul.f32 %v7672_v47, %v6411_v63  ;;  %v3879_v62 = vperm.slane %v7681_v38, %v6734_v49 }
 0x313   : > { %v7826_v34 = vsel %vm1600_vm8, %v9381_v13, %v7667_v17  ;;  %v3880_v56 = vperm.slane %v3204_v60, %v6774_v14  ;;  %4383 = vrcp.f32 %v7819_v43  ;;  %v3267_v17 = vsub.f32 1.0, %v3266_v45  ;;  %v9385_v60 = vld [vmem:[#allocation94_spill] sm:$0xff] }
 0x314   : > { %v4380_v42 = vpop.eup %4379  ;;  %v7839_v33 = vmax.f32 %v2720_v0, 1e-08  ;;  %v2309_v54 = vmul.f32 %v2308_v12, %v7732_v31  ;;  %vm2310_vm11 = vcmp.eq.f32.partialorder %v7732_v31, inf  ;;  %vm2312_vm2 = vcmp.eq.f32.partialorder %v7732_v31, 0.0 }
 0x315   : > { %v3881_v25 = vsel %vm3844_vm7, %v3880_v56, %v3879_v62  ;;  %v3251_v47 = vmul.f32 %v4380_v42, %v7790_v16  ;;  %vm9109_vm13 = vcmask 1047559   ;;  %v7846_v38 = vpop.eup %4381  ;;  %v3274_v58 = vand.u32 2147483647, %v7769_v55 }
 0x316   : > { %v3956_v48 = vsel %vm3945_vm9, %v3881_v25, %v7716_v9  ;;  %v3276_v30 = vand.u32 2147483648, %v7769_v55  ;;  %4385 = vrcp.f32 %v7839_v33  ;;  %v3259_v1 = vand.u32 2147483647, %v7790_v16 }
 0x317   : > { %v3252_v5 = vsub.f32 1.0, %v3251_v47  ;;  %v7861_v57 = vsel %vm3947_vm5, %v7783_v2, %v3956_v48  ;;  %v2313_v9 = vand.u32 2147483648, %v7732_v31  ;;  %v3268_v23 = vmul.f32 %v7801_v18, %v3267_v17  ;;  %v7898_v48 = vpop.xlane.xlu1 %1833 }
 0x318   : > { %v3261_v29 = vand.u32 2147483648, %v7790_v16  ;;  %v2311_v50 = vsel %vm2310_vm11, %v7732_v31, %v2309_v54  ;;  %v3952_v8 = vsel %vm9109_vm13, %v7367_v52, %v7403_v26  ;;  %vm3270_vm8 = vweird.f32 %v7769_v55  ;;  %v7888_v31 = vpop.xlane.xlu2 %1872 }
 0x319   : > { %v4384_v32 = vpop.eup %4383  ;;  %v3253_v2 = vmul.f32 %v4380_v42, %v3252_v5  ;;  %vm3256_vm1 = vweird.f32 %v4380_v42  ;;  %v2314_v37 = vsel %vm2312_vm2, %v2313_v9, %v2311_v50  ;;  %3978 = vst.msk [vmem:[%s7856_s12] sm:$0xff] %vm9108_vm0, %v3952_v8  ;;  %vm3271_vm14 = vweird.f32 %v7801_v18 }
 0x31a   : > { %vm7880_vm15 = vcmp.eq.f32.partialorder %v3274_v58, 8.507059e+37  ;;  %v3277_v11 = vor.u32 1.1754944e-38, %v3276_v30  ;;  %vm3255_vm12 = vweird.f32 %v7790_v16  ;;  %v3236_v52 = vmul.f32 %v4384_v32, %v7819_v43  ;;  %vm7904_vm2 = vmor %vm3270_vm8, %vm3271_vm14 }
 0x31b   : > { %v3254_v26 = vadd.f32 %v4380_v42, %v3253_v2  ;;  %vm3260_vm10 = vcmp.eq.f32.partialorder %v3259_v1, 8.507059e+37  ;;  %v2719_v36 = vmul.f32 %v2314_v37, %v9385_v60  ;;  %4387 = vrsqrt.f32 %v7864_v4  ;;  %vm3257_vm3 = vmor %vm3255_vm12, %vm3256_vm1  ;;  %v9388_v1 = vld [vmem:[#allocation46_spill] sm:$0xff] }
 0x31c   : > { %v4386_v13 = vpop.eup %4385  ;;  %v3269_v61 = vadd.f32 %v7801_v18, %v3268_v23  ;;  %v3262_v0 = vor.u32 1.1754944e-38, %v3261_v29  ;;  %v3237_v12 = vsub.f32 1.0, %v3236_v52  ;;  %v3246_v62 = vand.u32 2147483648, %v7819_v43 }
 0x31d   : > { %v3258_v16 = vsel %vm3257_vm3, %v4380_v42, %v3254_v26  ;;  %v3244_v56 = vand.u32 2147483647, %v7819_v43  ;;  %v3311_v17 = vmul.f32 %v4386_v13, %v7839_v33  ;;  %v7895_v54 = vmax.f32 %v2719_v36, 1e-08 }
 0x31e   : > { %v3263_v25 = vsel %vm3260_vm10, %v3262_v0, %v3258_v16  ;;  %v3238_v47 = vmul.f32 %v4384_v32, %v3237_v12  ;;  %vm3241_vm11 = vweird.f32 %v4384_v32  ;;  %4389 = vrsqrt.f32 %v7888_v31  ;;  %v9391_v0 = vld [vmem:[#allocation47_spill] sm:$0xff] }
 0x31f   : > { %vm3240_vm1 = vweird.f32 %v7819_v43  ;;  %v3312_v42 = vsub.f32 1.0, %v3311_v17  ;;  %v3319_v30 = vand.u32 2147483647, %v7839_v33  ;;  %4391 = vrcp.f32 %v7895_v54  ;;  %v7917_v43 = vpop.xlane.xlu0 %1830 }
 0x320   : > { %v3273_v5 = vsel %vm7904_vm2, %v7801_v18, %v3269_v61  ;;  %v3264_v9 = vmul.f32 %v3263_v25, %v9388_v1  ;;  %v3239_v23 = vadd.f32 %v4384_v32, %v3238_v47  ;;  %v3247_v29 = vor.u32 1.1754944e-38, %v3246_v62  ;;  %vm3242_vm8 = vmor %vm3240_vm1, %vm3241_vm11  ;;  %v7941_v17 = vpop.xlane.xlu2 %1881 }
 0x321   : > { %v4388_v55 = vpop.eup %4387  ;;  %v3313_v50 = vmul.f32 %v4386_v13, %v3312_v42  ;;  %vm3316_vm14 = vweird.f32 %v4386_v13  ;;  %v3321_v8 = vand.u32 2147483648, %v7839_v33  ;;  %4393 = vrsqrt.f32 %v7898_v48 }
 0x322   : > { %v3243_v2 = vsel %vm3242_vm8, %v4384_v32, %v3239_v23  ;;  %vm3245_vm12 = vcmp.eq.f32.partialorder %v3244_v56, 8.507059e+37  ;;  %vm3315_vm10 = vweird.f32 %v7839_v33  ;;  %v2292_v18 = vmul.f32 %v4388_v55, %v7864_v4 }
 0x323   : > { %v7923_v37 = vsel %vm7880_vm15, %v3277_v11, %v3273_v5  ;;  %v3248_v52 = vsel %vm3245_vm12, %v3247_v29, %v3243_v2  ;;  %v3314_v26 = vadd.f32 %v4386_v13, %v3313_v50  ;;  %vm7925_vm3 = vcmp.eq.f32.partialorder %v3319_v30, 8.507059e+37  ;;  %vm7932_vm11 = vmor %vm3315_vm10, %vm3316_vm14 }
 0x324   : > { %v4390_v36 = vpop.eup %4389  ;;  %v3886_v61 = vperm.slane %v3264_v9, %v6774_v14  ;;  %v3249_v32 = vmul.f32 %v3248_v52, %v9391_v0  ;;  %v2293_v12 = vmul.f32 %v4388_v55, %v2292_v18  ;;  %4395 = vrsqrt.f32 %v7917_v43  ;;  %v7961_v18 = vpop.xlane.xlu1 %1878 }
 0x325   : > { %v4392_v45 = vpop.eup %4391  ;;  %v3318_v11 = vsel %vm7932_vm11, %v4386_v13, %v3314_v26  ;;  %v3322_v62 = vor.u32 1.1754944e-38, %v3321_v8  ;;  %v2301_v16 = vand.u32 2147483648, %v7864_v4  ;;  %v2496_v56 = vmul.f32 %v4390_v36, %v7888_v31  ;;  %v9395_v26 = vld [vmem:[#allocation54_spill] sm:$0xff] }
 0x326   : > { %v3885_v25 = vperm.slane %v3249_v32, %v6734_v49  ;;  %v3296_v47 = vmul.f32 %v4392_v45, %v7895_v54  ;;  %vm3300_vm15 = vweird.f32 %v7895_v54  ;;  %v3304_v58 = vand.u32 2147483647, %v7895_v54 }
 0x327   : > { %vm2298_vm2 = vcmp.eq.f32.partialorder %v7864_v4, inf  ;;  %v4394_v42 = vpop.eup %4393  ;;  %v3323_v13 = vsel %vm7925_vm3, %v3322_v62, %v3318_v11  ;;  %v3306_v30 = vand.u32 2147483648, %v7895_v54  ;;  %v2294_v5 = vmul.f32 0.5, %v2293_v12 }
 0x328   : > { %vm2300_vm1 = vcmp.eq.f32.partialorder %v7864_v4, 0.0  ;;  %v2497_v1 = vmul.f32 %v4390_v36, %v2496_v56  ;;  %v3887_v9 = vsel %vm3844_vm7, %v3886_v61, %v3885_v25  ;;  %v3297_v23 = vsub.f32 1.0, %v3296_v47 }
 0x329   : > { %vm2502_vm8 = vcmp.eq.f32.partialorder %v7888_v31, inf  ;;  %v2340_v29 = vmul.f32 %v4394_v42, %v7898_v48  ;;  %4397 = vrsqrt.f32 %v7941_v17  ;;  %vm9394_vm14 = vcmask 1046534  }
 0x32a   : > { %v7958_v50 = vsel %vm9394_vm14, %v3887_v9, %v7861_v57  ;;  %v2295_v8 = vsub.f32 1.5, %v2294_v5  ;;  %v2498_v2 = vmul.f32 0.5, %v2497_v1  ;;  %vm2504_vm12 = vcmp.eq.f32.partialorder %v7888_v31, 0.0  ;;  %v4396_v52 = vpop.eup %4395 }
 0x32b   : > { %v3324_v60 = vmul.f32 %v3323_v13, %v9395_v26  ;;  %v3298_v61 = vmul.f32 %v4392_v45, %v3297_v23  ;;  %vm3301_vm10 = vweird.f32 %v4392_v45  ;;  %v2341_v0 = vmul.f32 %v4394_v42, %v2340_v29 }
 0x32c   : > { %v2296_v32 = vmul.f32 %v4388_v55, %v2295_v8  ;;  %v2499_v33 = vsub.f32 1.5, %v2498_v2  ;;  %v2505_v12 = vand.u32 2147483648, %v7888_v31  ;;  %v2328_v11 = vmul.f32 %v4396_v52, %v7917_v43  ;;  %vm3302_vm11 = vmor %vm3300_vm15, %vm3301_vm10 }
 0x32d   : > { %v3299_v57 = vadd.f32 %v4392_v45, %v3298_v61  ;;  %vm3305_vm3 = vcmp.eq.f32.partialorder %v3304_v58, 8.507059e+37  ;;  %v2342_v62 = vmul.f32 0.5, %v2341_v0  ;;  %4399 = vrsqrt.f32 %v7961_v18 }
 0x32e   : > { %v3307_v56 = vor.u32 1.1754944e-38, %v3306_v30  ;;  %v2297_v25 = vmul.f32 %v2296_v32, %v7864_v4  ;;  %v2500_v47 = vmul.f32 %v4390_v36, %v2499_v33  ;;  %v2329_v13 = vmul.f32 %v4396_v52, %v2328_v11  ;;  %v9396_v30 = vld [vmem:[#allocation49_spill] sm:$0xff]  ;;  %v7986_v33 = vpop.xlane.xlu0 %1875 }
 0x32f   : > { %v4398_v5 = vpop.eup %4397  ;;  %v3892_v55 = vperm.slane %v3324_v60, %v6774_v14  ;;  %v3303_v1 = vsel %vm3302_vm11, %v4392_v45, %v3299_v57  ;;  %v2343_v9 = vsub.f32 1.5, %v2342_v62  ;;  %vm2346_vm14 = vcmp.eq.f32.partialorder %v7898_v48, inf  ;;  %v9397_v45 = vld [vmem:[#allocation89_spill] sm:$0xff] }
 0x330   : > { %v3308_v23 = vsel %vm3305_vm3, %v3307_v56, %v3303_v1  ;;  %v2299_v58 = vsel %vm2298_vm2, %v7864_v4, %v2297_v25  ;;  %v2501_v54 = vmul.f32 %v2500_v47, %v7888_v31  ;;  %v2330_v29 = vmul.f32 0.5, %v2329_v13 }
 0x331   : > { %v3309_v8 = vmul.f32 %v3308_v23, %v9396_v30  ;;  %v2302_v36 = vsel %vm2300_vm1, %v2301_v16, %v2299_v58  ;;  %v2344_v2 = vmul.f32 %v4394_v42, %v2343_v9  ;;  %v2532_v26 = vmul.f32 %v4398_v5, %v7941_v17 }
 0x332   : > { %vm1586_vm15 = vcmp.eq.f32.partialorder %v6411_v63, inf  ;;  %v2718_v60 = vmul.f32 %v2302_v36, %v9397_v45  ;;  %v2503_v61 = vsel %vm2502_vm8, %v7888_v31, %v2501_v54  ;;  %v2349_v0 = vand.u32 2147483648, %v7898_v48 }
 0x333   : > { %v2331_v32 = vsub.f32 1.5, %v2330_v29  ;;  %v4400_v11 = vpop.eup %4399  ;;  %v3891_v4 = vperm.slane %v3309_v8, %v6734_v49  ;;  %v2506_v16 = vsel %vm2504_vm12, %v2505_v12, %v2503_v61  ;;  %v2345_v42 = vmul.f32 %v2344_v2, %v7898_v48  ;;  %v9398_v12 = vld [vmem:[#allocation51_spill] sm:$0xff] }
 0x334   : > { %v2533_v57 = vmul.f32 %v4398_v5, %v2532_v26  ;;  %v7992_v62 = vmax.f32 %v2718_v60, 1e-08  ;;  %v2735_v56 = vmul.f32 %v2506_v16, %v6630_v41  ;;  %v2520_v47 = vmul.f32 %v4400_v11, %v7961_v18 }
 0x335   : > { %v2332_v25 = vmul.f32 %v4396_v52, %v2331_v32  ;;  %v7997_v13 = vsel %vm3844_vm7, %v3892_v55, %v3891_v4  ;;  %v2347_v1 = vsel %vm2346_vm14, %v7898_v48, %v2345_v42  ;;  %4401 = vrsqrt.f32 %v7986_v33 }
 0x336   : > { %v2534_v9 = vmul.f32 0.5, %v2533_v57  ;;  %v8004_v31 = vmul.f32 0.5, %v7816_v35  ;;  %v8008_v23 = vmul.f32 %v7923_v37, %v9398_v12  ;;  %4403 = vrcp.f32 %v7992_v62  ;;  %v9399_v37 = vld [vmem:[#allocation97_spill] sm:$0xff] }
 0x337   : > { %vm2348_vm2 = vcmp.eq.f32.partialorder %v7898_v48, 0.0  ;;  %v8012_v41 = vmax.f32 %v2735_v56, 1e-08  ;;  %v2333_v55 = vmul.f32 %v2332_v25, %v7917_v43  ;;  %v8018_v54 = vmul.f32 %v6697_v51, %v1571_v21 }
 0x338   : > { %v2350_v52 = vsel %vm2348_vm2, %v2349_v0, %v2347_v1  ;;  %v2535_v58 = vsub.f32 1.5, %v2534_v9  ;;  %v8022_v35 = vmul.f32 %v6967_v27, %v6486_v22  ;;  %v2521_v30 = vmul.f32 %v4400_v11, %v2520_v47  ;;  %v9400_v0 = vld [vmem:[#allocation92_spill] sm:$0xff] }
 0x339   : > { %v2722_v29 = vmul.f32 %v2350_v52, %v9399_v37  ;;  %4405 = vrcp.f32 %v8012_v41  ;;  %vm2334_vm1 = vcmp.eq.f32.partialorder %v7917_v43, inf  ;;  %vm2336_vm8 = vcmp.eq.f32.partialorder %v7917_v43, 0.0 }
 0x33a   : > { %v2337_v48 = vand.u32 2147483648, %v7917_v43  ;;  %v2335_v51 = vsel %vm2334_vm1, %v7917_v43, %v2333_v55  ;;  %v2536_v3 = vmul.f32 %v4398_v5, %v2535_v58  ;;  %v2522_v21 = vmul.f32 0.5, %v2521_v30 }
 0x33b   : > { %v8029_v8 = vmax.f32 %v2722_v29, 1e-08  ;;  %v8032_v36 = vpop.eup %4401  ;;  %v8038_v2 = vsel %vm1586_vm15, %v6411_v63, %v7832_v46  ;;  %v1631_v26 = vsub.f32 1.5, %v8004_v31  ;;  %v3888_v45 = vperm.slane %v8008_v23, %v6734_v49  ;;  %v9422_v31 = vld [vmem:[#allocation99_spill] sm:$0xff] }
 0x33c   : > { %v2338_v60 = vsel %vm2336_vm8, %v2337_v48, %v2335_v51  ;;  %v4404_v61 = vpop.eup %4403  ;;  %vm2538_vm12 = vcmp.eq.f32.partialorder %v7941_v17, inf  ;;  %vm2540_vm10 = vcmp.eq.f32.partialorder %v7941_v17, 0.0  ;;  %v2541_v43 = vand.u32 2147483648, %v7941_v17 }
 0x33d   : > { %4407 = vrcp.f32 %v8029_v8  ;;  %v3281_v5 = vmul.f32 %v4404_v61, %v7992_v62  ;;  %v3289_v46 = vand.u32 2147483647, %v7992_v62  ;;  %v2721_v32 = vmul.f32 %v2338_v60, %v9400_v0 }
 0x33e   : > { %v2537_v4 = vmul.f32 %v2536_v3, %v7941_v17  ;;  %v3291_v16 = vand.u32 2147483648, %v7992_v62  ;;  %v2523_v42 = vsub.f32 1.5, %v2522_v21  ;;  %vm2526_vm3 = vcmp.eq.f32.partialorder %v7961_v18, inf }
 0x33f   : > { %vm2528_vm11 = vcmp.eq.f32.partialorder %v7961_v18, 0.0  ;;  %v8054_v57 = vpop.eup %4405  ;;  %v3282_v56 = vsub.f32 1.0, %v3281_v5  ;;  %v8056_v25 = vmax.f32 %v2721_v32, 1e-08  ;;  %v2508_v1 = vmul.f32 %v8032_v36, %v7986_v33 }
 0x340   : > { %v2539_v47 = vsel %vm2538_vm12, %v7941_v17, %v2537_v4  ;;  %vm3285_vm14 = vweird.f32 %v7992_v62  ;;  %v2524_v12 = vmul.f32 %v4400_v11, %v2523_v42  ;;  %v2529_v52 = vand.u32 2147483648, %v7961_v18 }
 0x341   : > { %v2542_v9 = vsel %vm2540_vm10, %v2541_v43, %v2539_v47  ;;  %v3283_v55 = vmul.f32 %v4404_v61, %v3282_v56  ;;  %vm3286_vm15 = vweird.f32 %v4404_v61  ;;  %vm8065_vm2 = vcmp.eq.f32.partialorder %v3289_v46, 8.507059e+37  ;;  %v9403_v47 = vld [vmem:[#allocation50_spill] sm:$0xff] }
 0x342   : > { %4409 = vrcp.f32 %v8056_v25  ;;  %v3536_v29 = vmul.f32 %v8054_v57, %v8012_v41  ;;  %v3546_v30 = vand.u32 2147483648, %v8012_v41  ;;  %v2738_v17 = vmul.f32 %v2542_v9, %v6661_v28  ;;  %vm3287_vm1 = vmor %vm3285_vm14, %vm3286_vm15 }
 0x343   : > { %v4408_v37 = vpop.eup %4407  ;;  %v2525_v11 = vmul.f32 %v2524_v12, %v7961_v18  ;;  %v3284_v48 = vadd.f32 %v4404_v61, %v3283_v55  ;;  %v3292_v51 = vor.u32 1.1754944e-38, %v3291_v16  ;;  %v2509_v21 = vmul.f32 %v8032_v36, %v2508_v1  ;;  %v8102_v55 = vpop.xlane.xlu2 %1884 }
 0x344   : > { %v3341_v3 = vmul.f32 %v4408_v37, %v8029_v8  ;;  %v3544_v60 = vand.u32 2147483647, %v8012_v41  ;;  %v3349_v43 = vand.u32 2147483647, %v8029_v8  ;;  %v8081_v5 = vmax.f32 %v2738_v17, 1e-08 }
 0x345   : > { %v2527_v28 = vsel %vm2526_vm3, %v7961_v18, %v2525_v11  ;;  %v3288_v46 = vsel %vm3287_vm1, %v4404_v61, %v3284_v48  ;;  %v3351_v32 = vand.u32 2147483648, %v8029_v8  ;;  %v3537_v16 = vsub.f32 1.0, %v3536_v29 }
 0x346   : > { %v3342_v0 = vsub.f32 1.0, %v3341_v3  ;;  %v2530_v4 = vsel %vm2528_vm11, %v2529_v52, %v2527_v28  ;;  %v3293_v62 = vsel %vm8065_vm2, %v3292_v51, %v3288_v46  ;;  %v8091_v42 = vor.u32 1.1754944e-38, %v3546_v30 }
 0x347   : > { %4411 = vrcp.f32 %v8081_v5  ;;  %v3294_v1 = vmul.f32 %v3293_v62, %v9403_v47  ;;  %vm3346_vm8 = vweird.f32 %v4408_v37  ;;  %v2510_v61 = vmul.f32 0.5, %v2509_v21 }
 0x348   : > { %v4410_v56 = vpop.eup %4409  ;;  %v3343_v9 = vmul.f32 %v4408_v37, %v3342_v0  ;;  %vm3345_vm12 = vweird.f32 %v8029_v8  ;;  %vm8096_vm10 = vcmp.eq.f32.partialorder %v3349_v43, 8.507059e+37  ;;  %v2737_v52 = vmul.f32 %v2530_v4, %v6666_v6 }
 0x349   : > { %v3326_v18 = vmul.f32 %v4410_v56, %v8056_v25  ;;  %v3889_v58 = vperm.slane %v3294_v1, %v6774_v14  ;;  %vm3540_vm3 = vweird.f32 %v8012_v41  ;;  %v3352_v30 = vor.u32 1.1754944e-38, %v3351_v32  ;;  %vm3347_vm11 = vmor %vm3345_vm12, %vm3346_vm8 }
 0x34a   : > { %v3344_v29 = vadd.f32 %v4408_v37, %v3343_v9  ;;  %v3334_v17 = vand.u32 2147483647, %v8056_v25  ;;  %v3538_v8 = vmul.f32 %v8054_v57, %v3537_v16  ;;  %v3336_v48 = vand.u32 2147483648, %v8056_v25 }
 0x34b   : > { %v3327_v11 = vsub.f32 1.0, %v3326_v18  ;;  %v8109_v51 = vmax.f32 %v2737_v52, 1e-08  ;;  %vm2514_vm14 = vcmp.eq.f32.partialorder %v7986_v33, inf  ;;  %v3890_v6 = vsel %vm3844_vm7, %v3889_v58, %v3888_v45 }
 0x34c   : > { %v3348_v3 = vsel %vm3347_vm11, %v4408_v37, %v3344_v29  ;;  %v2511_v21 = vsub.f32 1.5, %v2510_v61  ;;  %vm2516_vm15 = vcmp.eq.f32.partialorder %v7986_v33, 0.0  ;;  %4413 = vrsqrt.f32 %v8102_v55  ;;  %v9406_v37 = vld [vmem:[#allocation52_spill] sm:$0xff]  ;;  %v8137_v61 = vpop.xlane.xlu1 %1839  ;;  %v9411_v29 = vld [vmem:[#allocation53_spill] sm:$0xff] }
 0x34d   : > { %v4412_v43 = vpop.eup %4411  ;;  %v3959_v28 = vsel %vm9109_vm13, %v3890_v6, %v7958_v50  ;;  %v3353_v46 = vsel %vm8096_vm10, %v3352_v30, %v3348_v3  ;;  %v3328_v0 = vmul.f32 %v4410_v56, %v3327_v11  ;;  %vm3331_vm2 = vweird.f32 %v4410_v56 }
 0x34e   : > { %3979 = vst.msk [vmem:[%s7856_s12 + $0x8] sm:$0xff] %vm9108_vm0, %v3959_v28  ;;  %vm3541_vm1 = vweird.f32 %v8054_v57  ;;  %v3581_v23 = vmul.f32 %v4412_v43, %v8081_v5  ;;  %4415 = vrcp.f32 %v8109_v51  ;;  %v2517_v45 = vand.u32 2147483648, %v7986_v33 }
 0x34f   : > { %v3354_v32 = vmul.f32 %v3353_v46, %v9406_v37  ;;  %v3329_v4 = vadd.f32 %v4410_v56, %v3328_v0  ;;  %vm3330_vm8 = vweird.f32 %v8056_v25  ;;  %v3337_v50 = vor.u32 1.1754944e-38, %v3336_v48 }
 0x350   : > { %v3539_v62 = vadd.f32 %v8054_v57, %v3538_v8  ;;  %vm8131_vm12 = vcmp.eq.f32.partialorder %v3544_v60, 8.507059e+37  ;;  %vm3332_vm10 = vmor %vm3330_vm8, %vm3331_vm2  ;;  %v3582_v47 = vsub.f32 1.0, %v3581_v23  ;;  %v3589_v1 = vand.u32 2147483647, %v8081_v5  ;;  %v8154_v8 = vpop.xlane.xlu0 %1836 }
 0x351   : > { %v2512_v9 = vmul.f32 %v8032_v36, %v2511_v21  ;;  %v3333_v12 = vsel %vm3332_vm10, %v4410_v56, %v3329_v4  ;;  %vm3335_vm11 = vcmp.eq.f32.partialorder %v3334_v17, 8.507059e+37  ;;  %vm3585_vm0 = vweird.f32 %v8081_v5  ;;  %vm8146_vm2 = vmor %vm3540_vm3, %vm3541_vm1 }
 0x352   : > { %v3591_v25 = vand.u32 2147483648, %v8081_v5  ;;  %v4414_v18 = vpop.eup %4413  ;;  %v3338_v52 = vsel %vm3335_vm11, %v3337_v50, %v3333_v12  ;;  %v3583_v60 = vmul.f32 %v4412_v43, %v3582_v47  ;;  %vm3586_vm13 = vweird.f32 %v4412_v43 }
 0x353   : > { %v2513_v58 = vmul.f32 %v2512_v9, %v7986_v33  ;;  %v3895_v56 = vperm.slane %v3354_v32, %v6774_v14  ;;  %v3339_v30 = vmul.f32 %v3338_v52, %v9411_v29  ;;  %v2544_v17 = vmul.f32 %v4414_v18, %v8102_v55  ;;  %vm3587_vm1 = vmor %vm3585_vm0, %vm3586_vm13  ;;  %v8174_v32 = vpop.xlane.xlu2 %1845 }
 0x354   : > { %4417 = vrsqrt.f32 %v8137_v61  ;;  %v4416_v11 = vpop.eup %4415  ;;  %v3543_v48 = vsel %vm8146_vm2, %v8054_v57, %v3539_v62  ;;  %v3584_v41 = vadd.f32 %v4412_v43, %v3583_v60  ;;  %vm8159_vm3 = vcmp.eq.f32.partialorder %v3589_v1, 8.507059e+37 }
 0x355   : > { %v2515_v3 = vsel %vm2514_vm14, %v7986_v33, %v2513_v58  ;;  %v3894_v21 = vperm.slane %v3339_v30, %v6734_v49  ;;  %v3592_v28 = vor.u32 1.1754944e-38, %v3591_v25  ;;  %v3566_v46 = vmul.f32 %v4416_v11, %v8109_v51  ;;  %v9414_v25 = vld [vmem:[#allocation72_spill] sm:$0xff]  ;;  %v8203_v58 = vpop.xlane.xlu1 %1842 }
 0x356   : > { %v2518_v57 = vsel %vm2516_vm15, %v2517_v45, %v2515_v3  ;;  %v3588_v0 = vsel %vm3587_vm1, %v4412_v43, %v3584_v41  ;;  %v2545_v37 = vmul.f32 %v4414_v18, %v2544_v17  ;;  %4419 = vrsqrt.f32 %v8154_v8 }
 0x357   : > { %v2736_v23 = vmul.f32 %v2518_v57, %v6604_v20  ;;  %v3896_v4 = vsel %vm3844_vm7, %v3895_v56, %v3894_v21  ;;  %v3567_v50 = vsub.f32 1.0, %v3566_v46  ;;  %v3574_v5 = vand.u32 2147483647, %v8109_v51  ;;  %v9415_v56 = vld [vmem:[#allocation69_spill] sm:$0xff]  ;;  %v9416_v21 = vld [vmem:[#allocation67_spill] sm:$0xff] }
 0x358   : > { %v3576_v62 = vand.u32 2147483648, %v8109_v51  ;;  %v8181_v47 = vsel %vm3939_vm4, %v3896_v4, %v7997_v13  ;;  %v3593_v33 = vsel %vm8159_vm3, %v3592_v28, %v3588_v0  ;;  %v2546_v43 = vmul.f32 0.5, %v2545_v37 }
 0x359   : > { %v8185_v20 = vmax.f32 %v2736_v23, 1e-08  ;;  %v3548_v1 = vsel %vm8131_vm12, %v8091_v42, %v3543_v48  ;;  %v3568_v9 = vmul.f32 %v4416_v11, %v3567_v50  ;;  %vm3571_vm0 = vweird.f32 %v4416_v11 }
 0x35a   : > { %v4418_v45 = vpop.eup %4417  ;;  %4421 = vrsqrt.f32 %v8174_v32  ;;  %v8193_v12 = vmul.f32 %v8018_v54, %v6430_v44  ;;  %v8197_v13 = vmul.f32 %v6967_v27, %v8022_v35  ;;  %vm3570_vm13 = vweird.f32 %v8109_v51 }
 0x35b   : > { %4423 = vrcp.f32 %v8185_v20  ;;  %v3594_v52 = vmul.f32 %v3593_v33, %v9414_v25  ;;  %v3569_v16 = vadd.f32 %v4416_v11, %v3568_v9  ;;  %v2547_v42 = vsub.f32 1.5, %v2546_v43  ;;  %vm3572_vm14 = vmor %vm3570_vm13, %vm3571_vm0 }
 0x35c   : > { %v2364_v60 = vmul.f32 %v4418_v45, %v8137_v61  ;;  %v4420_v36 = vpop.eup %4419  ;;  %v8206_v54 = vmul.f32 %v3548_v1, %v9415_v56  ;;  %vm3575_vm15 = vcmp.eq.f32.partialorder %v3574_v5, 8.507059e+37  ;;  %v3577_v35 = vor.u32 1.1754944e-38, %v3576_v62 }
 0x35d   : > { %vm2550_vm8 = vcmp.eq.f32.partialorder %v8102_v55, inf  ;;  %v3573_v51 = vsel %vm3572_vm14, %v4416_v11, %v3569_v16  ;;  %v2548_v29 = vmul.f32 %v4414_v18, %v2547_v42  ;;  %vm2552_vm12 = vcmp.eq.f32.partialorder %v8102_v55, 0.0  ;;  %v8234_v42 = vpop.xlane.xlu0 %1887 }
 0x35e   : > { %v2365_v30 = vmul.f32 %v4418_v45, %v2364_v60  ;;  %v3578_v17 = vsel %vm3575_vm15, %v3577_v35, %v3573_v51  ;;  %v2553_v48 = vand.u32 2147483648, %v8102_v55  ;;  %v2352_v41 = vmul.f32 %v4420_v36, %v8154_v8 }
 0x35f   : > { %4425 = vrsqrt.f32 %v8203_v58  ;;  %v3919_v3 = vperm.slane %v3594_v52, %v6774_v14  ;;  %v3579_v28 = vmul.f32 %v3578_v17, %v9416_v21  ;;  %v2549_v46 = vmul.f32 %v2548_v29, %v8102_v55 }
 0x360   : > { %v4422_v6 = vpop.eup %4421  ;;  %v2366_v57 = vmul.f32 0.5, %v2365_v30  ;;  %vm2370_vm10 = vcmp.eq.f32.partialorder %v8137_v61, inf  ;;  %vm2372_vm11 = vcmp.eq.f32.partialorder %v8137_v61, 0.0  ;;  %v2373_v11 = vand.u32 2147483648, %v8137_v61 }
 0x361   : > { %v4424_v18 = vpop.eup %4423  ;;  %v2353_v0 = vmul.f32 %v4420_v36, %v2352_v41  ;;  %v2388_v23 = vmul.f32 %v4422_v6, %v8174_v32  ;;  %v3918_v37 = vperm.slane %v3579_v28, %v6734_v49  ;;  %v2551_v50 = vsel %vm2550_vm8, %v8102_v55, %v2549_v46 }
 0x362   : > { %v3551_v4 = vmul.f32 %v4424_v18, %v8185_v20  ;;  %vm2358_vm2 = vcmp.eq.f32.partialorder %v8154_v8, inf  ;;  %v2361_v5 = vand.u32 2147483648, %v8154_v8  ;;  %v2554_v62 = vsel %vm2552_vm12, %v2553_v48, %v2551_v50 }
 0x363   : > { %v2367_v33 = vsub.f32 1.5, %v2366_v57  ;;  %v2354_v43 = vmul.f32 0.5, %v2353_v0  ;;  %v2389_v1 = vmul.f32 %v4422_v6, %v2388_v23  ;;  %v8230_v9 = vsel %vm3844_vm7, %v3919_v3, %v3918_v37  ;;  %v8243_v3 = vpop.xlane.xlu2 %1848  ;;  %v9417_v37 = vld [vmem:[#allocation95_spill] sm:$0xff] }
 0x364   : > { %v3552_v25 = vsub.f32 1.0, %v3551_v4  ;;  %v3559_v52 = vand.u32 2147483647, %v8185_v20  ;;  %v2739_v16 = vmul.f32 %v2554_v62, %v6657_v40  ;;  %v3561_v56 = vand.u32 2147483648, %v8185_v20  ;;  %v9418_v62 = vld [vmem:[#allocation68_spill] sm:$0xff] }
 0x365   : > { %v4426_v60 = vpop.eup %4425  ;;  %v2368_v35 = vmul.f32 %v4418_v45, %v2367_v33  ;;  %v2355_v51 = vsub.f32 1.5, %v2354_v43  ;;  %v2390_v55 = vmul.f32 0.5, %v2389_v1  ;;  %vm1574_vm3 = vcmp.eq.f32.partialorder %v6430_v44, inf  ;;  %v9419_v1 = vld [vmem:[#allocation96_spill] sm:$0xff] }
 0x366   : > { %v3553_v29 = vmul.f32 %v4424_v18, %v3552_v25  ;;  %vm3556_vm1 = vweird.f32 %v4424_v18  ;;  %v8238_v30 = vmax.f32 %v2739_v16, 1e-08  ;;  %v2376_v17 = vmul.f32 %v4426_v60, %v8203_v58 }
 0x367   : > { %v2369_v48 = vmul.f32 %v2368_v35, %v8137_v61  ;;  %v2356_v41 = vmul.f32 %v4420_v36, %v2355_v51  ;;  %v2391_v40 = vsub.f32 1.5, %v2390_v55  ;;  %4427 = vrsqrt.f32 %v8234_v42 }
 0x368   : > { %v3554_v21 = vadd.f32 %v4424_v18, %v3553_v29  ;;  %vm3555_vm0 = vweird.f32 %v8185_v20  ;;  %vm3560_vm13 = vcmp.eq.f32.partialorder %v3559_v52, 8.507059e+37  ;;  %4429 = vrcp.f32 %v8238_v30 }
 0x369   : > { %vm1588_vm14 = vcmp.eq.f32.partialorder %v6411_v63, 0.0  ;;  %vm3557_vm15 = vmor %vm3555_vm0, %vm3556_vm1  ;;  %v3562_v45 = vor.u32 1.1754944e-38, %v3561_v56  ;;  %v2371_v28 = vsel %vm2370_vm10, %v8137_v61, %v2369_v48  ;;  %v2357_v36 = vmul.f32 %v2356_v41, %v8154_v8 }
 0x36a   : > { %v2392_v46 = vmul.f32 %v4422_v6, %v2391_v40  ;;  %vm1576_vm8 = vcmp.eq.f32.partialorder %v6430_v44, 0.0  ;;  %v3558_v57 = vsel %vm3557_vm15, %v4424_v18, %v3554_v21  ;;  %v2374_v20 = vsel %vm2372_vm11, %v2373_v11, %v2371_v28 }
 0x36b   : > { %v2377_v0 = vmul.f32 %v4426_v60, %v2376_v17  ;;  %4431 = vrsqrt.f32 %v8243_v3  ;;  %v3563_v23 = vsel %vm3560_vm13, %v3562_v45, %v3558_v57  ;;  %v2724_v4 = vmul.f32 %v2374_v20, %v9417_v37 }
 0x36c   : > { %v2359_v50 = vsel %vm2358_vm2, %v8154_v8, %v2357_v36  ;;  %vm2360_vm12 = vcmp.eq.f32.partialorder %v8154_v8, 0.0  ;;  %v3564_v6 = vmul.f32 %v3563_v23, %v9418_v62  ;;  %v2393_v18 = vmul.f32 %v2392_v46, %v8174_v32 }
 0x36d   : > { %v2362_v33 = vsel %vm2360_vm12, %v2361_v5, %v2359_v50  ;;  %v2378_v43 = vmul.f32 0.5, %v2377_v0  ;;  %v8263_v61 = vpop.eup %4427  ;;  %4433 = vrsqrt.f32 %v6560_v53  ;;  %v8266_v11 = vmax.f32 %v2724_v4, 1e-08 }
 0x36e   : > { %v2723_v25 = vmul.f32 %v2362_v33, %v9419_v1  ;;  %vm2394_vm10 = vcmp.eq.f32.partialorder %v8174_v32, inf  ;;  %v8270_v52 = vpop.eup %4429  ;;  %v3915_v8 = vperm.slane %v8206_v54, %v6734_v49  ;;  %v3916_v5 = vperm.slane %v3564_v6, %v6774_v14 }
 0x36f   : > { %v2395_v16 = vsel %vm2394_vm10, %v8174_v32, %v2393_v18  ;;  %v2379_v56 = vsub.f32 1.5, %v2378_v43  ;;  %v1575_v35 = vsel %vm1574_vm3, %v6430_v44, %v8193_v12  ;;  %v1604_v51 = vmul.f32 %v7846_v38, %v6503_v7 }
 0x370   : > { %4435 = vrcp.f32 %v8266_v11  ;;  %v2397_v55 = vand.u32 2147483648, %v8174_v32  ;;  %v3917_v54 = vsel %vm3844_vm7, %v3916_v5, %v3915_v8  ;;  %v8287_v17 = vmax.f32 %v2723_v25, 1e-08 }
 0x371   : > { %v8284_v29 = vpop.eup %4431  ;;  %vm2396_vm11 = vcmp.eq.f32.partialorder %v8174_v32, 0.0  ;;  %v2556_v48 = vmul.f32 %v8263_v61, %v8234_v42  ;;  %v8294_v12 = vsel %vm3939_vm4, %v8230_v9, %v3917_v54  ;;  %v3596_v41 = vmul.f32 %v8270_v52, %v8238_v30 }
 0x372   : > { %v2398_v40 = vsel %vm2396_vm11, %v2397_v55, %v2395_v16  ;;  %v2380_v21 = vmul.f32 %v4426_v60, %v2379_v56  ;;  %v9420_v45 = vand.u32 2147483648, %v6411_v63  ;;  %v8308_v32 = vmul.f32 %v6738_v59, %v1631_v26 }
 0x373   : > { %v8311_v9 = vmul.f32 0.5, %v8197_v13  ;;  %4437 = vrcp.f32 %v8287_v17  ;;  %v8314_v36 = vpop.eup %4433  ;;  %v9421_v60 = vand.u32 2147483648, %v6430_v44  ;;  %v8323_v63 = vmul.f32 %v7846_v38, %v1604_v51  ;;  %v8353_v51 = vpop.xlane.xlu1 %1893 }
 0x374   : > { %v8303_v28 = vsel %vm1588_vm14, %v9420_v45, %v8038_v2  ;;  %v2726_v2 = vmul.f32 %v2398_v40, %v9422_v31  ;;  %v2400_v59 = vmul.f32 %v8284_v29, %v8243_v3  ;;  %v2381_v26 = vmul.f32 %v2380_v21, %v8203_v58 }
 0x375   : > { %v8320_v46 = vsel %vm1576_vm8, %v9421_v60, %v1575_v35  ;;  %vm2382_vm4 = vcmp.eq.f32.partialorder %v8203_v58, inf  ;;  %vm2384_vm2 = vcmp.eq.f32.partialorder %v8203_v58, 0.0  ;;  %v2557_v13 = vmul.f32 %v8263_v61, %v2556_v48 }
 0x376   : > { %v4436_v57 = vpop.eup %4435  ;;  %v3597_v44 = vsub.f32 1.0, %v3596_v41  ;;  %v3379_v20 = vand.u32 2147483647, %v8266_v11  ;;  %v3381_v0 = vand.u32 2147483648, %v8266_v11  ;;  %v8334_v23 = vmax.f32 %v2726_v2, 1e-08 }
 0x377   : > { %v3371_v37 = vmul.f32 %v4436_v57, %v8266_v11  ;;  %v2383_v4 = vsel %vm2382_vm4, %v8203_v58, %v2381_v26  ;;  %v2385_v50 = vand.u32 2147483648, %v8203_v58  ;;  %v2558_v62 = vmul.f32 0.5, %v2557_v13 }
 0x378   : > { %v3604_v6 = vand.u32 2147483647, %v8238_v30  ;;  %4439 = vrcp.f32 %v8334_v23  ;;  %v2565_v33 = vand.u32 2147483648, %v8234_v42  ;;  %v2401_v18 = vmul.f32 %v8284_v29, %v2400_v59 }
 0x379   : > { %v4438_v43 = vpop.eup %4437  ;;  %v3606_v1 = vand.u32 2147483648, %v8238_v30  ;;  %v3372_v25 = vsub.f32 1.0, %v3371_v37  ;;  %vm3375_vm3 = vweird.f32 %v8266_v11  ;;  %v2386_v8 = vsel %vm2384_vm2, %v2385_v50, %v2383_v4  ;;  %v9427_v37 = vld [vmem:[#allocation56_spill] sm:$0xff] }
 0x37a   : > { %v3598_v5 = vmul.f32 %v8270_v52, %v3597_v44  ;;  %vm8348_vm1 = vcmp.eq.f32.partialorder %v3379_v20, 8.507059e+37  ;;  %v3382_v56 = vor.u32 1.1754944e-38, %v3381_v0  ;;  %v3356_v35 = vmul.f32 %v4438_v43, %v8287_v17 }
 0x37b   : > { %v3373_v55 = vmul.f32 %v4436_v57, %v3372_v25  ;;  %vm3376_vm0 = vweird.f32 %v4436_v57  ;;  %v2725_v54 = vmul.f32 %v2386_v8, %v6492_v15  ;;  %v2559_v48 = vsub.f32 1.5, %v2558_v62 }
 0x37c   : > { %vm2562_vm13 = vcmp.eq.f32.partialorder %v8234_v42, inf  ;;  %v3357_v58 = vsub.f32 1.0, %v3356_v35  ;;  %v3364_v41 = vand.u32 2147483647, %v8287_v17  ;;  %v3366_v40 = vand.u32 2147483648, %v8287_v17  ;;  %vm3377_vm15 = vmor %vm3375_vm3, %vm3376_vm0 }
 0x37d   : > { %vm2564_vm14 = vcmp.eq.f32.partialorder %v8234_v42, 0.0  ;;  %v2402_v21 = vmul.f32 0.5, %v2401_v18  ;;  %v3374_v45 = vadd.f32 %v4436_v57, %v3373_v55  ;;  %v8360_v60 = vmax.f32 %v2725_v54, 1e-08  ;;  %v9428_v55 = vld [vmem:[#allocation57_spill] sm:$0xff] }
 0x37e   : > { %v2560_v31 = vmul.f32 %v8263_v61, %v2559_v48  ;;  %4441 = vrsqrt.f32 %v8353_v51  ;;  %v4440_v2 = vpop.eup %4439  ;;  %v3358_v15 = vmul.f32 %v4438_v43, %v3357_v58  ;;  %vm3360_vm8 = vweird.f32 %v8287_v17 }
 0x37f   : > { %vm3361_vm12 = vweird.f32 %v4438_v43  ;;  %v2403_v59 = vsub.f32 1.5, %v2402_v21  ;;  %vm2406_vm10 = vcmp.eq.f32.partialorder %v8243_v3, inf  ;;  %v8369_v26 = vadd.f32 %v8270_v52, %v3598_v5  ;;  %v8391_v5 = vpop.xlane.xlu0 %1890 }
 0x380   : > { %vm3601_vm11 = vweird.f32 %v8270_v52  ;;  %v3378_v13 = vsel %vm3377_vm15, %v4436_v57, %v3374_v45  ;;  %v3401_v61 = vmul.f32 %v4440_v2, %v8334_v23  ;;  %4443 = vrcp.f32 %v8360_v60  ;;  %vm3362_vm0 = vmor %vm3360_vm8, %vm3361_vm12 }
 0x381   : > { %v3383_v11 = vsel %vm8348_vm1, %v3382_v56, %v3378_v13  ;;  %v3359_v44 = vadd.f32 %v4438_v43, %v3358_v15  ;;  %vm8376_vm4 = vcmp.eq.f32.partialorder %v3364_v41, 8.507059e+37  ;;  %v3367_v0 = vor.u32 1.1754944e-38, %v3366_v40 }
 0x382   : > { %vm2408_vm2 = vcmp.eq.f32.partialorder %v8243_v3, 0.0  ;;  %vm3600_vm3 = vweird.f32 %v8238_v30  ;;  %v3384_v4 = vmul.f32 %v3383_v11, %v9427_v37  ;;  %v3402_v57 = vsub.f32 1.0, %v3401_v61 }
 0x383   : > { %v3409_v50 = vand.u32 2147483647, %v8334_v23  ;;  %v2561_v62 = vmul.f32 %v2560_v31, %v8234_v42  ;;  %v3363_v18 = vsel %vm3362_vm0, %v4438_v43, %v3359_v44  ;;  %vm3405_vm1 = vweird.f32 %v8334_v23 }
 0x384   : > { %v3411_v25 = vand.u32 2147483648, %v8334_v23  ;;  %v2404_v8 = vmul.f32 %v8284_v29, %v2403_v59  ;;  %v4442_v16 = vpop.eup %4441  ;;  %v3898_v56 = vperm.slane %v3384_v4, %v6774_v14  ;;  %v3368_v17 = vsel %vm8376_vm4, %v3367_v0, %v3363_v18 }
 0x385   : > { %v3403_v35 = vmul.f32 %v4440_v2, %v3402_v57  ;;  %vm3406_vm15 = vweird.f32 %v4440_v2  ;;  %v3369_v54 = vmul.f32 %v3368_v17, %v9428_v55  ;;  %v2563_v43 = vsel %vm2562_vm13, %v8234_v42, %v2561_v62  ;;  %v9437_v17 = vld [vmem:[#allocation60_spill] sm:$0xff] }
 0x386   : > { %v2405_v48 = vmul.f32 %v2404_v8, %v8243_v3  ;;  %v2580_v29 = vmul.f32 %v4442_v16, %v8353_v51  ;;  %v4444_v58 = vpop.eup %4443  ;;  %vm8404_vm8 = vcmp.eq.f32.partialorder %v3604_v6, 8.507059e+37  ;;  %vm8408_vm12 = vcmp.eq.f32.partialorder %v3409_v50, 8.507059e+37  ;;  %vm3407_vm13 = vmor %vm3405_vm1, %vm3406_vm15 }
 0x387   : > { %v3404_v40 = vadd.f32 %v4440_v2, %v3403_v35  ;;  %v2566_v45 = vsel %vm2564_vm14, %v2565_v33, %v2563_v43  ;;  %4445 = vrsqrt.f32 %v8391_v5  ;;  %v3897_v31 = vperm.slane %v3369_v54, %v6734_v49 }
 0x388   : > { %v3412_v6 = vor.u32 1.1754944e-38, %v3411_v25  ;;  %v3386_v15 = vmul.f32 %v4444_v58, %v8360_v60  ;;  %v2740_v59 = vmul.f32 %v2566_v45, %v7158_v24  ;;  %v2407_v61 = vsel %vm2406_vm10, %v8243_v3, %v2405_v48  ;;  %vm8440_vm10 = vmor %vm3600_vm3, %vm3601_vm11  ;;  %v9436_v25 = vld [vmem:[#allocation98_spill] sm:$0xff] }
 0x389   : > { %v3408_v13 = vsel %vm3407_vm13, %v4440_v2, %v3404_v40  ;;  %v2409_v42 = vand.u32 2147483648, %v8243_v3  ;;  %v2581_v33 = vmul.f32 %v4442_v16, %v2580_v29  ;;  %v3899_v11 = vsel %vm3844_vm7, %v3898_v56, %v3897_v31 }
 0x38a   : > { %v3387_v44 = vsub.f32 1.0, %v3386_v15  ;;  %v3396_v20 = vand.u32 2147483648, %v8360_v60  ;;  %v8428_v23 = vmax.f32 %v2740_v59, 1e-08  ;;  %vm9433_vm14 = vcmask 1042434   ;;  %v8471_v15 = vpop.xlane.xlu1 %1896 }
 0x38b   : > { %v3961_v0 = vsel %vm9433_vm14, %v3899_v11, %v8181_v47  ;;  %v3413_v24 = vsel %vm8408_vm12, %v3412_v6, %v3408_v13  ;;  %v2410_v2 = vsel %vm2408_vm2, %v2409_v42, %v2407_v61  ;;  %v2582_v37 = vmul.f32 0.5, %v2581_v33  ;;  %v8446_v47 = vpop.xlane.xlu2 %1899 }
 0x38c   : > { %v3388_v57 = vmul.f32 %v4444_v58, %v3387_v44  ;;  %vm3391_vm4 = vweird.f32 %v4444_v58  ;;  %v3394_v50 = vand.u32 2147483647, %v8360_v60  ;;  %4447 = vrcp.f32 %v8428_v23 }
 0x38d   : > { %v4446_v62 = vpop.eup %4445  ;;  %v3603_v3 = vsel %vm8440_vm10, %v8270_v52, %v8369_v26  ;;  %v3607_v18 = vor.u32 1.1754944e-38, %v3606_v1  ;;  %v2727_v8 = vmul.f32 %v2410_v2, %v9436_v25  ;;  %v2583_v56 = vsub.f32 1.5, %v2582_v37 }
 0x38e   : > { %v3414_v35 = vmul.f32 %v3413_v24, %v9437_v17  ;;  %v3389_v55 = vadd.f32 %v4444_v58, %v3388_v57  ;;  %vm3390_vm11 = vweird.f32 %v8360_v60  ;;  %v2568_v54 = vmul.f32 %v4446_v62, %v8391_v5 }
 0x38f   : > { %vm3392_vm2 = vmor %vm3390_vm11, %vm3391_vm4  ;;  %v3397_v43 = vor.u32 1.1754944e-38, %v3396_v20  ;;  %v8458_v48 = vmax.f32 %v2727_v8, 1e-08  ;;  %v2584_v29 = vmul.f32 %v4442_v16, %v2583_v56  ;;  %4449 = vrsqrt.f32 %v8446_v47  ;;  %v9438_v16 = vld [vmem:[#allocation55_spill] sm:$0xff] }
 0x390   : > { %v3608_v30 = vsel %vm8404_vm8, %v3607_v18, %v3603_v3  ;;  %v3393_v52 = vsel %vm3392_vm2, %v4444_v58, %v3389_v55  ;;  %vm3395_vm3 = vcmp.eq.f32.partialorder %v3394_v50, 8.507059e+37  ;;  %v2569_v1 = vmul.f32 %v4446_v62, %v2568_v54  ;;  %v9439_v58 = vld [vmem:[#allocation71_spill] sm:$0xff]  ;;  %v8487_v50 = vpop.xlane.xlu0 %1851 }
 0x391   : > { %v1619_v26 = vsub.f32 1.5, %v8311_v9  ;;  %v8465_v40 = vmul.f32 0.5, %v8323_v63  ;;  %v3398_v60 = vsel %vm3395_vm3, %v3397_v43, %v3393_v52  ;;  %4451 = vrcp.f32 %v8458_v48 }
 0x392   : > { %v4448_v21 = vpop.eup %4447  ;;  %v3901_v45 = vperm.slane %v3414_v35, %v6774_v14  ;;  %v3399_v31 = vmul.f32 %v3398_v60, %v9438_v16  ;;  %v2585_v6 = vmul.f32 %v2584_v29, %v8353_v51  ;;  %v2570_v41 = vmul.f32 0.5, %v2569_v1  ;;  %v9441_v16 = vld [vmem:[#allocation70_spill] sm:$0xff] }
 0x393   : > { %v8474_v59 = vmul.f32 %v3608_v30, %v9439_v58  ;;  %v3611_v13 = vmul.f32 %v4448_v21, %v8428_v23  ;;  %vm2586_vm0 = vcmp.eq.f32.partialorder %v8353_v51, inf  ;;  %v2589_v63 = vand.u32 2147483648, %v8353_v51  ;;  %v9440_v30 = vld [vmem:[#allocation105_spill] sm:$0xff]  ;;  %v8513_v60 = vpop.xlane.xlu2 %1902 }
 0x394   : > { %v3900_v61 = vperm.slane %v3399_v31, %v6734_v49  ;;  %v2587_v42 = vsel %vm2586_vm0, %v8353_v51, %v2585_v6  ;;  %vm2588_vm1 = vcmp.eq.f32.partialorder %v8353_v51, 0.0  ;;  %v2571_v33 = vsub.f32 1.5, %v2570_v41 }
 0x395   : > { %v4450_v11 = vpop.eup %4449  ;;  %v3612_v44 = vsub.f32 1.0, %v3611_v13  ;;  %v3621_v20 = vand.u32 2147483648, %v8428_v23  ;;  %v2590_v24 = vsel %vm2588_vm1, %v2589_v63, %v2587_v42  ;;  %4453 = vrsqrt.f32 %v8471_v15 }
 0x396   : > { %v3902_v2 = vsel %vm3844_vm7, %v3901_v45, %v3900_v61  ;;  %v2742_v37 = vmul.f32 %v2590_v24, %v6716_v39  ;;  %v2572_v4 = vmul.f32 %v4446_v62, %v2571_v33  ;;  %v2604_v57 = vmul.f32 %v4450_v11, %v8446_v47 }
 0x397   : > { %v8489_v3 = vpop.eup %4451  ;;  %v8492_v51 = vsel %vm3943_vm6, %v3902_v2, %v3961_v0  ;;  %v3613_v18 = vmul.f32 %v4448_v21, %v3612_v44  ;;  %vm3616_vm15 = vweird.f32 %v4448_v21  ;;  %v3619_v25 = vand.u32 2147483647, %v8428_v23 }
 0x398   : > { %v8495_v8 = vmax.f32 %v2742_v37, 1e-08  ;;  %v2573_v56 = vmul.f32 %v2572_v4, %v8391_v5  ;;  %vm2574_vm8 = vcmp.eq.f32.partialorder %v8391_v5, inf  ;;  %vm2576_vm12 = vcmp.eq.f32.partialorder %v8391_v5, 0.0 }
 0x399   : > { %v3614_v39 = vadd.f32 %v4448_v21, %v3613_v18  ;;  %vm3615_vm13 = vweird.f32 %v8428_v23  ;;  %v2605_v62 = vmul.f32 %v4450_v11, %v2604_v57  ;;  %4455 = vrsqrt.f32 %v8487_v50 }
 0x39a   : > { %vm3617_vm14 = vmor %vm3615_vm13, %vm3616_vm15  ;;  %v3622_v0 = vor.u32 1.1754944e-38, %v3621_v20  ;;  %v3416_v17 = vmul.f32 %v8489_v3, %v8458_v48  ;;  %4457 = vrcp.f32 %v8495_v8  ;;  %v2577_v35 = vand.u32 2147483648, %v8391_v5 }
 0x39b   : > { %v8506_v55 = vpop.eup %4453  ;;  %v3618_v54 = vsel %vm3617_vm14, %v4448_v21, %v3614_v39  ;;  %vm3620_vm10 = vcmp.eq.f32.partialorder %v3619_v25, 8.507059e+37  ;;  %v2575_v43 = vsel %vm2574_vm8, %v8391_v5, %v2573_v56  ;;  %v2606_v29 = vmul.f32 0.5, %v2605_v62 }
 0x39c   : > { %v1607_v23 = vsub.f32 1.5, %v8465_v40  ;;  %4459 = vrsqrt.f32 %v9440_v30  ;;  %v3623_v52 = vsel %vm3620_vm10, %v3622_v0, %v3618_v54  ;;  %v2578_v1 = vsel %vm2576_vm12, %v2577_v35, %v2575_v43 }
 0x39d   : > { %v3921_v45 = vperm.slane %v8474_v59, %v6734_v49  ;;  %v3624_v31 = vmul.f32 %v3623_v52, %v9441_v16  ;;  %v2741_v21 = vmul.f32 %v2578_v1, %v6890_v10  ;;  %v2607_v6 = vsub.f32 1.5, %v2606_v29 }
 0x39e   : > { %v3417_v41 = vsub.f32 1.0, %v3416_v17  ;;  %v3426_v58 = vand.u32 2147483648, %v8458_v48  ;;  %vm2610_vm4 = vcmp.eq.f32.partialorder %v8446_v47, inf  ;;  %v2592_v13 = vmul.f32 %v8506_v55, %v8471_v15  ;;  %v8551_v17 = vpop.xlane.xlu1 %1857 }
 0x39f   : > { %v4456_v5 = vpop.eup %4455  ;;  %v3922_v63 = vperm.slane %v3624_v31, %v6774_v14  ;;  %v8524_v61 = vmax.f32 %v2741_v21, 1e-08  ;;  %v2608_v42 = vmul.f32 %v4450_v11, %v2607_v6  ;;  %4461 = vrsqrt.f32 %v8513_v60 }
 0x3a0   : > { %v4458_v59 = vpop.eup %4457  ;;  %v3424_v10 = vand.u32 2147483647, %v8458_v48  ;;  %vm2612_vm11 = vcmp.eq.f32.partialorder %v8446_v47, 0.0  ;;  %v2593_v33 = vmul.f32 %v8506_v55, %v2592_v13  ;;  %v2412_v44 = vmul.f32 %v4456_v5, %v8487_v50 }
 0x3a1   : > { %v3923_v20 = vsel %vm3844_vm7, %v3922_v63, %v3921_v45  ;;  %vm3420_vm2 = vweird.f32 %v8458_v48  ;;  %v3641_v24 = vmul.f32 %v4458_v59, %v8495_v8  ;;  %v3649_v2 = vand.u32 2147483647, %v8495_v8 }
 0x3a2   : > { %v2613_v11 = vand.u32 2147483648, %v8446_v47  ;;  %v8536_v37 = vpop.eup %4459  ;;  %vm9442_vm3 = vcmask 1042434   ;;  %v3427_v57 = vor.u32 1.1754944e-38, %v3426_v58  ;;  %4463 = vrcp.f32 %v8524_v61 }
 0x3a3   : > { %v8540_v4 = vsel %vm9442_vm3, %v3923_v20, %v8294_v12  ;;  %v2601_v18 = vand.u32 2147483648, %v8471_v15  ;;  %v3418_v25 = vmul.f32 %v8489_v3, %v3417_v41  ;;  %vm3421_vm0 = vweird.f32 %v8489_v3 }
 0x3a4   : > { %v3642_v56 = vsub.f32 1.0, %v3641_v24  ;;  %v2609_v39 = vmul.f32 %v2608_v42, %v8446_v47  ;;  %vm2598_vm1 = vcmp.eq.f32.partialorder %v8471_v15, inf  ;;  %vm3645_vm15 = vweird.f32 %v8495_v8  ;;  %vm8588_vm3 = vmor %vm3420_vm2, %vm3421_vm0 }
 0x3a5   : > { %v3651_v62 = vand.u32 2147483648, %v8495_v8  ;;  %v2594_v12 = vmul.f32 0.5, %v2593_v33  ;;  %vm2600_vm8 = vcmp.eq.f32.partialorder %v8471_v15, 0.0  ;;  %v2413_v0 = vmul.f32 %v4456_v5, %v2412_v44  ;;  %v4462_v35 = vpop.eup %4461 }
 0x3a6   : > { %vm8553_vm12 = vcmp.eq.f32.partialorder %v3424_v10, 8.507059e+37  ;;  %v3643_v43 = vmul.f32 %v4458_v59, %v3642_v56  ;;  %vm3646_vm13 = vweird.f32 %v4458_v59  ;;  %vm8557_vm14 = vcmp.eq.f32.partialorder %v3649_v2, 8.507059e+37 }
 0x3a7   : > { %v2611_v52 = vsel %vm2610_vm4, %v8446_v47, %v2609_v39  ;;  %vm2418_vm10 = vcmp.eq.f32.partialorder %v8487_v50, inf  ;;  %v2595_v45 = vsub.f32 1.5, %v2594_v12  ;;  %v2414_v16 = vmul.f32 0.5, %v2413_v0  ;;  %vm8573_vm4 = vmor %vm3645_vm15, %vm3646_vm13 }
 0x3a8   : > { %v2614_v1 = vsel %vm2612_vm11, %v2613_v11, %v2611_v52  ;;  %v2616_v31 = vmul.f32 %v4462_v35, %v8513_v60  ;;  %v3419_v21 = vadd.f32 %v8489_v3, %v3418_v25  ;;  %v3644_v6 = vadd.f32 %v4458_v59, %v3643_v43  ;;  %v4464_v58 = vpop.eup %4463 }
 0x3a9   : > { %v2744_v41 = vmul.f32 %v2614_v1, %v8303_v28  ;;  %4465 = vrsqrt.f32 %v8551_v17  ;;  %v3652_v47 = vor.u32 1.1754944e-38, %v3651_v62  ;;  %v2596_v63 = vmul.f32 %v8506_v55, %v2595_v45  ;;  %v8615_v1 = vpop.xlane.xlu0 %1854  ;;  %v9451_v45 = vld [vmem:[#allocation74_spill] sm:$0xff] }
 0x3aa   : > { %v2415_v42 = vsub.f32 1.5, %v2414_v16  ;;  %v2617_v10 = vmul.f32 %v4462_v35, %v2616_v31  ;;  %v3648_v33 = vsel %vm8573_vm4, %v4458_v59, %v3644_v6  ;;  %v3626_v44 = vmul.f32 %v4464_v58, %v8524_v61 }
 0x3ab   : > { %v8581_v28 = vmax.f32 %v2744_v41, 1e-08  ;;  %vm2420_vm11 = vcmp.eq.f32.partialorder %v8487_v50, 0.0  ;;  %v2597_v55 = vmul.f32 %v2596_v63, %v8471_v15  ;;  %v2421_v24 = vand.u32 2147483648, %v8487_v50 }
 0x3ac   : > { %v2416_v20 = vmul.f32 %v4456_v5, %v2415_v42  ;;  %v2618_v59 = vmul.f32 0.5, %v2617_v10  ;;  %v3423_v2 = vsel %vm8588_vm3, %v8489_v3, %v3419_v21  ;;  %v3627_v11 = vsub.f32 1.0, %v3626_v44 }
 0x3ad   : > { %v3634_v25 = vand.u32 2147483647, %v8524_v61  ;;  %4467 = vrcp.f32 %v8581_v28  ;;  %v3653_v48 = vsel %vm8557_vm14, %v3652_v47, %v3648_v33  ;;  %v3636_v56 = vand.u32 2147483648, %v8524_v61  ;;  %v9454_v33 = vld [vmem:[#allocation75_spill] sm:$0xff] }
 0x3ae   : > { %v2599_v5 = vsel %vm2598_vm1, %v8471_v15, %v2597_v55  ;;  %v2417_v39 = vmul.f32 %v2416_v20, %v8487_v50  ;;  %v3628_v12 = vmul.f32 %v4464_v58, %v3627_v11  ;;  %vm3631_vm2 = vweird.f32 %v4464_v58 }
 0x3af   : > { %v4466_v62 = vpop.eup %4465  ;;  %v2602_v3 = vsel %vm2600_vm8, %v2601_v18, %v2599_v5  ;;  %v2619_v0 = vsub.f32 1.5, %v2618_v59  ;;  %v3428_v43 = vsel %vm8553_vm12, %v3427_v57, %v3423_v2  ;;  %vm3630_vm0 = vweird.f32 %v8524_v61 }
 0x3b0   : > { %v2743_v29 = vmul.f32 %v2602_v3, %v8320_v46  ;;  %v2419_v52 = vsel %vm2418_vm10, %v8487_v50, %v2417_v39  ;;  %v3654_v16 = vmul.f32 %v3653_v48, %v9451_v45  ;;  %v3629_v31 = vadd.f32 %v4464_v58, %v3628_v12  ;;  %vm3632_vm1 = vmor %vm3630_vm0, %vm3631_vm2  ;;  %v9452_v46 = vld [vmem:[#allocation102_spill] sm:$0xff]  ;;  %v9453_v50 = vld [vmem:[#allocation59_spill] sm:$0xff] }
 0x3b1   : > { %v2422_v15 = vsel %vm2420_vm11, %v2421_v24, %v2419_v52  ;;  %v2436_v18 = vmul.f32 %v4466_v62, %v8551_v17  ;;  %vm3635_vm15 = vcmp.eq.f32.partialorder %v3634_v25, 8.507059e+37  ;;  %v3637_v57 = vor.u32 1.1754944e-38, %v3636_v56 }
 0x3b2   : > { %v8621_v61 = vmax.f32 %v2743_v29, 1e-08  ;;  %v2728_v54 = vmul.f32 %v2422_v15, %v9452_v46  ;;  %v3633_v6 = vsel %vm3632_vm1, %v4464_v58, %v3629_v31  ;;  %v2620_v41 = vmul.f32 %v4462_v35, %v2619_v0  ;;  %v9462_v46 = vld [vmem:[#allocation58_spill] sm:$0xff] }
 0x3b3   : > { %v4468_v21 = vpop.eup %4467  ;;  %v2437_v13 = vmul.f32 %v4466_v62, %v2436_v18  ;;  %4469 = vrsqrt.f32 %v8615_v1  ;;  %v3638_v47 = vsel %vm3635_vm15, %v3637_v57, %v3633_v6  ;;  %vm2622_vm8 = vcmp.eq.f32.partialorder %v8513_v60, inf }
 0x3b4   : > { %v3671_v63 = vmul.f32 %v4468_v21, %v8581_v28  ;;  %4471 = vrcp.f32 %v8621_v61  ;;  %v8629_v42 = vmul.f32 %v3428_v43, %v9453_v50  ;;  %v3925_v10 = vperm.slane %v3654_v16, %v6774_v14 }
 0x3b5   : > { %v3639_v44 = vmul.f32 %v3638_v47, %v9454_v33  ;;  %vm2624_vm12 = vcmp.eq.f32.partialorder %v8513_v60, 0.0  ;;  %v8634_v58 = vmax.f32 %v2728_v54, 1e-08  ;;  %v2625_v8 = vand.u32 2147483648, %v8513_v60  ;;  %v8667_v47 = vpop.xlane.xlu2 %1863 }
 0x3b6   : > { %v3672_v35 = vsub.f32 1.0, %v3671_v63  ;;  %v2438_v55 = vmul.f32 0.5, %v2437_v13  ;;  %v3679_v24 = vand.u32 2147483647, %v8581_v28  ;;  %v3681_v59 = vand.u32 2147483648, %v8581_v28  ;;  %v9457_v63 = vld [vmem:[#allocation78_spill] sm:$0xff] }
 0x3b7   : > { %v3924_v20 = vperm.slane %v3639_v44, %v6734_v49  ;;  %v2621_v2 = vmul.f32 %v2620_v41, %v8513_v60  ;;  %vm3676_vm13 = vweird.f32 %v4468_v21  ;;  %4473 = vrcp.f32 %v8634_v58 }
 0x3b8   : > { %v3673_v11 = vmul.f32 %v4468_v21, %v3672_v35  ;;  %vm2442_vm14 = vcmp.eq.f32.partialorder %v8551_v17, inf  ;;  %vm3675_vm10 = vweird.f32 %v8581_v28  ;;  %v3664_v56 = vand.u32 2147483647, %v8621_v61 }
 0x3b9   : > { %v4470_v25 = vpop.eup %4469  ;;  %v3926_v48 = vsel %vm3844_vm7, %v3925_v10, %v3924_v20  ;;  %v2439_v5 = vsub.f32 1.5, %v2438_v55  ;;  %v3666_v0 = vand.u32 2147483648, %v8621_v61  ;;  %vm3677_vm4 = vmor %vm3675_vm10, %vm3676_vm13  ;;  %vm3680_vm11 = vcmp.eq.f32.partialorder %v3679_v24, 8.507059e+37  ;;  %v9458_v24 = vld [vmem:[#allocation100_spill] sm:$0xff] }
 0x3ba   : > { %v4472_v39 = vpop.eup %4471  ;;  %v8648_v12 = vsel %vm3943_vm6, %v3926_v48, %v8540_v4  ;;  %v3674_v3 = vadd.f32 %v4468_v21, %v3673_v11  ;;  %v2424_v43 = vmul.f32 %v4470_v25, %v8615_v1  ;;  %v3682_v29 = vor.u32 1.1754944e-38, %v3681_v59 }
 0x3bb   : > { %v3656_v52 = vmul.f32 %v4472_v39, %v8621_v61  ;;  %v2623_v28 = vsel %vm2622_vm8, %v8513_v60, %v2621_v2  ;;  %v2440_v16 = vmul.f32 %v4466_v62, %v2439_v5  ;;  %vm2444_vm3 = vcmp.eq.f32.partialorder %v8551_v17, 0.0 }
 0x3bc   : > { %v3678_v45 = vsel %vm3677_vm4, %v4468_v21, %v3674_v3  ;;  %v2425_v4 = vmul.f32 %v4470_v25, %v2424_v43  ;;  %vm3660_vm6 = vweird.f32 %v8621_v61  ;;  %v2445_v18 = vand.u32 2147483648, %v8551_v17  ;;  %v9461_v3 = vld [vmem:[#allocation73_spill] sm:$0xff] }
 0x3bd   : > { %v3683_v31 = vsel %vm3680_vm11, %v3682_v29, %v3678_v45  ;;  %v3657_v15 = vsub.f32 1.0, %v3656_v52  ;;  %v4474_v57 = vpop.eup %4473  ;;  %vm8659_vm2 = vcmp.eq.f32.partialorder %v3664_v56, 8.507059e+37  ;;  %v3667_v54 = vor.u32 1.1754944e-38, %v3666_v0 }
 0x3be   : > { %v2626_v6 = vsel %vm2624_vm12, %v2625_v8, %v2623_v28  ;;  %v2441_v62 = vmul.f32 %v2440_v16, %v8551_v17  ;;  %vm3661_vm0 = vweird.f32 %v4472_v39  ;;  %v3431_v41 = vmul.f32 %v4474_v57, %v8634_v58  ;;  %v8706_v16 = vpop.xlane.xlu1 %1860 }
 0x3bf   : > { %v3658_v21 = vmul.f32 %v4472_v39, %v3657_v15  ;;  %v2426_v13 = vmul.f32 0.5, %v2425_v4  ;;  %v3684_v50 = vmul.f32 %v3683_v31, %v9457_v63  ;;  %v3439_v10 = vand.u32 2147483647, %v8634_v58  ;;  %vm3662_vm1 = vmor %vm3660_vm6, %vm3661_vm0 }
 0x3c0   : > { %v3441_v33 = vand.u32 2147483648, %v8634_v58  ;;  %v2443_v60 = vsel %vm2442_vm14, %v8551_v17, %v2441_v62  ;;  %v3432_v35 = vsub.f32 1.0, %v3431_v41  ;;  %vm3435_vm15 = vweird.f32 %v8634_v58 }
 0x3c1   : > { %v3659_v44 = vadd.f32 %v4472_v39, %v3658_v21  ;;  %v2446_v8 = vsel %vm2444_vm3, %v2445_v18, %v2443_v60  ;;  %v2427_v55 = vsub.f32 1.5, %v2426_v13  ;;  %v2745_v20 = vmul.f32 %v2626_v6, %v7826_v34  ;;  %v9463_v6 = vld [vmem:[#allocation101_spill] sm:$0xff] }
 0x3c2   : > { %v2730_v59 = vmul.f32 %v2446_v8, %v9458_v24  ;;  %4475 = vrsqrt.f32 %v8667_v47  ;;  %v3433_v11 = vmul.f32 %v4474_v57, %v3432_v35  ;;  %vm3436_vm8 = vweird.f32 %v4474_v57 }
 0x3c3   : > { %v3663_v2 = vsel %vm3662_vm1, %v4472_v39, %v3659_v44  ;;  %v2428_v48 = vmul.f32 %v4470_v25, %v2427_v55  ;;  %vm1634_vm12 = vcmp.eq.f32.partialorder %v6465_v19, inf  ;;  %vm8686_vm13 = vcmp.eq.f32.partialorder %v3439_v10, 8.507059e+37  ;;  %vm3437_vm14 = vmor %vm3435_vm15, %vm3436_vm8 }
 0x3c4   : > { %v3668_v17 = vsel %vm8659_vm2, %v3667_v54, %v3663_v2  ;;  %v3442_v56 = vor.u32 1.1754944e-38, %v3441_v33  ;;  %v8690_v5 = vmax.f32 %v2730_v59, 1e-08  ;;  %v3928_v34 = vperm.slane %v3684_v50, %v6774_v14 }
 0x3c5   : > { %v3669_v0 = vmul.f32 %v3668_v17, %v9461_v3  ;;  %v3434_v39 = vadd.f32 %v4474_v57, %v3433_v11  ;;  %v2429_v43 = vmul.f32 %v2428_v48, %v8615_v1  ;;  %v8697_v25 = vmax.f32 %v2745_v20, 1e-08 }
 0x3c6   : > { %4477 = vrcp.f32 %v8690_v5  ;;  %vm2430_vm10 = vcmp.eq.f32.partialorder %v8615_v1, inf  ;;  %v2433_v29 = vand.u32 2147483648, %v8615_v1  ;;  %vm1636_vm4 = vcmp.eq.f32.partialorder %v6465_v19, 0.0 }
 0x3c7   : > { %v3927_v52 = vperm.slane %v3669_v0, %v6734_v49  ;;  %v3438_v28 = vsel %vm3437_vm14, %v4474_v57, %v3434_v39  ;;  %v2431_v45 = vsel %vm2430_vm10, %v8615_v1, %v2429_v43  ;;  %vm2432_vm11 = vcmp.eq.f32.partialorder %v8615_v1, 0.0 }
 0x3c8   : > { %v4476_v58 = vpop.eup %4475  ;;  %v1633_v4 = vmul.f32 %v8308_v32, %v6465_v19  ;;  %v1620_v31 = vmul.f32 %v6967_v27, %v1619_v26  ;;  %v3443_v15 = vsel %vm8686_vm13, %v3442_v56, %v3438_v28  ;;  %v2434_v18 = vsel %vm2432_vm11, %v2433_v29, %v2431_v45 }
 0x3c9   : > { %v1608_v57 = vmul.f32 %v7846_v38, %v1607_v23  ;;  %v3929_v1 = vsel %vm3844_vm7, %v3928_v34, %v3927_v52  ;;  %v3444_v54 = vmul.f32 %v3443_v15, %v9462_v46  ;;  %v2729_v62 = vmul.f32 %v2434_v18, %v9463_v6  ;;  %v8735_v23 = vpop.xlane.xlu0 %1905 }
 0x3ca   : > { %v1652_v32 = vmul.f32 %v8314_v36, %v6560_v53  ;;  %v8725_v27 = vsel %vm3945_vm9, %v3929_v1, %v8648_v12  ;;  %4479 = vrcp.f32 %v8697_v25  ;;  %v2460_v9 = vmul.f32 %v4476_v58, %v8667_v47 }
 0x3cb   : > { %v3903_v38 = vperm.slane %v8629_v42, %v6734_v49  ;;  %v3904_v26 = vperm.slane %v3444_v54, %v6774_v14  ;;  %v8732_v40 = vmax.f32 %v2729_v62, 1e-08  ;;  %4481 = vrsqrt.f32 %v8706_v16 }
 0x3cc   : > { %v4478_v21 = vpop.eup %4477  ;;  %v1637_v41 = vand.u32 2147483648, %v6465_v19  ;;  %v1621_v12 = vmul.f32 %v1620_v31, %v6486_v22  ;;  %vm1622_vm3 = vcmp.eq.f32.partialorder %v6486_v22, inf  ;;  %v2461_v13 = vmul.f32 %v4476_v58, %v2460_v9 }
 0x3cd   : > { %v1635_v42 = vsel %vm1634_vm12, %v6465_v19, %v1633_v4  ;;  %v1625_v63 = vand.u32 2147483648, %v6486_v22  ;;  %v3905_v50 = vsel %vm3844_vm7, %v3904_v26, %v3903_v38  ;;  %v3461_v10 = vmul.f32 %v4478_v21, %v8690_v5  ;;  %v8772_v19 = vpop.xlane.xlu1 %1911 }
 0x3ce   : > { %v1609_v33 = vmul.f32 %v1608_v57, %v6503_v7  ;;  %v1653_v60 = vmul.f32 %v8314_v36, %v1652_v32  ;;  %v8750_v44 = vsel %vm3945_vm9, %v3905_v50, %v8492_v51  ;;  %4483 = vrcp.f32 %v8732_v40 }
 0x3cf   : > { %vm1610_vm6 = vcmp.eq.f32.partialorder %v6503_v7, inf  ;;  %v1613_v35 = vand.u32 2147483648, %v6503_v7  ;;  %v3462_v8 = vsub.f32 1.0, %v3461_v10  ;;  %v2462_v55 = vmul.f32 0.5, %v2461_v13 }
 0x3d0   : > { %v8755_v20 = vpop.eup %4479  ;;  %v8759_v24 = vsel %vm1636_vm4, %v1637_v41, %v1635_v42  ;;  %v8764_v59 = vsel %vm1622_vm3, %v6486_v22, %v1621_v12  ;;  %v8768_v51 = vmul.f32 %v8536_v37, %v9440_v30  ;;  %4485 = vrsqrt.f32 %v8735_v23 }
 0x3d1   : > { %v4482_v2 = vpop.eup %4481  ;;  %v3463_v11 = vmul.f32 %v4478_v21, %v3462_v8  ;;  %vm3466_vm9 = vweird.f32 %v4478_v21  ;;  %v3469_v48 = vand.u32 2147483647, %v8690_v5  ;;  %v2463_v17 = vsub.f32 1.5, %v2462_v55  ;;  %v8797_v4 = vpop.xlane.xlu0 %1908 }
 0x3d2   : > { %v8775_v61 = vsel %vm1610_vm6, %v6503_v7, %v1609_v33  ;;  %v8777_v56 = vmul.f32 0.5, %v1653_v60  ;;  %v3471_v34 = vand.u32 2147483648, %v8690_v5  ;;  %v2448_v3 = vmul.f32 %v4482_v2, %v8706_v16  ;;  %v9467_v33 = vld [vmem:[#allocation62_spill] sm:$0xff] }
 0x3d3   : > { %v3464_v0 = vadd.f32 %v4478_v21, %v3463_v11  ;;  %vm3465_vm2 = vweird.f32 %v8690_v5  ;;  %v2464_v39 = vmul.f32 %v4476_v58, %v2463_v17  ;;  %vm2466_vm0 = vcmp.eq.f32.partialorder %v8667_v47, inf }
 0x3d4   : > { %v4484_v43 = vpop.eup %4483  ;;  %v8785_v29 = vmul.f32 %v8755_v20, %v8697_v25  ;;  %vm8787_vm1 = vmor %vm3465_vm2, %vm3466_vm9  ;;  %vm2468_vm15 = vcmp.eq.f32.partialorder %v8667_v47, 0.0  ;;  %v2449_v28 = vmul.f32 %v4482_v2, %v2448_v3  ;;  %4487 = vrsqrt.f32 %v8772_v19 }
 0x3d5   : > { %v3468_v5 = vsel %vm8787_vm1, %v4478_v21, %v3464_v0  ;;  %vm3470_vm8 = vcmp.eq.f32.partialorder %v3469_v48, 8.507059e+37  ;;  %v3446_v45 = vmul.f32 %v4484_v43, %v8732_v40  ;;  %v2465_v58 = vmul.f32 %v2464_v39, %v8667_v47  ;;  %v9466_v21 = vld [vmem:[#allocation104_spill] sm:$0xff] }
 0x3d6   : > { %v4486_v31 = vpop.eup %4485  ;;  %vm1624_vm12 = vcmp.eq.f32.partialorder %v6486_v22, 0.0  ;;  %v3472_v15 = vor.u32 1.1754944e-38, %v3471_v34  ;;  %v3454_v18 = vand.u32 2147483647, %v8732_v40  ;;  %v2469_v57 = vand.u32 2147483648, %v8667_v47 }
 0x3d7   : > { %v2450_v1 = vmul.f32 0.5, %v2449_v28  ;;  %vm1612_vm13 = vcmp.eq.f32.partialorder %v6503_v7, 0.0  ;;  %v3447_v46 = vsub.f32 1.0, %v3446_v45  ;;  %v3456_v54 = vand.u32 2147483648, %v8732_v40 }
 0x3d8   : > { %v2467_v6 = vsel %vm2466_vm0, %v8667_v47, %v2465_v58  ;;  %v2628_v62 = vmul.f32 %v4486_v31, %v8735_v23  ;;  %v3473_v32 = vsel %vm3470_vm8, %v3472_v15, %v3468_v5  ;;  %4489 = vrsqrt.f32 %v8797_v4  ;;  %v8845_v15 = vpop.xlane.xlu2 %1866 }
 0x3d9   : > { %v2470_v9 = vsel %vm2468_vm15, %v2469_v57, %v2467_v6  ;;  %v2451_v38 = vsub.f32 1.5, %v2450_v1  ;;  %v3448_v26 = vmul.f32 %v4484_v43, %v3447_v46  ;;  %vm3451_vm14 = vweird.f32 %v4484_v43 }
 0x3da   : > { %v2732_v41 = vmul.f32 %v2470_v9, %v9466_v21  ;;  %v2629_v12 = vmul.f32 %v4486_v31, %v2628_v62  ;;  %v8812_v13 = vpop.eup %4487  ;;  %v1655_v42 = vsub.f32 1.5, %v8777_v56  ;;  %v3687_v50 = vsub.f32 1.0, %v8785_v29  ;;  %v9468_v29 = vld [vmem:[#allocation63_spill] sm:$0xff] }
 0x3db   : > { %vm3450_vm10 = vweird.f32 %v8732_v40  ;;  %v2452_v10 = vmul.f32 %v4482_v2, %v2451_v38  ;;  %v3474_v47 = vmul.f32 %v3473_v32, %v9467_v33  ;;  %v3449_v60 = vadd.f32 %v4484_v43, %v3448_v26 }
 0x3dc   : > { %v8818_v8 = vmax.f32 %v2732_v41, 1e-08  ;;  %v2630_v55 = vmul.f32 0.5, %v2629_v12  ;;  %vm3452_vm4 = vmor %vm3450_vm10, %vm3451_vm14  ;;  %v3457_v11 = vor.u32 1.1754944e-38, %v3456_v54  ;;  %vm2454_vm11 = vcmp.eq.f32.partialorder %v8706_v16, inf }
 0x3dd   : > { %v2453_v48 = vmul.f32 %v2452_v10, %v8706_v16  ;;  %v2652_v17 = vmul.f32 %v8812_v13, %v8772_v19  ;;  %v3453_v56 = vsel %vm3452_vm4, %v4484_v43, %v3449_v60  ;;  %vm3455_vm3 = vcmp.eq.f32.partialorder %v3454_v18, 8.507059e+37 }
 0x3de   : > { %4491 = vrcp.f32 %v8818_v8  ;;  %v2457_v40 = vand.u32 2147483648, %v8706_v16  ;;  %v8826_v2 = vpop.eup %4489  ;;  %v3458_v34 = vsel %vm3455_vm3, %v3457_v11, %v3453_v56  ;;  %vm2456_vm6 = vcmp.eq.f32.partialorder %v8706_v16, 0.0 }
 0x3df   : > { %v2455_v3 = vsel %vm2454_vm11, %v8706_v16, %v2453_v48  ;;  %v2631_v0 = vsub.f32 1.5, %v2630_v55  ;;  %v8835_v39 = vsel %vm1624_vm12, %v1625_v63, %v8764_v59  ;;  %v3907_v43 = vperm.slane %v3474_v47, %v6774_v14  ;;  %v9469_v16 = vld [vmem:[#allocation106_spill] sm:$0xff] }
 0x3e0   : > { %v3459_v52 = vmul.f32 %v3458_v34, %v9468_v29  ;;  %v2458_v28 = vsel %vm2456_vm6, %v2457_v40, %v2455_v3  ;;  %v1614_v5 = vsel %vm1612_vm13, %v1613_v35, %v8775_v61  ;;  %v2653_v22 = vmul.f32 %v8812_v13, %v2652_v17 }
 0x3e1   : > { %v2731_v45 = vmul.f32 %v2458_v28, %v9469_v16  ;;  %v2632_v58 = vmul.f32 %v4486_v31, %v2631_v0  ;;  %v1656_v63 = vmul.f32 %v8314_v36, %v1655_v42  ;;  %v8851_v59 = vmul.f32 %v8536_v37, %v8768_v51 }
 0x3e2   : > { %v3906_v18 = vperm.slane %v3459_v52, %v6734_v49  ;;  %v2640_v57 = vmul.f32 %v8826_v2, %v8797_v4  ;;  %v3688_v7 = vmul.f32 %v8755_v20, %v3687_v50  ;;  %v2654_v31 = vmul.f32 0.5, %v2653_v22  ;;  %v8909_v52 = vpop.xlane.xlu2 %1917 }
 0x3e3   : > { %v8857_v35 = vmax.f32 %v2731_v45, 1e-08  ;;  %v2633_v61 = vmul.f32 %v2632_v58, %v8735_v23  ;;  %vm2634_vm9 = vcmp.eq.f32.partialorder %v8735_v23, inf  ;;  %4493 = vrsqrt.f32 %v8845_v15 }
 0x3e4   : > { %v4492_v1 = vpop.eup %4491  ;;  %v3908_v46 = vsel %vm3844_vm7, %v3907_v43, %v3906_v18  ;;  %v2641_v36 = vmul.f32 %v8826_v2, %v2640_v57  ;;  %v2637_v6 = vand.u32 2147483648, %v8735_v23  ;;  %v8872_v62 = vmul.f32 %v1656_v63, %v6560_v53 }
 0x3e5   : > { %v8866_v51 = vsel %vm3947_vm5, %v3908_v46, %v8750_v44  ;;  %v3491_v54 = vmul.f32 %v4492_v1, %v8818_v8  ;;  %4495 = vrcp.f32 %v8857_v35  ;;  %v3694_v32 = vand.u32 2147483647, %v8697_v25 }
 0x3e6   : > { %v2635_v9 = vsel %vm2634_vm9, %v8735_v23, %v2633_v61  ;;  %vm2636_vm2 = vcmp.eq.f32.partialorder %v8735_v23, 0.0  ;;  %v3696_v38 = vand.u32 2147483648, %v8697_v25  ;;  %v2655_v21 = vsub.f32 1.5, %v2654_v31 }
 0x3e7   : > { %v3492_v26 = vsub.f32 1.0, %v3491_v54  ;;  %v2638_v44 = vsel %vm2636_vm2, %v2637_v6, %v2635_v9  ;;  %v8879_v41 = vadd.f32 %v8755_v20, %v3688_v7  ;;  %vm3691_vm0 = vweird.f32 %v8755_v20  ;;  %v9472_v7 = vld [vmem:[#allocation66_spill] sm:$0xff] }
 0x3e8   : > { %v2746_v12 = vmul.f32 %v2638_v44, %v1614_v5  ;;  %v2642_v42 = vmul.f32 0.5, %v2641_v36  ;;  %vm3496_vm1 = vweird.f32 %v4492_v1  ;;  %v3501_v10 = vand.u32 2147483648, %v8818_v8 }
 0x3e9   : > { %v3493_v50 = vmul.f32 %v4492_v1, %v3492_v26  ;;  %v2656_v33 = vmul.f32 %v8812_v13, %v2655_v21  ;;  %v8884_v47 = vpop.eup %4493  ;;  %vm3690_vm15 = vweird.f32 %v8697_v25  ;;  %v3499_v23 = vand.u32 2147483647, %v8818_v8  ;;  %v9473_v21 = vld [vmem:[#allocation61_spill] sm:$0xff] }
 0x3ea   : > { %v8888_v60 = vmax.f32 %v2746_v12, 1e-08  ;;  %v2643_v55 = vsub.f32 1.5, %v2642_v42  ;;  %vm8890_vm8 = vmor %vm3690_vm15, %vm3691_vm0  ;;  %v3697_v17 = vor.u32 1.1754944e-38, %v3696_v38  ;;  %vm3495_vm12 = vweird.f32 %v8818_v8 }
 0x3eb   : > { %v4496_v11 = vpop.eup %4495  ;;  %v3494_v56 = vadd.f32 %v4492_v1, %v3493_v50  ;;  %v2657_v13 = vmul.f32 %v2656_v33, %v8772_v19  ;;  %v3693_v40 = vsel %vm8890_vm8, %v8755_v20, %v8879_v41  ;;  %vm3497_vm13 = vmor %vm3495_vm12, %vm3496_vm1  ;;  %vm2658_vm14 = vcmp.eq.f32.partialorder %v8772_v19, inf }
 0x3ec   : > { %v3476_v34 = vmul.f32 %v4496_v11, %v8857_v35  ;;  %4497 = vrcp.f32 %v8888_v60  ;;  %v3502_v0 = vor.u32 1.1754944e-38, %v3501_v10  ;;  %v2472_v8 = vmul.f32 %v8884_v47, %v8845_v15 }
 0x3ed   : > { %v3498_v3 = vsel %vm3497_vm13, %v4492_v1, %v3494_v56  ;;  %vm2660_vm10 = vcmp.eq.f32.partialorder %v8772_v19, 0.0  ;;  %vm3500_vm4 = vcmp.eq.f32.partialorder %v3499_v23, 8.507059e+37  ;;  %v2659_v29 = vsel %vm2658_vm14, %v8772_v19, %v2657_v13 }
 0x3ee   : > { %v3477_v43 = vsub.f32 1.0, %v3476_v34  ;;  %v2644_v20 = vmul.f32 %v8826_v2, %v2643_v55  ;;  %v3503_v28 = vsel %vm3500_vm4, %v3502_v0, %v3498_v3  ;;  %v3486_v5 = vand.u32 2147483648, %v8857_v35  ;;  %v9475_v3 = vld [vmem:[#allocation22_spill] sm:$0xff] }
 0x3ef   : > { %v2661_v16 = vand.u32 2147483648, %v8772_v19  ;;  %vm2646_vm11 = vcmp.eq.f32.partialorder %v8797_v4, inf  ;;  %vm3481_vm3 = vweird.f32 %v4496_v11  ;;  %v3484_v58 = vand.u32 2147483647, %v8857_v35 }
 0x3f0   : > { %v3478_v45 = vmul.f32 %v4496_v11, %v3477_v43  ;;  %v2649_v22 = vand.u32 2147483648, %v8797_v4  ;;  %v2473_v63 = vmul.f32 %v8884_v47, %v2472_v8  ;;  %v2645_v2 = vmul.f32 %v2644_v20, %v8797_v4  ;;  %v9477_v43 = vld [vmem:[#allocation88_spill] sm:$0xff] }
 0x3f1   : > { %v2662_v18 = vsel %vm2660_vm10, %v2661_v16, %v2659_v29  ;;  %4499 = vrsqrt.f32 %v8909_v52  ;;  %v3504_v61 = vmul.f32 %v3503_v28, %v9472_v7  ;;  %vm3480_vm6 = vweird.f32 %v8857_v35  ;;  %v9478_v20 = vld [vmem:[#allocation76_spill] sm:$0xff] }
 0x3f2   : > { %v4498_v57 = vpop.eup %4497  ;;  %v3479_v31 = vadd.f32 %v4496_v11, %v3478_v45  ;;  %v2748_v19 = vmul.f32 %v2662_v18, %v8759_v24  ;;  %vm3482_vm9 = vmor %vm3480_vm6, %vm3481_vm3  ;;  %v3487_v1 = vor.u32 1.1754944e-38, %v3486_v5  ;;  %v2647_v36 = vsel %vm2646_vm11, %v8797_v4, %v2645_v2  ;;  %v8966_v2 = vpop.xlane.xlu1 %1914 }
 0x3f3   : > { %v3701_v46 = vmul.f32 %v4498_v57, %v8888_v60  ;;  %vm2648_vm2 = vcmp.eq.f32.partialorder %v8797_v4, 0.0  ;;  %vm3485_vm0 = vcmp.eq.f32.partialorder %v3484_v58, 8.507059e+37  ;;  %v2474_v35 = vmul.f32 0.5, %v2473_v63 }
 0x3f4   : > { %v3483_v54 = vsel %vm3482_vm9, %v4496_v11, %v3479_v31  ;;  %v8927_v6 = vmax.f32 %v2748_v19, 1e-08  ;;  %v2650_v9 = vsel %vm2648_vm2, %v2649_v22, %v2647_v36  ;;  %v3910_v44 = vperm.slane %v3504_v61, %v6774_v14 }
 0x3f5   : > { %v3488_v38 = vsel %vm3485_vm0, %v3487_v1, %v3483_v54  ;;  %v3702_v26 = vsub.f32 1.0, %v3701_v46  ;;  %v2747_v24 = vmul.f32 %v2650_v9, %v8835_v39  ;;  %v3711_v12 = vand.u32 2147483648, %v8888_v60 }
 0x3f6   : > { %v3489_v41 = vmul.f32 %v3488_v38, %v9473_v21  ;;  %4501 = vrcp.f32 %v8927_v6  ;;  %vm3695_vm1 = vcmp.eq.f32.partialorder %v3694_v32, 8.507059e+37  ;;  %vm3706_vm15 = vweird.f32 %v4498_v57 }
 0x3f7   : > { %v4500_v42 = vpop.eup %4499  ;;  %v3703_v4 = vmul.f32 %v4498_v57, %v3702_v26  ;;  %v3709_v50 = vand.u32 2147483647, %v8888_v60  ;;  %v3698_v10 = vsel %vm3695_vm1, %v3697_v17, %v3693_v40  ;;  %v8938_v39 = vmax.f32 %v2747_v24, 1e-08  ;;  %v9474_v17 = vld [vmem:[#allocation77_spill] sm:$0xff] }
 0x3f8   : > { %v3909_v33 = vperm.slane %v3489_v41, %v6734_v49  ;;  %v2676_v23 = vmul.f32 %v4500_v42, %v8909_v52  ;;  %vm1658_vm8 = vcmp.eq.f32.partialorder %v6560_v53, inf  ;;  %v8943_v55 = vmul.f32 0.5, %v8851_v59  ;;  %v9476_v59 = vld [vmem:[#allocation103_spill] sm:$0xff] }
 0x3f9   : > { %v3704_v11 = vadd.f32 %v4498_v57, %v3703_v4  ;;  %vm3705_vm12 = vweird.f32 %v8888_v60  ;;  %v3712_v32 = vor.u32 1.1754944e-38, %v3711_v12  ;;  %v2475_v48 = vsub.f32 1.5, %v2474_v35  ;;  %v9479_v4 = vld [vmem:[#allocation80_spill] sm:$0xff] }
 0x3fa   : > { %v8947_v25 = vsel %vm3844_vm7, %v3910_v44, %v3909_v33  ;;  %vm3707_vm13 = vmor %vm3705_vm12, %vm3706_vm15  ;;  %4503 = vrcp.f32 %v8938_v39  ;;  %v3699_v56 = vmul.f32 %v3698_v10, %v9474_v17  ;;  %vm3710_vm14 = vcmp.eq.f32.partialorder %v3709_v50, 8.507059e+37 }
 0x3fb   : > { %v3708_v13 = vsel %vm3707_vm13, %v4498_v57, %v3704_v11  ;;  %v2677_v40 = vmul.f32 %v4500_v42, %v2676_v23  ;;  %v8953_v0 = vmul.f32 %v9476_v59, %v9475_v3  ;;  %v1659_v60 = vsel %vm1658_vm8, %v6560_v53, %v8872_v62 }
 0x3fc   : > { %v4502_v34 = vpop.eup %4501  ;;  %v3713_v8 = vsel %vm3710_vm14, %v3712_v32, %v3708_v13  ;;  %4505 = vrsqrt.f32 %v9477_v43  ;;  %v1661_v29 = vand.u32 2147483648, %v6560_v53  ;;  %vm1660_vm10 = vcmp.eq.f32.partialorder %v6560_v53, 0.0 }
 0x3fd   : > { %v3714_v28 = vmul.f32 %v3713_v8, %v9478_v20  ;;  %v3731_v5 = vmul.f32 %v4502_v34, %v8927_v6  ;;  %v1643_v16 = vsub.f32 1.5, %v8943_v55  ;;  %v2476_v45 = vmul.f32 %v8884_v47, %v2475_v48 }
 0x3fe   : > { %v2678_v58 = vmul.f32 0.5, %v2677_v40  ;;  %v3930_v22 = vperm.slane %v3699_v56, %v6734_v49  ;;  %v1662_v18 = vsel %vm1660_vm10, %v1661_v29, %v1659_v60  ;;  %v3739_v7 = vand.u32 2147483647, %v8927_v6 }
 0x3ff   : > { %v3931_v62 = vperm.slane %v3714_v28, %v6774_v14  ;;  %v3732_v63 = vsub.f32 1.0, %v3731_v5  ;;  %v3741_v61 = vand.u32 2147483648, %v8927_v6  ;;  %4507 = vrsqrt.f32 %v8966_v2 }
 0x400   : > { %v4504_v57 = vpop.eup %4503  ;;  %v2679_v31 = vsub.f32 1.5, %v2678_v58  ;;  %vm3736_vm4 = vweird.f32 %v4502_v34  ;;  %v2477_v46 = vmul.f32 %v2476_v45, %v8845_v15  ;;  %vm2682_vm11 = vcmp.eq.f32.partialorder %v8909_v52, inf }
 0x401   : > { %v3932_v53 = vsel %vm3844_vm7, %v3931_v62, %v3930_v22  ;;  %v3733_v47 = vmul.f32 %v4502_v34, %v3732_v63  ;;  %v3716_v19 = vmul.f32 %v4504_v57, %v8938_v39  ;;  %vm1454_vm3 = vcmp.eq.f32.partialorder %v9475_v3, inf }
 0x402   : > { %v3971_v1 = vsel %vm3947_vm5, %v3932_v53, %v8725_v27  ;;  %v2680_v36 = vmul.f32 %v4500_v42, %v2679_v31  ;;  %v8977_v54 = vpop.eup %4505  ;;  %vm3735_vm6 = vweird.f32 %v8927_v6  ;;  %v2685_v26 = vand.u32 2147483648, %v8909_v52 }
 0x403   : > { %v3734_v9 = vadd.f32 %v4502_v34, %v3733_v47  ;;  %v3717_v38 = vsub.f32 1.0, %v3716_v19  ;;  %vm3737_vm9 = vmor %vm3735_vm6, %vm3736_vm4  ;;  %vm3740_vm2 = vcmp.eq.f32.partialorder %v3739_v7, 8.507059e+37  ;;  %v3742_v35 = vor.u32 1.1754944e-38, %v3741_v61 }
 0x404   : > { %v3726_v27 = vand.u32 2147483648, %v8938_v39  ;;  %v2681_v24 = vmul.f32 %v2680_v36, %v8909_v52  ;;  %vm3721_vm5 = vweird.f32 %v4504_v57  ;;  %v3724_v41 = vand.u32 2147483647, %v8938_v39 }
 0x405   : > { %v3738_v44 = vsel %vm3737_vm9, %v4502_v34, %v3734_v9  ;;  %v3718_v21 = vmul.f32 %v4504_v57, %v3717_v38  ;;  %v4508_v12 = vpop.eup %4507  ;;  %vm3720_vm0 = vweird.f32 %v8938_v39  ;;  %vm2684_vm1 = vcmp.eq.f32.partialorder %v8909_v52, 0.0 }
 0x406   : > { %v3743_v42 = vsel %vm3740_vm2, %v3742_v35, %v3738_v44  ;;  %v2683_v6 = vsel %vm2682_vm11, %v8909_v52, %v2681_v24  ;;  %v2664_v23 = vmul.f32 %v4508_v12, %v8966_v2  ;;  %v1460_v55 = vmul.f32 %v8977_v54, %v9477_v43  ;;  %vm3722_vm15 = vmor %vm3720_vm0, %vm3721_vm5 }
 0x407   : > { %v3744_v50 = vmul.f32 %v3743_v42, %v9479_v4  ;;  %v3719_v10 = vadd.f32 %v4504_v57, %v3718_v21  ;;  %v2686_v33 = vsel %vm2684_vm1, %v2685_v26, %v2683_v6  ;;  %v1644_v11 = vmul.f32 %v8536_v37, %v1643_v16  ;;  %v9480_v37 = vld [vmem:[#allocation81_spill] sm:$0xff] }
 0x408   : > { %v3727_v32 = vor.u32 1.1754944e-38, %v3726_v27  ;;  %v2750_v39 = vmul.f32 %v2686_v33, %v1662_v18  ;;  %vm2478_vm8 = vcmp.eq.f32.partialorder %v8845_v15, inf  ;;  %vm3725_vm12 = vcmp.eq.f32.partialorder %v3724_v41, 8.507059e+37  ;;  %v1870_v18 = vpop.xlane.xlu0 %1869 }
 0x409   : > { %v3723_v48 = vsel %vm3722_vm15, %v4504_v57, %v3719_v10  ;;  %v2665_v17 = vmul.f32 %v4508_v12, %v2664_v23  ;;  %v1457_v52 = vand.u32 2147483648, %v9475_v3  ;;  %v2479_v56 = vsel %vm2478_vm8, %v8845_v15, %v2477_v46 }
 0x40a   : > { %v3728_v13 = vsel %vm3725_vm12, %v3727_v32, %v3723_v48  ;;  %v8998_v40 = vmax.f32 %v2750_v39, 1e-08  ;;  %v2481_v34 = vand.u32 2147483648, %v8845_v15  ;;  %v3934_v59 = vperm.slane %v3744_v50, %v6774_v14 }
 0x40b   : > { %v3729_v60 = vmul.f32 %v3728_v13, %v9480_v37  ;;  %v2666_v8 = vmul.f32 0.5, %v2665_v17  ;;  %v1455_v29 = vsel %vm1454_vm3, %v9475_v3, %v8953_v0  ;;  %v1461_v20 = vmul.f32 %v8977_v54, %v1460_v55  ;;  %v9483_v37 = vld [vmem:[#allocation82_spill] sm:$0xff] }
 0x40c   : > { %vm2480_vm13 = vcmp.eq.f32.partialorder %v8845_v15, 0.0  ;;  %4509 = vrcp.f32 %v8998_v40  ;;  %v1645_v28 = vmul.f32 %v1644_v11, %v9440_v30  ;;  %vm1456_vm14 = vcmp.eq.f32.partialorder %v9475_v3, 0.0 }
 0x40d   : > { %v2482_v5 = vsel %vm2480_vm13, %v2481_v34, %v2479_v56  ;;  %v3933_v16 = vperm.slane %v3729_v60, %v6734_v49  ;;  %v2667_v45 = vsub.f32 1.5, %v2666_v8  ;;  %v1458_v58 = vsel %vm1456_vm14, %v1457_v52, %v1455_v29 }
 0x40e   : > { %vm1646_vm10 = vcmp.eq.f32.partialorder %v9440_v30, inf  ;;  %v2733_v0 = vmul.f32 %v2482_v5, %v1458_v58  ;;  %vm9481_vm4 = vcmask 1046534   ;;  %v1462_v57 = vmul.f32 0.5, %v1461_v20 }
 0x40f   : > { %v3935_v22 = vsel %vm3844_vm7, %v3934_v59, %v3933_v16  ;;  %v2668_v62 = vmul.f32 %v4508_v12, %v2667_v45  ;;  %vm9482_vm11 = vmmov %vm9481_vm4  ;;  %v1647_v7 = vsel %vm1646_vm10, %v9440_v30, %v1645_v28  ;;  %4511 = vrsqrt.f32 %v1870_v18 }
 0x410   : > { %v9016_v63 = vsel %vm9481_vm4, %v3935_v22, %v3971_v1  ;;  %v9021_v15 = vsel %vm9482_vm11, %v8947_v25, %v8866_v51  ;;  %v1649_v31 = vand.u32 2147483648, %v9440_v30  ;;  %vm2670_vm3 = vcmp.eq.f32.partialorder %v8966_v2, inf  ;;  %v9484_v22 = vld [vmem:[#allocation79_spill] sm:$0xff] }
 0x411   : > { %v2669_v3 = vmul.f32 %v2668_v62, %v8966_v2  ;;  %v2673_v53 = vand.u32 2147483648, %v8966_v2  ;;  %vm1648_vm6 = vcmp.eq.f32.partialorder %v9440_v30, 0.0  ;;  %vm2672_vm9 = vcmp.eq.f32.partialorder %v8966_v2, 0.0 }
 0x412   : > { %v4510_v61 = vpop.eup %4509  ;;  %v9032_v25 = vmax.f32 %v2733_v0, 1e-08  ;;  %v1650_v19 = vsel %vm1648_vm6, %v1649_v31, %v1647_v7  ;;  %v1463_v46 = vsub.f32 1.5, %v1462_v57  ;;  %v3771_v41 = vand.u32 2147483648, %v8998_v40 }
 0x413   : > { %v3761_v47 = vmul.f32 %v4510_v61, %v8998_v40  ;;  %v2671_v51 = vsel %vm2670_vm3, %v8966_v2, %v2669_v3  ;;  %vm3766_vm2 = vweird.f32 %v4510_v61  ;;  %vm3765_vm5 = vweird.f32 %v8998_v40 }
 0x414   : > { %v2674_v1 = vsel %vm2672_vm9, %v2673_v53, %v2671_v51  ;;  %4513 = vrcp.f32 %v9032_v25  ;;  %v1464_v30 = vmul.f32 %v8977_v54, %v1463_v46  ;;  %v3769_v42 = vand.u32 2147483647, %v8998_v40  ;;  %vm3767_vm1 = vmor %vm3765_vm5, %vm3766_vm2 }
 0x415   : > { %v3762_v36 = vsub.f32 1.0, %v3761_v47  ;;  %v2749_v9 = vmul.f32 %v2674_v1, %v1650_v19  ;;  %v4512_v38 = vpop.eup %4511  ;;  %vm1466_vm0 = vcmp.eq.f32.partialorder %v9477_v43, inf  ;;  %vm1468_vm15 = vcmp.eq.f32.partialorder %v9477_v43, 0.0 }
 0x416   : > { %v2484_v27 = vmul.f32 %v4512_v38, %v1870_v18  ;;  %v1465_v21 = vmul.f32 %v1464_v30, %v9477_v43  ;;  %v1469_v23 = vand.u32 2147483648, %v9477_v43  ;;  %v3772_v11 = vor.u32 1.1754944e-38, %v3771_v41  ;;  %v9488_v30 = vld [vmem:[#allocation64_spill] sm:$0xff] }
 0x417   : > { %v2813_v26 = vmax.f32 %v2749_v9, 1e-08  ;;  %v3763_v35 = vmul.f32 %v4510_v61, %v3762_v36  ;;  %vm3770_vm8 = vcmp.eq.f32.partialorder %v3769_v42, 8.507059e+37  ;;  %vm2490_vm12 = vcmp.eq.f32.partialorder %v1870_v18, inf }
 0x418   : > { %v2485_v24 = vmul.f32 %v4512_v38, %v2484_v27  ;;  %v1467_v33 = vsel %vm1466_vm0, %v9477_v43, %v1465_v21  ;;  %vm2492_vm13 = vcmp.eq.f32.partialorder %v1870_v18, 0.0  ;;  %v2493_v52 = vand.u32 2147483648, %v1870_v18 }
 0x419   : > { %4515 = vrcp.f32 %v2813_v26  ;;  %v3764_v44 = vadd.f32 %v4510_v61, %v3763_v35  ;;  %v3756_v17 = vand.u32 2147483648, %v2813_v26  ;;  %v3754_v13 = vand.u32 2147483647, %v2813_v26 }
 0x41a   : > { %v2486_v2 = vmul.f32 0.5, %v2485_v24  ;;  %v9038_v12 = vpop.eup %4513  ;;  %v1470_v34 = vsel %vm1468_vm15, %v1469_v23, %v1467_v33  ;;  %vm3750_vm10 = vweird.f32 %v2813_v26  ;;  %vm9485_vm6 = vcmask 1047559  }
 0x41b   : > { %v3768_v54 = vsel %vm3767_vm1, %v4510_v61, %v3764_v44  ;;  %v3506_v55 = vmul.f32 %v9038_v12, %v9032_v25  ;;  %v3757_v28 = vor.u32 1.1754944e-38, %v3756_v17  ;;  %vm3755_vm11 = vcmp.eq.f32.partialorder %v3754_v13, 8.507059e+37 }
 0x41c   : > { %v2487_v6 = vsub.f32 1.5, %v2486_v2  ;;  %v3773_v48 = vsel %vm3770_vm8, %v3772_v11, %v3768_v54  ;;  %vm3511_vm3 = vweird.f32 %v9038_v12  ;;  %v3516_v61 = vand.u32 2147483648, %v9032_v25 }
 0x41d   : > { %v3774_v60 = vmul.f32 %v3773_v48, %v9483_v37  ;;  %v3507_v20 = vsub.f32 1.0, %v3506_v55  ;;  %vm9486_vm9 = vcmask 130048   ;;  %vm3510_vm2 = vweird.f32 %v9032_v25 }
 0x41e   : > { %v2488_v10 = vmul.f32 %v4512_v38, %v2487_v6  ;;  %v3514_v31 = vand.u32 2147483647, %v9032_v25  ;;  %vm3512_vm5 = vmor %vm3510_vm2, %vm3511_vm3  ;;  %v3517_v19 = vor.u32 1.1754944e-38, %v3516_v61 }
 0x41f   : > { %v4516_v4 = vpop.eup %4515  ;;  %v3937_v58 = vperm.slane %v3774_v60, %v6774_v14  ;;  %v3508_v43 = vmul.f32 %v9038_v12, %v3507_v20 }
 0x420   : > { %v3746_v50 = vmul.f32 %v4516_v4, %v2813_v26  ;;  %v2489_v39 = vmul.f32 %v2488_v10, %v1870_v18  ;;  %vm3751_vm14 = vweird.f32 %v4516_v4  ;;  %vm3515_vm0 = vcmp.eq.f32.partialorder %v3514_v31, 8.507059e+37  ;;  %v9487_v26 = vld [vmem:[#allocation65_spill] sm:$0xff] }
 0x421   : > { %vm3752_vm4 = vmor %vm3750_vm10, %vm3751_vm14  ;;  %v3509_v57 = vadd.f32 %v9038_v12, %v3508_v43 }
 0x422   : > { %v3747_v32 = vsub.f32 1.0, %v3746_v50  ;;  %v2491_v40 = vsel %vm2490_vm12, %v1870_v18, %v2489_v39  ;;  %vm9490_vm14 = vmmov %vm9486_vm9 }
 0x423   : > { %v2494_v59 = vsel %vm2492_vm13, %v2493_v52, %v2491_v40  ;;  %v3513_v47 = vsel %vm3512_vm5, %v9038_v12, %v3509_v57  ;;  %vm9489_vm13 = vmmov %vm9485_vm6 }
 0x424   : > { %v3748_v56 = vmul.f32 %v4516_v4, %v3747_v32  ;;  %v2734_v29 = vmul.f32 %v2494_v59, %v1470_v34  ;;  %v3518_v36 = vsel %vm3515_vm0, %v3517_v19, %v3513_v47 }
 0x425   : > { %v3519_v35 = vmul.f32 %v3518_v36, %v9487_v26 }
 0x426   : > { %v3749_v8 = vadd.f32 %v4516_v4, %v3748_v56  ;;  %v2798_v16 = vmax.f32 %v2734_v29, 1e-08 }
 0x427   : > { %v3912_v44 = vperm.slane %v3519_v35, %v6734_v49 }
 0x428   : > { %v3753_v5 = vsel %vm3752_vm4, %v4516_v4, %v3749_v8  ;;  %4517 = vrcp.f32 %v2798_v16  ;;  %v3531_v1 = vand.u32 2147483648, %v2798_v16  ;;  %vm3525_vm15 = vweird.f32 %v2798_v16 }
 0x429   : > { %v3758_v45 = vsel %vm3755_vm11, %v3757_v28, %v3753_v5 }
 0x42a   : > { %v3759_v62 = vmul.f32 %v3758_v45, %v9484_v22  ;;  %v3532_v38 = vor.u32 1.1754944e-38, %v3531_v1 }
 0x42c   : > { %v3936_v0 = vperm.slane %v3759_v62, %v6734_v49 }
 0x42e   : > { %v3938_v18 = vsel %vm3844_vm7, %v3937_v58, %v3936_v0  ;;  %v4518_v3 = vpop.eup %4517 }
 0x42f   : > { %v3973_v7 = vsel %vm9485_vm6, %v3938_v18, %v9016_v63  ;;  %v3521_v53 = vmul.f32 %v4518_v3, %v2798_v16  ;;  %vm3526_vm1 = vweird.f32 %v4518_v3  ;;  %v3529_v63 = vand.u32 2147483647, %v2798_v16 }
 0x430   : > { %3981 = vst.msk [vmem:[%s7856_s12 + $0x18] sm:$0xff] %vm9486_vm9, %v3973_v7  ;;  %vm3527_vm8 = vmor %vm3525_vm15, %vm3526_vm1 }
 0x431   : > { %v3522_v51 = vsub.f32 1.0, %v3521_v53  ;;  %vm3530_vm12 = vcmp.eq.f32.partialorder %v3529_v63, 8.507059e+37 }
 0x433   : > { %v3523_v46 = vmul.f32 %v4518_v3, %v3522_v51 }
 0x435   : > { %v3524_v9 = vadd.f32 %v4518_v3, %v3523_v46 }
 0x437   : > { %v3528_v25 = vsel %vm3527_vm8, %v4518_v3, %v3524_v9 }
 0x438   : > { %v3533_v27 = vsel %vm3530_vm12, %v3532_v38, %v3528_v25 }
 0x439   : > { %v3534_v24 = vmul.f32 %v3533_v27, %v9488_v30 }
 0x43b   : > { %v3913_v2 = vperm.slane %v3534_v24, %v6774_v14 }
 0x43d   : > { %v3914_v21 = vsel %vm3844_vm7, %v3913_v2, %v3912_v44 }
 0x43e   : > { %v3966_v41 = vsel %vm9489_vm13, %v3914_v21, %v9021_v15 }
 0x43f   : > { %3980 = vst.msk [vmem:[%s7856_s12 + $0x10] sm:$0xff] %vm9490_vm14, %v3966_v41 }
 0x440 PF: > { %s27_s25 = sadd.s32 1, %s4631_s25   ;;  %s9491_s23 = smov %s4627_s24 }
 0x441   : > { %p24_p7 = scmp.ge.s32.totalorder %s27_s25, 4   ;;  %s9492_s24 = smov %s9494_s0 }
 0x443   :  { %26 = sbr.rel (!%p24_p7) target bundleno = 9 (0x9), region = 61 }

</bundles_post_ra>
